<compile_context>
chip_gen: v6e
topology: v6e:2x2x1
jax: 0.10.0
libtpu: 0.0.40
codegen_flags: <defaults>
</compile_context>

<pallas_src>
import functools
from typing import Optional, Tuple, Union

import jax
import jax.numpy as jnp
from jax.experimental import pallas as pl
from jax.experimental.pallas import tpu as pltpu

IntOrPair = Union[int, Tuple[int, int]]
Pair = Tuple[int, int]

# Working-set budget sized for v7x (64 MiB VMEM/TC, most constrained gen);
# v5e / v6e (128 MiB) trivially fit the same budget.
VMEM_BUDGET_BYTES = 24 * 1024 * 1024
VMEM_LIMIT_BYTES = 48 * 1024 * 1024


def force_pair(v: IntOrPair) -> Pair:
    if isinstance(v, tuple):
        if len(v) != 2:
            raise ValueError(v)
        return (int(v[0]), int(v[1]))
    elif isinstance(v, int):
        return (v, v)
    raise ValueError(v)


def _round_up(n: int, m: int) -> int:
    return (n + m - 1) // m * m


def _pick_bc_tile(bc, h, w, hp_ext, wp_ext, oh, ow, itemsize, needs_scratch):
    """Pick how many (H, W) planes to process per grid step, sized for VMEM."""
    def plane_bytes(r, c):
        # VMEM footprint per plane after (8, 128) tiling/padding.
        return _round_up(r, 8) * _round_up(c, 128) * itemsize

    per_plane = (2 * plane_bytes(h, w)            # input block, double-buffered
                 + 2 * plane_bytes(oh, ow)        # output block, double-buffered
                 + (plane_bytes(hp_ext, wp_ext) if needs_scratch else 0)
                 + 3 * plane_bytes(hp_ext, wp_ext))  # headroom for cmax/rmax temps
    tile = max(1, VMEM_BUDGET_BYTES // per_plane)
    # Keep >= 2 grid steps when possible so v7x's 2 TensorCores both get work
    # (dimension_semantics=("parallel",) shards the grid axis across cores).
    if bc >= 2:
        tile = min(tile, pl.cdiv(bc, 2))
    return int(min(tile, bc, 1024))


def _maxpool2d_kernel(x_ref, o_ref, *scratch,
                      kh, kw, sh, sw, oh, ow, h, w, ph, pw):
    """Pool a (T, h, w) block of planes into a (T, oh, ow) block.

    Steps (all in the input dtype, no upcast):
      1. (optional) build the -inf-padded plane in a persistent VMEM scratch
         (only the border strips are filled; the interior is the DMA'd block).
      2. running max over the kw column offsets via shifted contiguous slices,
      3. running max over the kh row offsets via shifted sublane slices,
      4. a single stride-(sh, sw) subsample of the reduced plane.
    """
    neg = float("-inf")
    if scratch:
        pad_ref, = scratch
        t, hp_ext, wp_ext = pad_ref.shape
        bot = hp_ext - ph - h
        right = wp_ext - pw - w
        dt = pad_ref.dtype
        # Border strips (re-filled every step: cheap VMEM stores, and required
        # for correctness when the grid is sharded across TensorCores).
        if ph > 0:
            pad_ref[:, 0:ph, :] = jnp.full((t, ph, wp_ext), neg, dt)
        if bot > 0:
            pad_ref[:, ph + h:, :] = jnp.full((t, bot, wp_ext), neg, dt)
        if pw > 0:
            pad_ref[:, ph:ph + h, 0:pw] = jnp.full((t, h, pw), neg, dt)
        if right > 0:
            pad_ref[:, ph:ph + h, pw + w:] = jnp.full((t, h, right), neg, dt)
        pad_ref[:, ph:ph + h, pw:pw + w] = x_ref[...]
        p = pad_ref[...]
    else:
        p = x_ref[...]

    t, hpe, wpe = p.shape

    # 2) column (lane-axis) running max over kw shifted contiguous slices.
    wc = wpe - kw + 1
    cmax = p[:, :, 0:wc]
    for j in range(1, kw):
        cmax = jnp.maximum(cmax, p[:, :, j:j + wc])

    # 3) row (sublane-axis) running max over kh shifted slices.
    hc = hpe - kh + 1
    rmax = cmax[:, 0:hc, :]
    for i in range(1, kh):
        rmax = jnp.maximum(rmax, cmax[:, i:i + hc, :])

    # 4) single strided subsample (rows stride sh, then cols stride sw).
    if sh > 1:
        rows = rmax[:, : sh * oh, :].reshape(t, oh, sh, wc)[:, :, 0, :]
    else:
        rows = rmax[:, :oh, :]
    if sw > 1:
        out = rows[:, :, : sw * ow].reshape(t, oh, ow, sw)[:, :, :, 0]
    else:
        out = rows[:, :, :ow]

    o_ref[...] = out.astype(o_ref.dtype)


def maxpool2d(x: jax.Array,
              kernel_size: IntOrPair,
              stride: Optional[IntOrPair] = None,
              padding: IntOrPair = 0) -> jax.Array:
    """Pallas equivalent of the reference maxpool2d.  x: (B, C, H, W) float."""
    kh, kw = force_pair(kernel_size)
    sh, sw = force_pair(stride) if stride is not None else (kh, kw)
    ph, pw = force_pair(padding)

    assert jnp.issubdtype(x.dtype, jnp.floating), \
        "maxpool2d: floating dtype required (-inf padding semantics)"

    b, c, h, w = x.shape
    hp, wp = h + 2 * ph, w + 2 * pw
    assert hp >= kh and wp >= kw, "kernel larger than padded input"
    oh = (hp - kh) // sh + 1
    ow = (wp - kw) // sw + 1

    # Extended padded-plane size: extra -inf rows/cols give the single
    # reshape-based subsample room; they are never selected by valid windows.
    hp_ext = max(hp, kh - 1 + sh * oh)
    wp_ext = max(wp, kw - 1 + sw * ow)
    needs_scratch = (ph > 0) or (pw > 0) or (hp_ext != h) or (wp_ext != w)

    bc = b * c
    x_flat = x.reshape(bc, h, w)  # free (contiguous) — no extra HBM pass

    bc_tile = _pick_bc_tile(bc, h, w, hp_ext, wp_ext, oh, ow,
                            jnp.dtype(x.dtype).itemsize, needs_scratch)
    grid = (pl.cdiv(bc, bc_tile),)

    kern = functools.partial(_maxpool2d_kernel, kh=kh, kw=kw, sh=sh, sw=sw,
                             oh=oh, ow=ow, h=h, w=w, ph=ph, pw=pw)

    scratch_shapes = ([pltpu.VMEM((bc_tile, hp_ext, wp_ext), x.dtype)]
                      if needs_scratch else [])

    out_flat = pl.pallas_call(
        kern,
        out_shape=jax.ShapeDtypeStruct((bc, oh, ow), x.dtype),
        grid_spec=pltpu.PrefetchScalarGridSpec(
            num_scalar_prefetch=0,
            grid=grid,
            in_specs=[pl.BlockSpec((bc_tile, h, w), lambda i: (i, 0, 0))],
            out_specs=pl.BlockSpec((bc_tile, oh, ow), lambda i: (i, 0, 0)),
            scratch_shapes=scratch_shapes,
        ),
        compiler_params=pltpu.CompilerParams(
            dimension_semantics=("parallel",),
            vmem_limit_bytes=VMEM_LIMIT_BYTES),
    )(x_flat)

    return out_flat.reshape(b, c, oh, ow)


class MaxPool2d:
    """Mirror of the reference MaxPool2d module (no parameters).

    Note: default padding=1 matches the reference module spec (which differs
    from torch.nn.MaxPool2d's default of 0).
    """

    def __init__(self, kernel_size: IntOrPair,
                 stride: Optional[IntOrPair] = None,
                 padding: IntOrPair = 1):
        self.kernel_size = kernel_size
        self.stride = stride
        self.padding = padding

    def __call__(self, x: jax.Array) -> jax.Array:
        return maxpool2d(x, self.kernel_size, self.stride, self.padding)

    def extra_repr(self) -> str:
        return "\n".join(
            f"{attr} is {getattr(self, attr)}"
            for attr in ["kernel_size", "stride", "padding"])


if __name__ == "__main__":
    key = jax.random.PRNGKey(0)
    x = jax.random.normal(key, (2, 4, 16, 16), dtype=jnp.float32)

    # 1) Module default config: kernel=2, stride=2, padding=1.
    pool = MaxPool2d(kernel_size=2, stride=2, padding=1)
    out = jax.block_until_ready(pool(x))
    ref = jax.lax.reduce_window(
        x, -jnp.inf, jax.lax.max,
        window_dimensions=(1, 1, 2, 2), window_strides=(1, 1, 2, 2),
        padding=[(0, 0), (0, 0), (1, 1), (1, 1)])
    assert out.shape == ref.shape == (2, 4, 9, 9), out.shape
    assert jnp.array_equal(out, ref), "mismatch (k=2, s=2, p=1)"

    # 2) Overlapping windows (k=3, s=2, p=1) — exercises shifted-slice maxima.
    out2 = jax.block_until_ready(maxpool2d(x, kernel_size=3, stride=2, padding=1))
    ref2 = jax.lax.reduce_window(
        x, -jnp.inf, jax.lax.max,
        window_dimensions=(1, 1, 3, 3), window_strides=(1, 1, 2, 2),
        padding=[(0, 0), (0, 0), (1, 1), (1, 1)])
    assert out2.shape == ref2.shape
    assert jnp.array_equal(out2, ref2), "mismatch (k=3, s=2, p=1)"

    # 3) bf16, no padding (k=4, s=4, p=0) — exercises dtype handling.
    xb = x.astype(jnp.bfloat16)
    out3 = jax.block_until_ready(maxpool2d(xb, kernel_size=4, stride=4, padding=0))
    ref3 = jax.lax.reduce_window(
        xb, jnp.array(-jnp.inf, jnp.bfloat16), jax.lax.max,
        window_dimensions=(1, 1, 4, 4), window_strides=(1, 1, 4, 4),
        padding=[(0, 0)] * 4)
    assert out3.shape == ref3.shape
    assert jnp.array_equal(out3, ref3), "mismatch (bf16, k=4, s=4, p=0)"

    print("KERNEL_OK")
</pallas_src>

<mosaic_0001>
module attributes {stable_mosaic.version = 11 : i64} {
  func.func @_maxpool2d_kernel(%arg0: i32, %arg1: memref<4x16x16xf32, #tpu.memory_space<vmem>>, %arg2: memref<4x9x9xf32, #tpu.memory_space<vmem>>, %arg3: memref<4x19x19xf32, #tpu.memory_space<vmem>>) attributes {dimension_semantics = [#tpu.dimension_semantics<parallel>], iteration_bounds = array<i64: 2>, scalar_prefetch = 0 : i64, scratch_operands = 1 : i64, tpu.core_type = #tpu.core_type<tc>, window_params = [{transform_indices = @transform_0, window_bounds = array<i64: 4, 16, 16>}, {transform_indices = @transform_1, window_bounds = array<i64: 4, 9, 9>}]} {
    %cst = arith.constant 0xFF800000 : f32
    %0 = vector.broadcast %cst : f32 to vector<4x1x19xf32>
    %c0 = arith.constant 0 : index
    %c0_0 = arith.constant 0 : index
    %c0_1 = arith.constant 0 : index
    %1 = vector.load %arg3[%c0, %c0_0, %c0_1] : memref<4x19x19xf32, #tpu.memory_space<vmem>>, vector<4x1x19xf32>
    tpu.vector_store %arg3[%c0, %c0_0, %c0_1], %0 {strides = array<i32>} : memref<4x19x19xf32, #tpu.memory_space<vmem>>, vector<4x1x19xf32>,
    %cst_2 = arith.constant 0xFF800000 : f32
    %2 = vector.broadcast %cst_2 : f32 to vector<4x2x19xf32>
    %c0_3 = arith.constant 0 : index
    %c17 = arith.constant 17 : index
    %c0_4 = arith.constant 0 : index
    %3 = vector.load %arg3[%c0_3, %c17, %c0_4] : memref<4x19x19xf32, #tpu.memory_space<vmem>>, vector<4x2x19xf32>
    tpu.vector_store %arg3[%c0_3, %c17, %c0_4], %2 {strides = array<i32>} : memref<4x19x19xf32, #tpu.memory_space<vmem>>, vector<4x2x19xf32>,
    %cst_5 = arith.constant 0xFF800000 : f32
    %4 = vector.broadcast %cst_5 : f32 to vector<4x16x1xf32>
    %c0_6 = arith.constant 0 : index
    %c1 = arith.constant 1 : index
    %c0_7 = arith.constant 0 : index
    %5 = vector.load %arg3[%c0_6, %c1, %c0_7] : memref<4x19x19xf32, #tpu.memory_space<vmem>>, vector<4x16x1xf32>
    tpu.vector_store %arg3[%c0_6, %c1, %c0_7], %4 {strides = array<i32>} : memref<4x19x19xf32, #tpu.memory_space<vmem>>, vector<4x16x1xf32>,
    %cst_8 = arith.constant 0xFF800000 : f32
    %6 = vector.broadcast %cst_8 : f32 to vector<4x16x2xf32>
    %c0_9 = arith.constant 0 : index
    %c1_10 = arith.constant 1 : index
    %c17_11 = arith.constant 17 : index
    %7 = vector.load %arg3[%c0_9, %c1_10, %c17_11] : memref<4x19x19xf32, #tpu.memory_space<vmem>>, vector<4x16x2xf32>
    tpu.vector_store %arg3[%c0_9, %c1_10, %c17_11], %6 {strides = array<i32>} : memref<4x19x19xf32, #tpu.memory_space<vmem>>, vector<4x16x2xf32>,
    %c0_12 = arith.constant 0 : index
    %c0_13 = arith.constant 0 : index
    %c0_14 = arith.constant 0 : index
    %8 = vector.load %arg1[%c0_12, %c0_13, %c0_14] : memref<4x16x16xf32, #tpu.memory_space<vmem>>, vector<4x16x16xf32>
    %c0_15 = arith.constant 0 : index
    %c1_16 = arith.constant 1 : index
    %c1_17 = arith.constant 1 : index
    %9 = vector.load %arg3[%c0_15, %c1_16, %c1_17] : memref<4x19x19xf32, #tpu.memory_space<vmem>>, vector<4x16x16xf32>
    tpu.vector_store %arg3[%c0_15, %c1_16, %c1_17], %8 {strides = array<i32>} : memref<4x19x19xf32, #tpu.memory_space<vmem>>, vector<4x16x16xf32>,
    %c0_18 = arith.constant 0 : index
    %c0_19 = arith.constant 0 : index
    %c0_20 = arith.constant 0 : index
    %10 = vector.load %arg3[%c0_18, %c0_19, %c0_20] : memref<4x19x19xf32, #tpu.memory_space<vmem>>, vector<4x19x19xf32>
    %11 = vector.extract_strided_slice %10 {offsets = [0, 0, 0], sizes = [4, 19, 18], strides = [1, 1, 1]} : vector<4x19x19xf32> to vector<4x19x18xf32>
    %12 = vector.extract_strided_slice %10 {offsets = [0, 0, 1], sizes = [4, 19, 18], strides = [1, 1, 1]} : vector<4x19x19xf32> to vector<4x19x18xf32>
    %13 = arith.maximumf %11, %12 : vector<4x19x18xf32>
    %14 = vector.extract_strided_slice %13 {offsets = [0, 0, 0], sizes = [4, 18, 18], strides = [1, 1, 1]} : vector<4x19x18xf32> to vector<4x18x18xf32>
    %15 = vector.extract_strided_slice %13 {offsets = [0, 1, 0], sizes = [4, 18, 18], strides = [1, 1, 1]} : vector<4x19x18xf32> to vector<4x18x18xf32>
    %16 = arith.maximumf %14, %15 : vector<4x18x18xf32>
    %17 = vector.shape_cast %16 : vector<4x18x18xf32> to vector<4x9x2x18xf32>
    %18 = vector.extract_strided_slice %17 {offsets = [0, 0, 0, 0], sizes = [4, 9, 1, 18], strides = [1, 1, 1, 1]} : vector<4x9x2x18xf32> to vector<4x9x1x18xf32>
    %19 = vector.shape_cast %18 : vector<4x9x1x18xf32> to vector<4x9x18xf32>
    %20 = vector.shape_cast %19 : vector<4x9x18xf32> to vector<4x9x9x2xf32>
    %21 = vector.extract_strided_slice %20 {offsets = [0, 0, 0, 0], sizes = [4, 9, 9, 1], strides = [1, 1, 1, 1]} : vector<4x9x9x2xf32> to vector<4x9x9x1xf32>
    %22 = vector.shape_cast %21 : vector<4x9x9x1xf32> to vector<4x9x9xf32>
    %c0_21 = arith.constant 0 : index
    %c0_22 = arith.constant 0 : index
    %c0_23 = arith.constant 0 : index
    %23 = vector.load %arg2[%c0_21, %c0_22, %c0_23] : memref<4x9x9xf32, #tpu.memory_space<vmem>>, vector<4x9x9xf32>
    tpu.vector_store %arg2[%c0_21, %c0_22, %c0_23], %22 {strides = array<i32>} : memref<4x9x9xf32, #tpu.memory_space<vmem>>, vector<4x9x9xf32>,
    return
  }
  func.func @transform_0(%arg0: i32) -> (i32, i32, i32) {
    %c0_i32 = arith.constant 0 : i32
    %c0_i32_0 = arith.constant 0 : i32
    %c0_i32_1 = arith.constant 0 : i32
    return %arg0, %c0_i32, %c0_i32_0 : i32, i32, i32
  }
  func.func @transform_1(%arg0: i32) -> (i32, i32, i32) {
    %c0_i32 = arith.constant 0 : i32
    %c0_i32_0 = arith.constant 0 : i32
    %c0_i32_1 = arith.constant 0 : i32
    return %arg0, %c0_i32, %c0_i32_0 : i32, i32, i32
  }
}

</mosaic_0001>

<bundles_post_ra>
// kernel: tpu_custom_call.1
= control target key start
LH: loop header
LB: loop body
LE: loop exit
PB: predicated region body
PF: predicated region fallthrough
CT: control target
= control target key end

     0   :  { %6 = vsyncpa [#allocation4], 0  ;;  %s6491_s0 = inlined_call_operand.hbm [shape: f32[8,16,16], index: 0, kind: input, shape index: {}]   ;;  %s6492_s1 = inlined_call_operand.vmem [shape: f32[8,9,9], index: 1, kind: output, shape index: {}]  }
   0x1   :  { %8 = vsyncpa [#allocation4 + $0x1], 0  ;;  %s4380_s6 = smov 0   ;;  %s4382_s7 = smov 0  }
   0x2   :  { %s4384_s8 = smov 0   ;;  %s4386_s9 = smov 0  }
   0x3 LB: > { %s4214_s10 = sadd.s32 4294967295, %s4351_s9   ;;  %s4400_s11 = sadd.s32 1, %s4351_s9   ;;  %s4351_s9 = sphi %s4386_s9, %s6969_s9   ;;  %s4347_s8 = sphi %s4384_s8, %s6968_s8   ;;  %s4343_s7 = sphi %s4382_s7, %s6967_s7   ;;  %s4339_s6 = sphi %s4380_s6, %s6966_s6  }
   0x4   : > { %s18_s12 = ssub.s32 %s4351_s9, %s4400_s11  ;;  %s21_s13 = sadd.s32 1, %s4347_s8 }
   0x5   : > { %p19_p0 = scmp.eq.s32.totalorder %s18_s12, 0  ;;  %p28_p1 = scmp.ne.s32.totalorder %s4347_s8, %s4343_s7 }
   0x6   : > { %p29_p2 = scmp.eq.s32.totalorder %s4351_s9, 0  ;;  %p34_p3 = scmp.ne.s32.totalorder %s4343_s7, %s4339_s6 }
   0x7   : > { %s4410_s14 = scalar_select %p19_p0, %s4347_s8, %s21_s13  }
   0x8   : > { %p30_p4 = por %p29_p2, %p28_p1  ;;  %p35_p5 = scmp.eq.s32.totalorder %s4214_s10, 0 }
   0x9   : > { %p4238_p6 = scmp.lt.s32.totalorder %s4351_s9, 2  ;;  %s84_s16 = sand.u32 1, %s4347_s8  }
   0xa   : > { %p4415_p7 = por %p35_p5, %p34_p3  ;;  %s4218_s17 = sshll.u32 %s84_s16, 6 }
   0xb   : > { %s4230_s18 = sshll.u32 %s4351_s9, 10  ;;  %s88_s22 = scalar_lea.vmem [#allocation3], %s4218_s17 }
   0xc   : > { %s6515_s15 = scalar_select %p4415_p7, 1, 0 }
   0xd   : > { %s4424_s21 = scalar_lea.hbm %s6491_s0, %s4230_s18  ;;  %s96_s23 = sshll.u32 %s88_s22, 4  ;;  %s4426_s23 = int_to_ptr.vmem [resolvable:$true] %s96_s23 }
   0xe   : > { %p4428_p8 = pnand %p4238_p6, %p30_p4  ;;  %s4433_s25 = scalar_lea.sflag [#allocation4], %s84_s16 }
   0xf   : > { %s4289_s26 = scalar_lea.hbm %s4424_s21, 1024  ;;  %s4294_s29 = scalar_lea.hbm %s6491_s0, 2048 }
  0x10   : > { %p4290_p10 = scmp.ne.s32.totalorder %s4424_s21, %s4289_s26  ;;  %p4291_p11 = pneg %p4428_p8 }
  0x11   : > { %p4295_p0 = scmp.lt.s32.totalorder %s4424_s21, %s6491_s0  ;;  %p4296_p1 = scmp.lt.s32.totalorder %s4294_s29, %s4289_s26 }
  0x12   : > { %p4292_p12 = pnand %p4291_p11, %p4290_p10 }
  0x13   : > { %p4297_p2 = por %p4296_p1, %p4295_p0 }
  0x14   : > { %p4293_p13 = pneg %p4292_p12 }
  0x16   : > { %p4298_p3 = pnand %p4297_p2, %p4293_p13 }
  0x18   : > { %4301 = shalt.err (!%p4298_p3)
}
  0x19   : > { %s4302_s3 = scalar_lea.vmem %s4426_s23, 1024  ;;  %s4353_s4 = smov [#allocation3]  }
  0x1a   : > { %p4303_p4 = scmp.ne.s32.totalorder %s4426_s23, %s4302_s3  ;;  %s4307_s5 = sshll.u32 %s4353_s4, 4  ;;  %s4308_s5 = int_to_ptr.vmem [resolvable:$false] %s4307_s5 }
  0x1b   : > { %s4309_s6 = scalar_lea.vmem %s4308_s5, 2048  ;;  %p4310_p10 = scmp.lt.s32.totalorder %s4426_s23, %s4308_s5 }
  0x1c   : > { %p4305_p5 = pnand %p4303_p4, %p4291_p11  ;;  %p4311_p12 = scmp.lt.s32.totalorder %s4309_s6, %s4302_s3 }
  0x1e   : > { %p4306_p6 = pneg %p4305_p5  ;;  %p4312_p9 = por %p4311_p12, %p4310_p10 }
  0x20   : > { %p4313_p7 = pnand %p4312_p9, %p4306_p6 }
  0x22   : > { %4316 = shalt.err (!%p4313_p7)
}
  0x23   : > { %s4354_s12 = smov 128   ;;  %s4355_s13 = smov 8  }
  0x24   : > { %4237 = dma.hbm_to_vmem [thread:$0]  (!%p4428_p8), %s4424_s21, 1024, %s4426_s23, %s4433_s25, %s4354_s12, %s4354_s12, %s4355_s13  }
  0x25   : > { %p104_p11 = scmp.lt.s32.totalorder %s4351_s9, 3  ;;  %p6517_p13 = scmp.ge.s32.totalorder %s4351_s9, 1 }
  0x27   : > { %p105_p0 = pnand %p6517_p13, %p104_p11 }
  0x29   : > { %108 = sbr.rel (%p105_p0) target bundleno = 1203 (0x4b3), region = 24 }
  0x2e   : > { %s110_s16 = sand.u32 1, %s4343_s7   ;;  %p6518_p7 = scmp.ne.s32.totalorder %s6515_s15, 0 }
  0x2f   : > { %s4223_s17 = sshll.u32 %s110_s16, 6  ;;  %s111_s18 = scalar_lea.sflag [#allocation4], %s110_s16 }
  0x30   : > { %s4458_s19 = scalar_lea.vmem [#allocation3], %s4223_s17 }
  0x31   : > { %4334 = dma.done.wait (%p6518_p7), %s111_s18, 1024  }
  0x32   : > { %4336 = vsyncadd (%p6518_p7), %s111_s18, 4294966272  ;;  %vm152_vm0 = vcmask 7168   ;;  %vm161_vm1 = vcmask 154760   ;;  %v4356_v0 = vmov -inf   ;;  %vm142_vm2 = vcmask 147456   ;;  %v170_v1 = vld [vmem:[%s4458_s19] sm:$0xff] }
  0x33   : > { %153 = vst.msk [vmem:[#allocation2 + $0x1] sm:$0xff] %vm152_vm0, %v4356_v0  ;;  %154 = vst.msk [vmem:[#allocation2 + $0x9] sm:$0xff] %vm152_vm0, %v4356_v0  ;;  %vm147_vm3 = vcmask 148480   ;;  %v172_v2 = vld [vmem:[%s4458_s19 + $0x10] sm:$0xff]  ;;  %s4357_s15 = smov 1   ;;  %v171_v3 = vld [vmem:[%s4458_s19 + $0x8] sm:$0xff]  ;;  %v6494_v31 = vlaneseq }
  0x34   : > { %155 = vst.msk [vmem:[#allocation2 + $0x19] sm:$0xff] %vm152_vm0, %v4356_v0  ;;  %156 = vst.msk [vmem:[#allocation2 + $0x21] sm:$0xff] %vm152_vm0, %v4356_v0  ;;  %186 = vrot.lane.b32.xlu0 %v170_v1, %s4357_s15  ;;  %190 = vrot.lane.b32.xlu1 %v172_v2, %s4357_s15  ;;  %v173_v4 = vld [vmem:[%s4458_s19 + $0x18] sm:$0xff]  ;;  %v174_v5 = vld [vmem:[%s4458_s19 + $0x20] sm:$0xff]  ;;  %vm210_vm4 = vcmask 138248   ;;  %s4358_s20 = smov 127  }
  0x35   : > { %157 = vst.msk [vmem:[#allocation2 + $0x31] sm:$0xff] %vm152_vm0, %v4356_v0  ;;  %158 = vst.msk [vmem:[#allocation2 + $0x39] sm:$0xff] %vm152_vm0, %v4356_v0  ;;  %v175_v6 = vld [vmem:[%s4458_s19 + $0x28] sm:$0xff]  ;;  %v177_v7 = vld [vmem:[%s4458_s19 + $0x38] sm:$0xff]  ;;  %v4359_v29 = vmov 1983009808  }
  0x36   : > { %159 = vst.msk [vmem:[#allocation2 + $0x49] sm:$0xff] %vm152_vm0, %v4356_v0  ;;  %160 = vst.msk [vmem:[#allocation2 + $0x51] sm:$0xff] %vm152_vm0, %v4356_v0  ;;  %v176_v8 = vld [vmem:[%s4458_s19 + $0x30] sm:$0xff]  ;;  %v362_v30 = vunpack.c.l.s4 %v4359_v29  ;;  %v4511_v34 = vshrl.u32 %v6494_v31, 7  ;;  %s4360_s21 = smov 126   ;;  %s4361_s22 = smov 124  }
  0x37   : > { %162 = vst.msk [vmem:[#allocation2 + $0x1] sm:$0xff] %vm161_vm1, %v4356_v0  ;;  %164 = vst.msk [vmem:[#allocation2 + $0x19] sm:$0xff] %vm161_vm1, %v4356_v0  ;;  %vm303_vm5 = vcmask 1046528   ;;  %s4362_s23 = smov 122   ;;  %s4363_s24 = smov 120   ;;  %vm3775_vm6 = vcmask 130112  }
  0x38   : > { %163 = vst.msk [vmem:[#allocation2 + $0x9] sm:$0xff] %vm161_vm1, %v4356_v0  ;;  %165 = vst.msk [vmem:[#allocation2 + $0x21] sm:$0xff] %vm161_vm1, %v4356_v0  ;;  %188 = vrot.lane.b32.xlu0 %v171_v3, %s4357_s15  ;;  %192 = vrot.lane.b32.xlu1 %v173_v4, %s4357_s15  ;;  %v363_v33 = vunpack.c.0.s8 %v362_v30  ;;  %s4364_s25 = smov 118   ;;  %s4365_s26 = smov 116   ;;  %vm4092_vm7 = vcmask 1041409   ;;  %vm4094_vm8 = vcmask 1042434  }
  0x39   : > { %166 = vst.msk [vmem:[#allocation2 + $0x31] sm:$0xff] %vm161_vm1, %v4356_v0  ;;  %167 = vst.msk [vmem:[#allocation2 + $0x39] sm:$0xff] %vm161_vm1, %v4356_v0  ;;  %s4366_s27 = smov 114   ;;  %s4368_s28 = smov 112   ;;  %vm4096_vm9 = vcmask 1043459   ;;  %vm4098_vm10 = vcmask 1044484  }
  0x3a   : > { %168 = vst.msk [vmem:[#allocation2 + $0x49] sm:$0xff] %vm161_vm1, %v4356_v0  ;;  %169 = vst.msk [vmem:[#allocation2 + $0x51] sm:$0xff] %vm161_vm1, %v4356_v0  ;;  %v4514_v38 = vsub.s32 %v363_v33, %v4511_v34  ;;  %s4224_s29 = sshll.u32 %s4214_s10, 2  ;;  %vm4100_vm11 = vcmask 1045509   ;;  %vm4102_vm12 = vcmask 1046534   ;;  %vm4104_vm13 = vcmask 1047559  }
  0x3b   : > { %143 = vst.msk [vmem:[#allocation2] sm:$0x1] %vm142_vm2, %v4356_v0  ;;  %144 = vst.msk [vmem:[#allocation2 + $0x18] sm:$0x1] %vm142_vm2, %v4356_v0  ;;  %p136_p8 = scmp.lt.s32.totalorder %s4224_s29, 7  ;;  %vm4135_vm14 = vcmask 72704  }
  0x3c   : > { %145 = vst.msk [vmem:[#allocation2 + $0x30] sm:$0x1] %vm142_vm2, %v4356_v0  ;;  %146 = vst.msk [vmem:[#allocation2 + $0x48] sm:$0x1] %vm142_vm2, %v4356_v0  ;;  %194 = vrot.lane.b32.xlu0 %v174_v5, %s4357_s15  ;;  %196 = vrot.lane.b32.xlu1 %v175_v6, %s4357_s15  ;;  %vm4137_vm15 = vcmask 65536  }
  0x3d   : > { %148 = vst.msk [vmem:[#allocation2 + $0x11] sm:$0x3] %vm147_vm3, %v4356_v0  ;;  %149 = vst.msk [vmem:[#allocation2 + $0x29] sm:$0x3] %vm147_vm3, %v4356_v0  ;;  %s6971_s29 = smov (!%p136_p8, %s4224_s29), 7 }
  0x3e   : > { %150 = vst.msk [vmem:[#allocation2 + $0x41] sm:$0x3] %vm147_vm3, %v4356_v0  ;;  %151 = vst.msk [vmem:[#allocation2 + $0x59] sm:$0x3] %vm147_vm3, %v4356_v0  ;;  %s4231_s9 = sshll.u32 %s6971_s29, 4 }
  0x3f   : > { %6519 = vst [vmem:[#allocation6_spill] sm:$0xff] %v4511_v34  ;;  %s6352_s2 = scalar_lea.vmem %s6492_s1, %s4231_s9 }
  0x40   : > { %200 = vrot.lane.b32.xlu1 %v177_v7, %s4357_s15  ;;  %198 = vrot.lane.b32.xlu0 %v176_v8, %s4357_s15 }
  0xa6   : > { %v187_v9 = vpop.permute.xlu0 %186  ;;  %v191_v10 = vpop.permute.xlu1 %190 }
  0xa7   : > { %211 = vst.msk [vmem:[#allocation2 + $0x1] sm:$0xff] %vm210_vm4, %v187_v9  ;;  %213 = vst.msk [vmem:[#allocation2 + $0x19] sm:$0xff] %vm210_vm4, %v191_v10 }
  0xaa   : > { %v189_v11 = vpop.permute.xlu0 %188  ;;  %v193_v12 = vpop.permute.xlu1 %192 }
  0xab   : > { %212 = vst.msk [vmem:[#allocation2 + $0x9] sm:$0xff] %vm210_vm4, %v189_v11  ;;  %214 = vst.msk [vmem:[#allocation2 + $0x21] sm:$0xff] %vm210_vm4, %v193_v12 }
  0xae   : > { %v4488_v13 = vld [vmem:[#allocation2] sm:$0xff]  ;;  %v195_v14 = vpop.permute.xlu0 %194  ;;  %v197_v15 = vpop.permute.xlu1 %196  ;;  %v4495_v20 = vld [vmem:[#allocation2 + $0x18] sm:$0xff] }
  0xaf   : > { %243 = vrot.lane.b32.xlu0 %v4488_v13, %s4358_s20  ;;  %215 = vst.msk [vmem:[#allocation2 + $0x31] sm:$0xff] %vm210_vm4, %v195_v14  ;;  %216 = vst.msk [vmem:[#allocation2 + $0x39] sm:$0xff] %vm210_vm4, %v197_v15 }
  0xb2   : > { %v220_v16 = vld [vmem:[#allocation2 + $0x8] sm:$0xff]  ;;  %v221_v17 = vld [vmem:[#allocation2 + $0x10] sm:$0x7]  ;;  %v201_v18 = vpop.permute.xlu1 %200  ;;  %v199_v19 = vpop.permute.xlu0 %198  ;;  %v4497_v21 = vld [vmem:[#allocation2 + $0x20] sm:$0xff] }
  0xb3   : > { %245 = vrot.lane.b32.xlu1 %v220_v16, %s4358_s20  ;;  %247 = vrot.lane.b32.xlu0 %v221_v17, %s4358_s20  ;;  %218 = vst.msk [vmem:[#allocation2 + $0x51] sm:$0xff] %vm210_vm4, %v201_v18  ;;  %217 = vst.msk [vmem:[#allocation2 + $0x49] sm:$0xff] %vm210_vm4, %v199_v19  ;;  %v224_v22 = vld [vmem:[#allocation2 + $0x28] sm:$0x7] }
  0xb6   : > { %v4501_v23 = vld [vmem:[#allocation2 + $0x30] sm:$0xff]  ;;  %v226_v24 = vld [vmem:[#allocation2 + $0x38] sm:$0xff]  ;;  %v227_v25 = vld [vmem:[#allocation2 + $0x40] sm:$0x7] }
  0xb7   : > { %249 = vrot.lane.b32.xlu1 %v4495_v20, %s4358_s20  ;;  %251 = vrot.lane.b32.xlu0 %v4497_v21, %s4358_s20 }
  0xba   : > { %v4504_v26 = vld [vmem:[#allocation2 + $0x48] sm:$0xff]  ;;  %v4506_v27 = vld [vmem:[#allocation2 + $0x50] sm:$0xff]  ;;  %v230_v28 = vld [vmem:[#allocation2 + $0x58] sm:$0x7] }
  0xbb   : > { %253 = vrot.lane.b32.xlu1 %v224_v22, %s4358_s20  ;;  %255 = vrot.lane.b32.xlu0 %v4501_v23, %s4358_s20 }
  0xbf   : > { %257 = vrot.lane.b32.xlu1 %v226_v24, %s4358_s20  ;;  %259 = vrot.lane.b32.xlu0 %v227_v25, %s4358_s20 }
  0xc3   : > { %261 = vrot.lane.b32.xlu1 %v4504_v26, %s4358_s20  ;;  %263 = vrot.lane.b32.xlu0 %v4506_v27, %s4358_s20 }
  0xc7   : > { %265 = vrot.lane.b32.xlu1 %v230_v28, %s4358_s20 }
 0x121   : > { %v244_v32 = vpop.permute.xlu0 %243 }
 0x122   : > { %v279_v62 = vmax.f32 %v4488_v13, %v244_v32 }
 0x124   : > { %v304_v1 = vrot.slane %v279_v62, 1 }
 0x125   : > { %v246_v35 = vpop.permute.xlu1 %245  ;;  %v248_v36 = vpop.permute.xlu0 %247 }
 0x126   : > { %v281_v37 = vmax.f32 %v221_v17, %v248_v36  ;;  %v280_v60 = vmax.f32 %v220_v16, %v246_v35 }
 0x128   : > { %v307_v39 = vrot.slane %v281_v37, 1  ;;  %v305_v0 = vrot.slane %v280_v60, 1 }
 0x129   : > { %v250_v40 = vpop.permute.xlu1 %249  ;;  %v252_v41 = vpop.permute.xlu0 %251 }
 0x12a   : > { %v338_v42 = vmax.f32 %v281_v37, %v307_v39  ;;  %v306_v2 = vsel %vm303_vm5, %v304_v1, %v305_v0  ;;  %v282_v3 = vmax.f32 %v4495_v20, %v250_v40  ;;  %v283_v4 = vmax.f32 %v4497_v21, %v252_v41 }
 0x12b   : > { %v4549_v7 = vmax.f32 %v279_v62, %v306_v2  ;;  %v308_v8 = vsel %vm303_vm5, %v305_v0, %v307_v39 }
 0x12c   : > { %v4517_v43 = vrot.slane %v338_v42, %v4514_v38  ;;  %v309_v9 = vrot.slane %v282_v3, 1  ;;  %v310_v10 = vrot.slane %v283_v4, 1  ;;  %v337_v15 = vmax.f32 %v280_v60, %v308_v8 }
 0x12d   : > { %v254_v44 = vpop.permute.xlu1 %253  ;;  %v256_v45 = vpop.permute.xlu0 %255  ;;  %v4558_v14 = vrot.slane %v4549_v7, %v4514_v38  ;;  %v360_v42 = vcombine.high %v4549_v7, %v4549_v7 }
 0x12e   : > { %v284_v46 = vmax.f32 %v224_v22, %v254_v44  ;;  %576 = vrot.lane.b32.xlu0 %v4517_v43, %s4360_s21  ;;  %v285_v6 = vmax.f32 %v4501_v23, %v256_v45  ;;  %v311_v16 = vsel %vm303_vm5, %v309_v9, %v310_v10  ;;  %v4569_v20 = vrot.slane %v337_v15, %v4514_v38 }
 0x12f   : > { %v339_v21 = vmax.f32 %v282_v3, %v311_v16  ;;  %v4647_v44 = vrot.slane %v360_v42, %v4514_v38  ;;  %v377_v45 = vcombine.high %v337_v15, %v337_v15 }
 0x130   : > { %v312_v47 = vrot.slane %v284_v46, 1  ;;  %v314_v13 = vrot.slane %v285_v6, 1 }
 0x131   : > { %v258_v48 = vpop.permute.xlu1 %257  ;;  %v260_v49 = vpop.permute.xlu0 %259 }
 0x132   : > { %v341_v50 = vmax.f32 %v284_v46, %v312_v47  ;;  %v287_v51 = vmax.f32 %v227_v25, %v260_v49  ;;  %v286_v5 = vmax.f32 %v226_v24, %v258_v48  ;;  %v313_v23 = vsel %vm303_vm5, %v310_v10, %v312_v47 }
 0x133   : > { %v4654_v46 = vrot.slane %v377_v45, %v4514_v38  ;;  %v4658_v47 = vcombine.high %v4558_v14, %v4558_v14  ;;  %v401_v48 = vcombine.high %v339_v21, %v339_v21 }
 0x134   : > { %v4522_v52 = vrot.slane %v341_v50, %v4514_v38  ;;  %v317_v53 = vrot.slane %v287_v51, 1  ;;  %v315_v11 = vrot.slane %v286_v5, 1  ;;  %v4670_v50 = vcombine.high %v4569_v20, %v4569_v20 }
 0x135   : > { %v262_v54 = vpop.permute.xlu1 %261  ;;  %v264_v12 = vpop.permute.xlu0 %263 }
 0x136   : > { %v344_v55 = vmax.f32 %v287_v51, %v317_v53  ;;  %594 = vrot.lane.b32.xlu1 %v4522_v52, %s4360_s21  ;;  %v316_v17 = vsel %vm303_vm5, %v314_v13, %v315_v11  ;;  %v288_v18 = vmax.f32 %v4504_v26, %v262_v54  ;;  %v289_v19 = vmax.f32 %v4506_v27, %v264_v12 }
 0x137   : > { %v4571_v22 = vmax.f32 %v285_v6, %v316_v17  ;;  %v318_v24 = vsel %vm303_vm5, %v315_v11, %v317_v53  ;;  %v4580_v27 = vrot.slane %v339_v21, %v4514_v38  ;;  %v4677_v51 = vrot.slane %v401_v48, %v4514_v38 }
 0x138   : > { %v4527_v56 = vrot.slane %v344_v55, %v4514_v38  ;;  %v319_v25 = vrot.slane %v288_v18, 1  ;;  %v320_v26 = vrot.slane %v289_v19, 1  ;;  %v343_v30 = vmax.f32 %v286_v5, %v318_v24 }
 0x139   : > { %v266_v57 = vpop.permute.xlu1 %265  ;;  %v4584_v29 = vrot.slane %v4571_v22, %v4514_v38  ;;  %v4666_v49 = vcombine.high %v4580_v27, %v4580_v27  ;;  %v442_v54 = vcombine.high %v4571_v22, %v4571_v22 }
 0x13a   : > { %6520 = vst [vmem:[#allocation7_spill] sm:$0xff] %v4527_v56  ;;  %v290_v58 = vmax.f32 %v230_v28, %v266_v57  ;;  %612 = vrot.lane.b32.xlu0 %v4527_v56, %s4360_s21  ;;  %v340_v28 = vmax.f32 %v283_v4, %v313_v23  ;;  %v321_v32 = vsel %vm303_vm5, %v319_v25, %v320_v26 }
 0x13b   : > { %6522 = vst [vmem:[#allocation9_spill] sm:$0xff] %v4584_v29  ;;  %v4595_v35 = vrot.slane %v343_v30, %v4514_v38  ;;  %v345_v36 = vmax.f32 %v288_v18, %v321_v32 }
 0x13c   : > { %v322_v59 = vrot.slane %v290_v58, 1  ;;  %v4592_v33 = vrot.slane %v340_v28, %v4514_v38  ;;  %v418_v53 = vcombine.high %v340_v28, %v340_v28 }
 0x13d   : > { %6523 = vst [vmem:[#allocation10_spill] sm:$0xff] %v4595_v35  ;;  %v4603_v39 = vrot.slane %v345_v36, %v4514_v38  ;;  %v483_v62 = vcombine.high %v345_v36, %v345_v36  ;;  %v4712_v0 = vcombine.high %v4595_v35, %v4595_v35 }
 0x13e   : > { %v347_v61 = vmax.f32 %v290_v58, %v322_v59  ;;  %684 = vrot.lane.b32.xlu0 %v4517_v43, %s4361_s22  ;;  %v323_v37 = vsel %vm303_vm5, %v320_v26, %v322_v59  ;;  %v4683_v55 = vcombine.high %v4592_v33, %v4592_v33  ;;  %v4690_v57 = vrot.slane %v418_v53, %v4514_v38 }
 0x13f   : > { %6524 = vst [vmem:[#allocation11_spill] sm:$0xff] %v4603_v39  ;;  %v346_v40 = vmax.f32 %v289_v19, %v323_v37  ;;  %v4693_v58 = vrot.slane %v442_v54, %v4514_v38  ;;  %v459_v59 = vcombine.high %v343_v30, %v343_v30  ;;  %6529 = vst [vmem:[#allocation16_spill] sm:$0xff] %v4712_v0 }
 0x140   : > { %v4535_v63 = vrot.slane %v347_v61, %v4514_v38  ;;  %v4704_v61 = vcombine.high %v4584_v29, %v4584_v29  ;;  %v4716_v1 = vcombine.high %v4603_v39, %v4603_v39  ;;  %v4723_v2 = vrot.slane %v483_v62, %v4514_v38 }
 0x141   : > { %v4610_v41 = vrot.slane %v346_v40, %v4514_v38  ;;  %6526 = vst [vmem:[#allocation13_spill] sm:$0xff] %v4693_v58  ;;  %v4700_v60 = vrot.slane %v459_v59, %v4514_v38  ;;  %v500_v3 = vcombine.high %v346_v40, %v346_v40  ;;  %v4858_v53 = vcombine.high %v4677_v51, %v4677_v51 }
 0x142   : > { %6521 = vst [vmem:[#allocation8_spill] sm:$0xff] %v4535_v63  ;;  %630 = vrot.lane.b32.xlu1 %v4535_v63, %s4360_s21  ;;  %720 = vrot.lane.b32.xlu0 %v4527_v56, %s4361_s22  ;;  %6528 = vst [vmem:[#allocation15_spill] sm:$0xff] %v4704_v61  ;;  %v4870_v62 = vcombine.high %v4690_v57, %v4690_v57 }
 0x143   : > { %6525 = vst [vmem:[#allocation12_spill] sm:$0xff] %v4610_v41  ;;  %6527 = vst [vmem:[#allocation14_spill] sm:$0xff] %v4700_v60  ;;  %v4727_v4 = vcombine.high %v4610_v41, %v4610_v41  ;;  %v4734_v5 = vrot.slane %v500_v3, %v4514_v38 }
 0x144   : > { %6530 = vst [vmem:[#allocation17_spill] sm:$0xff] %v4716_v1  ;;  %6531 = vst [vmem:[#allocation18_spill] sm:$0xff] %v4723_v2 }
 0x145   : > { %6532 = vst [vmem:[#allocation19_spill] sm:$0xff] %v4727_v4  ;;  %6533 = vst [vmem:[#allocation20_spill] sm:$0xff] %v4734_v5 }
 0x146   : > { %702 = vrot.lane.b32.xlu1 %v4522_v52, %s4361_s22  ;;  %792 = vrot.lane.b32.xlu0 %v4517_v43, %s4362_s23 }
 0x14a   : > { %738 = vrot.lane.b32.xlu1 %v4535_v63, %s4361_s22  ;;  %828 = vrot.lane.b32.xlu0 %v4527_v56, %s4362_s23 }
 0x14e   : > { %810 = vrot.lane.b32.xlu1 %v4522_v52, %s4362_s23  ;;  %560 = vrot.lane.b32.xlu0 %v4558_v14, %s4360_s21 }
 0x152   : > { %846 = vrot.lane.b32.xlu1 %v4535_v63, %s4362_s23  ;;  %568 = vrot.lane.b32.xlu0 %v4569_v20, %s4360_s21 }
 0x156   : > { %578 = vrot.lane.b32.xlu1 %v4580_v27, %s4360_s21  ;;  %596 = vrot.lane.b32.xlu0 %v4584_v29, %s4360_s21 }
 0x15a   : > { %586 = vrot.lane.b32.xlu1 %v4592_v33, %s4360_s21  ;;  %604 = vrot.lane.b32.xlu0 %v4595_v35, %s4360_s21 }
 0x15e   : > { %668 = vrot.lane.b32.xlu0 %v4558_v14, %s4361_s22  ;;  %614 = vrot.lane.b32.xlu1 %v4603_v39, %s4360_s21 }
 0x162   : > { %676 = vrot.lane.b32.xlu0 %v4569_v20, %s4361_s22  ;;  %622 = vrot.lane.b32.xlu1 %v4610_v41, %s4360_s21 }
 0x166   : > { %704 = vrot.lane.b32.xlu0 %v4584_v29, %s4361_s22  ;;  %686 = vrot.lane.b32.xlu1 %v4580_v27, %s4361_s22 }
 0x16a   : > { %712 = vrot.lane.b32.xlu0 %v4595_v35, %s4361_s22  ;;  %694 = vrot.lane.b32.xlu1 %v4592_v33, %s4361_s22 }
 0x16e   : > { %776 = vrot.lane.b32.xlu0 %v4558_v14, %s4362_s23  ;;  %722 = vrot.lane.b32.xlu1 %v4603_v39, %s4361_s22 }
 0x172   : > { %784 = vrot.lane.b32.xlu0 %v4569_v20, %s4362_s23  ;;  %730 = vrot.lane.b32.xlu1 %v4610_v41, %s4361_s22 }
 0x176   : > { %812 = vrot.lane.b32.xlu0 %v4584_v29, %s4362_s23  ;;  %794 = vrot.lane.b32.xlu1 %v4580_v27, %s4362_s23 }
 0x17a   : > { %820 = vrot.lane.b32.xlu0 %v4595_v35, %s4362_s23  ;;  %802 = vrot.lane.b32.xlu1 %v4592_v33, %s4362_s23 }
 0x17e   : > { %884 = vrot.lane.b32.xlu0 %v4558_v14, %s4363_s24  ;;  %830 = vrot.lane.b32.xlu1 %v4603_v39, %s4362_s23 }
 0x182   : > { %564 = vrot.lane.b32.xlu0 %v4647_v44, %s4360_s21  ;;  %838 = vrot.lane.b32.xlu1 %v4610_v41, %s4362_s23 }
 0x186   : > { %572 = vrot.lane.b32.xlu0 %v4654_v46, %s4360_s21  ;;  %562 = vrot.lane.b32.xlu1 %v4658_v47, %s4360_s21 }
 0x18a   : > { %580 = vrot.lane.b32.xlu0 %v4666_v49, %s4360_s21  ;;  %570 = vrot.lane.b32.xlu1 %v4670_v50, %s4360_s21 }
 0x18e   : > { %588 = vrot.lane.b32.xlu0 %v4683_v55, %s4360_s21  ;;  %582 = vrot.lane.b32.xlu1 %v4677_v51, %s4360_s21 }
 0x192   : > { %600 = vrot.lane.b32.xlu0 %v4693_v58, %s4360_s21  ;;  %590 = vrot.lane.b32.xlu1 %v4690_v57, %s4360_s21 }
 0x196   : > { %608 = vrot.lane.b32.xlu0 %v4700_v60, %s4360_s21  ;;  %598 = vrot.lane.b32.xlu1 %v4704_v61, %s4360_s21 }
 0x19a   : > { %606 = vrot.lane.b32.xlu1 %v4712_v0, %s4360_s21  ;;  %616 = vrot.lane.b32.xlu0 %v4716_v1, %s4360_s21 }
 0x19e   : > { %624 = vrot.lane.b32.xlu0 %v4727_v4, %s4360_s21  ;;  %618 = vrot.lane.b32.xlu1 %v4723_v2, %s4360_s21 }
 0x1a0   : > { %v4744_v6 = vpop.permute.xlu0 %576 }
 0x1a1   : > { %6534 = vst [vmem:[#allocation21_spill] sm:$0xff] %v4744_v6 }
 0x1a2   : > { %672 = vrot.lane.b32.xlu0 %v4647_v44, %s4361_s22  ;;  %626 = vrot.lane.b32.xlu1 %v4734_v5, %s4360_s21 }
 0x1a6   : > { %680 = vrot.lane.b32.xlu0 %v4654_v46, %s4361_s22  ;;  %670 = vrot.lane.b32.xlu1 %v4658_v47, %s4361_s22 }
 0x1a8   : > { %v4756_v8 = vpop.permute.xlu1 %594 }
 0x1a9   : > { %6536 = vst [vmem:[#allocation23_spill] sm:$0xff] %v4756_v8 }
 0x1aa   : > { %688 = vrot.lane.b32.xlu0 %v4666_v49, %s4361_s22  ;;  %678 = vrot.lane.b32.xlu1 %v4670_v50, %s4361_s22 }
 0x1ac   : > { %v4750_v7 = vpop.permute.xlu0 %612 }
 0x1ad   : > { %6535 = vst [vmem:[#allocation22_spill] sm:$0xff] %v4750_v7 }
 0x1ae   : > { %696 = vrot.lane.b32.xlu0 %v4683_v55, %s4361_s22  ;;  %690 = vrot.lane.b32.xlu1 %v4677_v51, %s4361_s22 }
 0x1b0   : > { %v4758_v9 = vpop.permute.xlu0 %684 }
 0x1b1   : > { %6537 = vst [vmem:[#allocation24_spill] sm:$0xff] %v4758_v9 }
 0x1b2   : > { %708 = vrot.lane.b32.xlu0 %v4693_v58, %s4361_s22  ;;  %698 = vrot.lane.b32.xlu1 %v4690_v57, %s4361_s22 }
 0x1b4   : > { %v4764_v10 = vpop.permute.xlu1 %630  ;;  %v4766_v11 = vpop.permute.xlu0 %720 }
 0x1b5   : > { %6538 = vst [vmem:[#allocation25_spill] sm:$0xff] %v4764_v10  ;;  %6539 = vst [vmem:[#allocation26_spill] sm:$0xff] %v4766_v11  ;;  %v4882_v10 = vcombine.high %v4647_v44, %v4647_v44  ;;  %v4914_v11 = vcombine.high %v4693_v58, %v4693_v58 }
 0x1b6   : > { %716 = vrot.lane.b32.xlu0 %v4700_v60, %s4361_s22  ;;  %706 = vrot.lane.b32.xlu1 %v4704_v61, %s4361_s22 }
 0x1b7   : > { %6568 = vst [vmem:[#allocation55_spill] sm:$0xff] %v4914_v11 }
 0x1b8   : > { %v4772_v12 = vpop.permute.xlu1 %702  ;;  %v4774_v13 = vpop.permute.xlu0 %792 }
 0x1b9   : > { %6540 = vst [vmem:[#allocation27_spill] sm:$0xff] %v4772_v12  ;;  %6541 = vst [vmem:[#allocation28_spill] sm:$0xff] %v4774_v13 }
 0x1ba   : > { %724 = vrot.lane.b32.xlu0 %v4716_v1, %s4361_s22  ;;  %714 = vrot.lane.b32.xlu1 %v4712_v0, %s4361_s22 }
 0x1bc   : > { %v4780_v15 = vpop.permute.xlu1 %738  ;;  %v4782_v16 = vpop.permute.xlu0 %828 }
 0x1bd   : > { %6542 = vst [vmem:[#allocation29_spill] sm:$0xff] %v4780_v15  ;;  %6543 = vst [vmem:[#allocation30_spill] sm:$0xff] %v4782_v16  ;;  %v4886_v15 = vcombine.high %v4723_v2, %v4723_v2 }
 0x1be   : > { %732 = vrot.lane.b32.xlu0 %v4727_v4, %s4361_s22  ;;  %726 = vrot.lane.b32.xlu1 %v4723_v2, %s4361_s22 }
 0x1bf   : > { %6563 = vst [vmem:[#allocation50_spill] sm:$0xff] %v4886_v15 }
 0x1c0   : > { %v4788_v17 = vpop.permute.xlu1 %810  ;;  %v4790_v18 = vpop.permute.xlu0 %560 }
 0x1c1   : > { %6544 = vst [vmem:[#allocation31_spill] sm:$0xff] %v4788_v17 }
 0x1c2   : > { %780 = vrot.lane.b32.xlu0 %v4647_v44, %s4362_s23  ;;  %734 = vrot.lane.b32.xlu1 %v4734_v5, %s4361_s22 }
 0x1c4   : > { %v4796_v19 = vpop.permute.xlu1 %846  ;;  %v4798_v21 = vpop.permute.xlu0 %568 }
 0x1c5   : > { %6545 = vst [vmem:[#allocation32_spill] sm:$0xff] %v4796_v19  ;;  %6546 = vst [vmem:[#allocation33_spill] sm:$0xff] %v4798_v21 }
 0x1c6   : > { %788 = vrot.lane.b32.xlu0 %v4654_v46, %s4362_s23  ;;  %778 = vrot.lane.b32.xlu1 %v4658_v47, %s4362_s23 }
 0x1c8   : > { %v4804_v22 = vpop.permute.xlu1 %578  ;;  %v4806_v23 = vpop.permute.xlu0 %596 }
 0x1c9   : > { %6547 = vst [vmem:[#allocation34_spill] sm:$0xff] %v4804_v22  ;;  %6548 = vst [vmem:[#allocation35_spill] sm:$0xff] %v4806_v23 }
 0x1ca   : > { %796 = vrot.lane.b32.xlu0 %v4666_v49, %s4362_s23  ;;  %786 = vrot.lane.b32.xlu1 %v4670_v50, %s4362_s23 }
 0x1cc   : > { %v4812_v24 = vpop.permute.xlu1 %586  ;;  %v4814_v25 = vpop.permute.xlu0 %604 }
 0x1cd   : > { %6549 = vst [vmem:[#allocation36_spill] sm:$0xff] %v4812_v24  ;;  %6550 = vst [vmem:[#allocation37_spill] sm:$0xff] %v4814_v25 }
 0x1ce   : > { %804 = vrot.lane.b32.xlu0 %v4683_v55, %s4362_s23  ;;  %798 = vrot.lane.b32.xlu1 %v4677_v51, %s4362_s23 }
 0x1d0   : > { %v4820_v26 = vpop.permute.xlu1 %614  ;;  %v4822_v28 = vpop.permute.xlu0 %668 }
 0x1d1   : > { %6551 = vst [vmem:[#allocation38_spill] sm:$0xff] %v4820_v26  ;;  %v4902_v26 = vcombine.high %v4734_v5, %v4734_v5 }
 0x1d2   : > { %816 = vrot.lane.b32.xlu0 %v4693_v58, %s4362_s23  ;;  %806 = vrot.lane.b32.xlu1 %v4690_v57, %s4362_s23 }
 0x1d3   : > { %6566 = vst [vmem:[#allocation53_spill] sm:$0xff] %v4902_v26 }
 0x1d4   : > { %v4828_v30 = vpop.permute.xlu1 %622  ;;  %v4830_v32 = vpop.permute.xlu0 %676 }
 0x1d5   : > { %6552 = vst [vmem:[#allocation39_spill] sm:$0xff] %v4828_v30  ;;  %6553 = vst [vmem:[#allocation40_spill] sm:$0xff] %v4830_v32 }
 0x1d6   : > { %824 = vrot.lane.b32.xlu0 %v4700_v60, %s4362_s23  ;;  %814 = vrot.lane.b32.xlu1 %v4704_v61, %s4362_s23 }
 0x1d8   : > { %v4836_v36 = vpop.permute.xlu1 %686  ;;  %v4838_v37 = vpop.permute.xlu0 %704 }
 0x1d9   : > { %6554 = vst [vmem:[#allocation41_spill] sm:$0xff] %v4836_v36  ;;  %6555 = vst [vmem:[#allocation42_spill] sm:$0xff] %v4838_v37 }
 0x1da   : > { %832 = vrot.lane.b32.xlu0 %v4716_v1, %s4362_s23  ;;  %822 = vrot.lane.b32.xlu1 %v4712_v0, %s4362_s23 }
 0x1dc   : > { %v4844_v40 = vpop.permute.xlu1 %694  ;;  %v4846_v42 = vpop.permute.xlu0 %712 }
 0x1dd   : > { %6556 = vst [vmem:[#allocation43_spill] sm:$0xff] %v4844_v40  ;;  %6557 = vst [vmem:[#allocation44_spill] sm:$0xff] %v4846_v42  ;;  %v4926_v42 = vcombine.high %v4700_v60, %v4700_v60 }
 0x1de   : > { %840 = vrot.lane.b32.xlu0 %v4727_v4, %s4362_s23  ;;  %834 = vrot.lane.b32.xlu1 %v4723_v2, %s4362_s23 }
 0x1df   : > { %6570 = vst [vmem:[#allocation57_spill] sm:$0xff] %v4926_v42 }
 0x1e0   : > { %v4852_v45 = vpop.permute.xlu1 %722  ;;  %v4854_v48 = vpop.permute.xlu0 %776 }
 0x1e1   : > { %6558 = vst [vmem:[#allocation45_spill] sm:$0xff] %v4852_v45 }
 0x1e2   : > { %584 = vrot.lane.b32.xlu0 %v4858_v53, %s4360_s21  ;;  %842 = vrot.lane.b32.xlu1 %v4734_v5, %s4362_s23 }
 0x1e4   : > { %v4864_v54 = vpop.permute.xlu1 %730  ;;  %v4866_v59 = vpop.permute.xlu0 %784 }
 0x1e5   : > { %6559 = vst [vmem:[#allocation46_spill] sm:$0xff] %v4864_v54  ;;  %6560 = vst [vmem:[#allocation47_spill] sm:$0xff] %v4866_v59  ;;  %v4898_v54 = vcombine.high %v4654_v46, %v4654_v46 }
 0x1e6   : > { %592 = vrot.lane.b32.xlu0 %v4870_v62, %s4360_s21  ;;  %886 = vrot.lane.b32.xlu1 %v4658_v47, %s4363_s24 }
 0x1e8   : > { %v4876_v3 = vpop.permute.xlu1 %794  ;;  %v4878_v31 = vpop.permute.xlu0 %812 }
 0x1e9   : > { %6561 = vst [vmem:[#allocation48_spill] sm:$0xff] %v4876_v3  ;;  %6562 = vst [vmem:[#allocation49_spill] sm:$0xff] %v4878_v31 }
 0x1ea   : > { %566 = vrot.lane.b32.xlu1 %v4882_v10, %s4360_s21  ;;  %620 = vrot.lane.b32.xlu0 %v4886_v15, %s4360_s21 }
 0x1ec   : > { %v4892_v19 = vpop.permute.xlu1 %802  ;;  %v4894_v30 = vpop.permute.xlu0 %820 }
 0x1ed   : > { %6564 = vst [vmem:[#allocation51_spill] sm:$0xff] %v4892_v19  ;;  %6565 = vst [vmem:[#allocation52_spill] sm:$0xff] %v4894_v30 }
 0x1ee   : > { %574 = vrot.lane.b32.xlu1 %v4898_v54, %s4360_s21  ;;  %628 = vrot.lane.b32.xlu0 %v4902_v26, %s4360_s21 }
 0x1f0   : > { %v4908_v45 = vpop.permute.xlu1 %830  ;;  %v4910_v7 = vpop.permute.xlu0 %884 }
 0x1f1   : > { %6567 = vst [vmem:[#allocation54_spill] sm:$0xff] %v4908_v45 }
 0x1f2   : > { %602 = vrot.lane.b32.xlu1 %v4914_v11, %s4360_s21  ;;  %692 = vrot.lane.b32.xlu0 %v4858_v53, %s4361_s22 }
 0x1f4   : > { %v4920_v16 = vpop.permute.xlu1 %838  ;;  %v4922_v25 = vpop.permute.xlu0 %564 }
 0x1f5   : > { %6569 = vst [vmem:[#allocation56_spill] sm:$0xff] %v4920_v16 }
 0x1f6   : > { %610 = vrot.lane.b32.xlu1 %v4926_v42, %s4360_s21  ;;  %700 = vrot.lane.b32.xlu0 %v4870_v62, %s4361_s22 }
 0x1f8   : > { %v4932_v45 = vpop.permute.xlu1 %562  ;;  %v4934_v30 = vpop.permute.xlu0 %572 }
 0x1f9   : > { %6571 = vst [vmem:[#allocation58_spill] sm:$0xff] %v4934_v30 }
 0x1fa   : > { %674 = vrot.lane.b32.xlu1 %v4882_v10, %s4361_s22  ;;  %728 = vrot.lane.b32.xlu0 %v4886_v15, %s4361_s22 }
 0x1fc   : > { %v4940_v16 = vpop.permute.xlu1 %570  ;;  %v4942_v23 = vpop.permute.xlu0 %580 }
 0x1fd   : > { %6572 = vst [vmem:[#allocation59_spill] sm:$0xff] %v4940_v16  ;;  %6573 = vst [vmem:[#allocation60_spill] sm:$0xff] %v4942_v23 }
 0x1fe   : > { %682 = vrot.lane.b32.xlu1 %v4898_v54, %s4361_s22  ;;  %736 = vrot.lane.b32.xlu0 %v4902_v26, %s4361_s22 }
 0x200   : > { %v4948_v37 = vpop.permute.xlu1 %582  ;;  %v4950_v31 = vpop.permute.xlu0 %588 }
 0x201   : > { %6574 = vst [vmem:[#allocation61_spill] sm:$0xff] %v4948_v37  ;;  %6575 = vst [vmem:[#allocation62_spill] sm:$0xff] %v4950_v31 }
 0x202   : > { %710 = vrot.lane.b32.xlu1 %v4914_v11, %s4361_s22  ;;  %800 = vrot.lane.b32.xlu0 %v4858_v53, %s4362_s23 }
 0x204   : > { %v4956_v8 = vpop.permute.xlu1 %590  ;;  %v4958_v12 = vpop.permute.xlu0 %600 }
 0x205   : > { %6576 = vst [vmem:[#allocation63_spill] sm:$0xff] %v4956_v8  ;;  %6577 = vst [vmem:[#allocation64_spill] sm:$0xff] %v4958_v12 }
 0x206   : > { %718 = vrot.lane.b32.xlu1 %v4926_v42, %s4361_s22  ;;  %808 = vrot.lane.b32.xlu0 %v4870_v62, %s4362_s23 }
 0x208   : > { %v4964_v17 = vpop.permute.xlu1 %598  ;;  %v4966_v24 = vpop.permute.xlu0 %608 }
 0x209   : > { %6578 = vst [vmem:[#allocation65_spill] sm:$0xff] %v4964_v17  ;;  %6579 = vst [vmem:[#allocation66_spill] sm:$0xff] %v4966_v24 }
 0x20a   : > { %782 = vrot.lane.b32.xlu1 %v4882_v10, %s4362_s23  ;;  %836 = vrot.lane.b32.xlu0 %v4886_v15, %s4362_s23 }
 0x20c   : > { %v4972_v31 = vpop.permute.xlu1 %606  ;;  %v4974_v8 = vpop.permute.xlu0 %616 }
 0x20d   : > { %6580 = vst [vmem:[#allocation67_spill] sm:$0xff] %v4972_v31  ;;  %6581 = vst [vmem:[#allocation68_spill] sm:$0xff] %v4974_v8 }
 0x20e   : > { %790 = vrot.lane.b32.xlu1 %v4898_v54, %s4362_s23  ;;  %844 = vrot.lane.b32.xlu0 %v4902_v26, %s4362_s23 }
 0x210   : > { %v4980_v12 = vpop.permute.xlu1 %618  ;;  %v4982_v17 = vpop.permute.xlu0 %624 }
 0x211   : > { %6582 = vst [vmem:[#allocation69_spill] sm:$0xff] %v4980_v12  ;;  %6583 = vst [vmem:[#allocation70_spill] sm:$0xff] %v4982_v17 }
 0x212   : > { %818 = vrot.lane.b32.xlu1 %v4914_v11, %s4362_s23  ;;  %888 = vrot.lane.b32.xlu0 %v4647_v44, %s4363_s24 }
 0x214   : > { %v4988_v24 = vpop.permute.xlu1 %626  ;;  %v4990_v31 = vpop.permute.xlu0 %672 }
 0x215   : > { %6584 = vst [vmem:[#allocation71_spill] sm:$0xff] %v4988_v24 }
 0x216   : > { %826 = vrot.lane.b32.xlu1 %v4926_v42, %s4362_s23  ;;  %892 = vrot.lane.b32.xlu0 %v4569_v20, %s4363_s24 }
 0x218   : > { %v4996_v8 = vpop.permute.xlu1 %670  ;;  %v4998_v12 = vpop.permute.xlu0 %680 }
 0x219   : > { %6585 = vst [vmem:[#allocation72_spill] sm:$0xff] %v4998_v12 }
 0x21a   : > { %890 = vrot.lane.b32.xlu1 %v4882_v10, %s4363_s24  ;;  %896 = vrot.lane.b32.xlu0 %v4654_v46, %s4363_s24 }
 0x21c   : > { %v5004_v17 = vpop.permute.xlu1 %678  ;;  %v5006_v24 = vpop.permute.xlu0 %688 }
 0x21d   : > { %6586 = vst [vmem:[#allocation73_spill] sm:$0xff] %v5004_v17  ;;  %6587 = vst [vmem:[#allocation74_spill] sm:$0xff] %v5006_v24 }
 0x21e   : > { %894 = vrot.lane.b32.xlu1 %v4670_v50, %s4363_s24  ;;  %900 = vrot.lane.b32.xlu0 %v4517_v43, %s4363_s24 }
 0x220   : > { %v5012_v40 = vpop.permute.xlu1 %690  ;;  %v5014_v19 = vpop.permute.xlu0 %696 }
 0x221   : > { %6588 = vst [vmem:[#allocation75_spill] sm:$0xff] %v5012_v40  ;;  %6589 = vst [vmem:[#allocation76_spill] sm:$0xff] %v5014_v19 }
 0x222   : > { %898 = vrot.lane.b32.xlu1 %v4898_v54, %s4363_s24  ;;  %904 = vrot.lane.b32.xlu0 %v4666_v49, %s4363_s24 }
 0x224   : > { %v5020_v37 = vpop.permute.xlu1 %698  ;;  %v5022_v23 = vpop.permute.xlu0 %708 }
 0x225   : > { %6590 = vst [vmem:[#allocation77_spill] sm:$0xff] %v5020_v37  ;;  %6591 = vst [vmem:[#allocation78_spill] sm:$0xff] %v5022_v23 }
 0x226   : > { %902 = vrot.lane.b32.xlu1 %v4580_v27, %s4363_s24  ;;  %908 = vrot.lane.b32.xlu0 %v4858_v53, %s4363_s24 }
 0x228   : > { %v5028_v24 = vpop.permute.xlu1 %706  ;;  %v5030_v40 = vpop.permute.xlu0 %716 }
 0x229   : > { %6592 = vst [vmem:[#allocation79_spill] sm:$0xff] %v5028_v24  ;;  %6593 = vst [vmem:[#allocation80_spill] sm:$0xff] %v5030_v40 }
 0x22a   : > { %906 = vrot.lane.b32.xlu1 %v4677_v51, %s4363_s24  ;;  %912 = vrot.lane.b32.xlu0 %v4683_v55, %s4363_s24 }
 0x22c   : > { %v5036_v19 = vpop.permute.xlu1 %714  ;;  %v5038_v37 = vpop.permute.xlu0 %724 }
 0x22d   : > { %6594 = vst [vmem:[#allocation81_spill] sm:$0xff] %v5036_v19  ;;  %6595 = vst [vmem:[#allocation82_spill] sm:$0xff] %v5038_v37 }
 0x22e   : > { %910 = vrot.lane.b32.xlu1 %v4592_v33, %s4363_s24  ;;  %916 = vrot.lane.b32.xlu0 %v4870_v62, %s4363_s24 }
 0x230   : > { %v5044_v23 = vpop.permute.xlu1 %726  ;;  %v5046_v24 = vpop.permute.xlu0 %732 }
 0x231   : > { %6596 = vst [vmem:[#allocation83_spill] sm:$0xff] %v5044_v23  ;;  %6597 = vst [vmem:[#allocation84_spill] sm:$0xff] %v5046_v24 }
 0x232   : > { %914 = vrot.lane.b32.xlu1 %v4690_v57, %s4363_s24  ;;  %920 = vrot.lane.b32.xlu0 %v4584_v29, %s4363_s24 }
 0x234   : > { %v5052_v40 = vpop.permute.xlu1 %734  ;;  %v5054_v19 = vpop.permute.xlu0 %780 }
 0x235   : > { %6598 = vst [vmem:[#allocation85_spill] sm:$0xff] %v5052_v40 }
 0x236   : > { %918 = vrot.lane.b32.xlu1 %v4522_v52, %s4363_s24  ;;  %924 = vrot.lane.b32.xlu0 %v4693_v58, %s4363_s24 }
 0x238   : > { %v5060_v37 = vpop.permute.xlu1 %778  ;;  %v5062_v23 = vpop.permute.xlu0 %788 }
 0x239   : > { %6599 = vst [vmem:[#allocation86_spill] sm:$0xff] %v5062_v23 }
 0x23a   : > { %922 = vrot.lane.b32.xlu1 %v4704_v61, %s4363_s24  ;;  %928 = vrot.lane.b32.xlu0 %v4595_v35, %s4363_s24 }
 0x23c   : > { %v5068_v24 = vpop.permute.xlu1 %786  ;;  %v5070_v40 = vpop.permute.xlu0 %796 }
 0x23d   : > { %6600 = vst [vmem:[#allocation87_spill] sm:$0xff] %v5068_v24  ;;  %6601 = vst [vmem:[#allocation88_spill] sm:$0xff] %v5070_v40 }
 0x23e   : > { %926 = vrot.lane.b32.xlu1 %v4914_v11, %s4363_s24  ;;  %932 = vrot.lane.b32.xlu0 %v4700_v60, %s4363_s24 }
 0x240   : > { %v5076_v22 = vpop.permute.xlu1 %798  ;;  %v5078_v36 = vpop.permute.xlu0 %804 }
 0x241   : > { %6602 = vst [vmem:[#allocation89_spill] sm:$0xff] %v5076_v22  ;;  %6603 = vst [vmem:[#allocation90_spill] sm:$0xff] %v5078_v36 }
 0x242   : > { %930 = vrot.lane.b32.xlu1 %v4712_v0, %s4363_s24  ;;  %936 = vrot.lane.b32.xlu0 %v4527_v56, %s4363_s24 }
 0x244   : > { %v5084_v3 = vpop.permute.xlu1 %806  ;;  %v5086_v6 = vpop.permute.xlu0 %816 }
 0x245   : > { %6604 = vst [vmem:[#allocation91_spill] sm:$0xff] %v5084_v3  ;;  %6605 = vst [vmem:[#allocation92_spill] sm:$0xff] %v5086_v6 }
 0x246   : > { %934 = vrot.lane.b32.xlu1 %v4926_v42, %s4363_s24  ;;  %940 = vrot.lane.b32.xlu0 %v4716_v1, %s4363_s24 }
 0x248   : > { %v5092_v40 = vpop.permute.xlu1 %814  ;;  %v5094_v22 = vpop.permute.xlu0 %824 }
 0x249   : > { %6606 = vst [vmem:[#allocation93_spill] sm:$0xff] %v5092_v40  ;;  %6607 = vst [vmem:[#allocation94_spill] sm:$0xff] %v5094_v22 }
 0x24a   : > { %938 = vrot.lane.b32.xlu1 %v4603_v39, %s4363_s24  ;;  %944 = vrot.lane.b32.xlu0 %v4886_v15, %s4363_s24 }
 0x24c   : > { %v5100_v36 = vpop.permute.xlu1 %822  ;;  %v5102_v3 = vpop.permute.xlu0 %832 }
 0x24d   : > { %6608 = vst [vmem:[#allocation95_spill] sm:$0xff] %v5100_v36  ;;  %6609 = vst [vmem:[#allocation96_spill] sm:$0xff] %v5102_v3 }
 0x24e   : > { %942 = vrot.lane.b32.xlu1 %v4723_v2, %s4363_s24  ;;  %948 = vrot.lane.b32.xlu0 %v4727_v4, %s4363_s24 }
 0x250   : > { %v5108_v6 = vpop.permute.xlu1 %834  ;;  %v5110_v40 = vpop.permute.xlu0 %840 }
 0x251   : > { %6610 = vst [vmem:[#allocation97_spill] sm:$0xff] %v5108_v6  ;;  %6611 = vst [vmem:[#allocation98_spill] sm:$0xff] %v5110_v40 }
 0x252   : > { %946 = vrot.lane.b32.xlu1 %v4610_v41, %s4363_s24  ;;  %952 = vrot.lane.b32.xlu0 %v4902_v26, %s4363_s24 }
 0x254   : > { %v5116_v22 = vpop.permute.xlu1 %842  ;;  %v5118_v36 = vpop.permute.xlu0 %584 }
 0x255   : > { %6612 = vst [vmem:[#allocation99_spill] sm:$0xff] %v5116_v22  ;;  %6613 = vst [vmem:[#allocation100_spill] sm:$0xff] %v5118_v36 }
 0x256   : > { %950 = vrot.lane.b32.xlu1 %v4734_v5, %s4363_s24  ;;  %992 = vrot.lane.b32.xlu0 %v4558_v14, %s4364_s25 }
 0x258   : > { %v5124_v6 = vpop.permute.xlu1 %886  ;;  %v5126_v40 = vpop.permute.xlu0 %592 }
 0x259   : > { %6614 = vst [vmem:[#allocation101_spill] sm:$0xff] %v5126_v40 }
 0x25a   : > { %954 = vrot.lane.b32.xlu1 %v4535_v63, %s4363_s24  ;;  %996 = vrot.lane.b32.xlu0 %v4647_v44, %s4364_s25 }
 0x25c   : > { %v5132_v22 = vpop.permute.xlu1 %566  ;;  %v5134_v3 = vpop.permute.xlu0 %620 }
 0x25d   : > { %6615 = vst [vmem:[#allocation102_spill] sm:$0xff] %v5132_v22  ;;  %6616 = vst [vmem:[#allocation103_spill] sm:$0xff] %v5134_v3 }
 0x25e   : > { %994 = vrot.lane.b32.xlu1 %v4658_v47, %s4364_s25  ;;  %1000 = vrot.lane.b32.xlu0 %v4569_v20, %s4364_s25 }
 0x260   : > { %v5140_v36 = vpop.permute.xlu1 %574  ;;  %v5142_v9 = vpop.permute.xlu0 %628 }
 0x261   : > { %6617 = vst [vmem:[#allocation104_spill] sm:$0xff] %v5140_v36  ;;  %6618 = vst [vmem:[#allocation105_spill] sm:$0xff] %v5142_v9 }
 0x262   : > { %998 = vrot.lane.b32.xlu1 %v4882_v10, %s4364_s25  ;;  %1004 = vrot.lane.b32.xlu0 %v4654_v46, %s4364_s25 }
 0x264   : > { %v5148_v40 = vpop.permute.xlu1 %602  ;;  %v5150_v13 = vpop.permute.xlu0 %692 }
 0x265   : > { %6619 = vst [vmem:[#allocation106_spill] sm:$0xff] %v5148_v40  ;;  %6620 = vst [vmem:[#allocation107_spill] sm:$0xff] %v5150_v13 }
 0x266   : > { %1002 = vrot.lane.b32.xlu1 %v4670_v50, %s4364_s25  ;;  %1008 = vrot.lane.b32.xlu0 %v4517_v43, %s4364_s25 }
 0x268   : > { %v5156_v3 = vpop.permute.xlu1 %610  ;;  %v5158_v36 = vpop.permute.xlu0 %700 }
 0x269   : > { %6621 = vst [vmem:[#allocation108_spill] sm:$0xff] %v5156_v3  ;;  %6622 = vst [vmem:[#allocation109_spill] sm:$0xff] %v5158_v36 }
 0x26a   : > { %1006 = vrot.lane.b32.xlu1 %v4898_v54, %s4364_s25  ;;  %1012 = vrot.lane.b32.xlu0 %v4666_v49, %s4364_s25 }
 0x26c   : > { %v5164_v9 = vpop.permute.xlu1 %674  ;;  %v5166_v40 = vpop.permute.xlu0 %728 }
 0x26d   : > { %6623 = vst [vmem:[#allocation110_spill] sm:$0xff] %v5166_v40 }
 0x26e   : > { %1010 = vrot.lane.b32.xlu1 %v4580_v27, %s4364_s25  ;;  %1016 = vrot.lane.b32.xlu0 %v4858_v53, %s4364_s25 }
 0x270   : > { %v5172_v13 = vpop.permute.xlu1 %682  ;;  %v5174_v3 = vpop.permute.xlu0 %736 }
 0x271   : > { %6624 = vst [vmem:[#allocation111_spill] sm:$0xff] %v5172_v13  ;;  %6625 = vst [vmem:[#allocation112_spill] sm:$0xff] %v5174_v3 }
 0x272   : > { %1014 = vrot.lane.b32.xlu1 %v4677_v51, %s4364_s25  ;;  %1020 = vrot.lane.b32.xlu0 %v4683_v55, %s4364_s25 }
 0x274   : > { %v5180_v36 = vpop.permute.xlu1 %710  ;;  %v5182_v30 = vpop.permute.xlu0 %800 }
 0x275   : > { %6626 = vst [vmem:[#allocation113_spill] sm:$0xff] %v5180_v36  ;;  %6627 = vst [vmem:[#allocation114_spill] sm:$0xff] %v5182_v30 }
 0x276   : > { %1018 = vrot.lane.b32.xlu1 %v4592_v33, %s4364_s25  ;;  %1024 = vrot.lane.b32.xlu0 %v4870_v62, %s4364_s25 }
 0x278   : > { %v5188_v40 = vpop.permute.xlu1 %718  ;;  %v5190_v13 = vpop.permute.xlu0 %808 }
 0x279   : > { %6628 = vst [vmem:[#allocation115_spill] sm:$0xff] %v5188_v40  ;;  %6629 = vst [vmem:[#allocation116_spill] sm:$0xff] %v5190_v13 }
 0x27a   : > { %1022 = vrot.lane.b32.xlu1 %v4690_v57, %s4364_s25  ;;  %1028 = vrot.lane.b32.xlu0 %v4584_v29, %s4364_s25 }
 0x27c   : > { %v5196_v3 = vpop.permute.xlu1 %782  ;;  %v5198_v36 = vpop.permute.xlu0 %836 }
 0x27d   : > { %6630 = vst [vmem:[#allocation117_spill] sm:$0xff] %v5198_v36 }
 0x27e   : > { %1026 = vrot.lane.b32.xlu1 %v4522_v52, %s4364_s25  ;;  %1032 = vrot.lane.b32.xlu0 %v4693_v58, %s4364_s25 }
 0x280   : > { %v5204_v30 = vpop.permute.xlu1 %790  ;;  %v5206_v40 = vpop.permute.xlu0 %844 }
 0x281   : > { %6631 = vst [vmem:[#allocation118_spill] sm:$0xff] %v5204_v30  ;;  %6632 = vst [vmem:[#allocation119_spill] sm:$0xff] %v5206_v40 }
 0x282   : > { %1030 = vrot.lane.b32.xlu1 %v4704_v61, %s4364_s25  ;;  %1036 = vrot.lane.b32.xlu0 %v4595_v35, %s4364_s25 }
 0x284   : > { %v5212_v13 = vpop.permute.xlu1 %818  ;;  %v5214_v12 = vpop.permute.xlu0 %888 }
 0x285   : > { %6633 = vst [vmem:[#allocation120_spill] sm:$0xff] %v5212_v13 }
 0x286   : > { %1034 = vrot.lane.b32.xlu1 %v4914_v11, %s4364_s25  ;;  %1040 = vrot.lane.b32.xlu0 %v4700_v60, %s4364_s25 }
 0x288   : > { %v5220_v36 = vpop.permute.xlu1 %826  ;;  %v5222_v30 = vpop.permute.xlu0 %892 }
 0x289   : > { %6634 = vst [vmem:[#allocation121_spill] sm:$0xff] %v5220_v36  ;;  %6635 = vst [vmem:[#allocation122_spill] sm:$0xff] %v5222_v30 }
 0x28a   : > { %1038 = vrot.lane.b32.xlu1 %v4712_v0, %s4364_s25  ;;  %1044 = vrot.lane.b32.xlu0 %v4527_v56, %s4364_s25 }
 0x28c   : > { %v5228_v40 = vpop.permute.xlu1 %890  ;;  %v5230_v13 = vpop.permute.xlu0 %896 }
 0x28d   : > { %6636 = vst [vmem:[#allocation123_spill] sm:$0xff] %v5228_v40  ;;  %6637 = vst [vmem:[#allocation124_spill] sm:$0xff] %v5230_v13 }
 0x28e   : > { %1042 = vrot.lane.b32.xlu1 %v4926_v42, %s4364_s25  ;;  %1048 = vrot.lane.b32.xlu0 %v4716_v1, %s4364_s25 }
 0x290   : > { %v5236_v23 = vpop.permute.xlu1 %894  ;;  %v5238_v36 = vpop.permute.xlu0 %900 }
 0x291   : > { %6638 = vst [vmem:[#allocation125_spill] sm:$0xff] %v5236_v23  ;;  %6639 = vst [vmem:[#allocation126_spill] sm:$0xff] %v5238_v36 }
 0x292   : > { %1046 = vrot.lane.b32.xlu1 %v4603_v39, %s4364_s25  ;;  %1052 = vrot.lane.b32.xlu0 %v4886_v15, %s4364_s25 }
 0x294   : > { %v5244_v16 = vpop.permute.xlu1 %898  ;;  %v5246_v17 = vpop.permute.xlu0 %904 }
 0x295   : > { %6640 = vst [vmem:[#allocation127_spill] sm:$0xff] %v5244_v16  ;;  %6641 = vst [vmem:[#allocation128_spill] sm:$0xff] %v5246_v17 }
 0x296   : > { %1050 = vrot.lane.b32.xlu1 %v4723_v2, %s4364_s25  ;;  %1056 = vrot.lane.b32.xlu0 %v4727_v4, %s4364_s25 }
 0x298   : > { %v5252_v13 = vpop.permute.xlu1 %902  ;;  %v5254_v23 = vpop.permute.xlu0 %908 }
 0x299   : > { %6642 = vst [vmem:[#allocation129_spill] sm:$0xff] %v5252_v13  ;;  %6643 = vst [vmem:[#allocation130_spill] sm:$0xff] %v5254_v23 }
 0x29a   : > { %1054 = vrot.lane.b32.xlu1 %v4610_v41, %s4364_s25  ;;  %1060 = vrot.lane.b32.xlu0 %v4902_v26, %s4364_s25 }
 0x29c   : > { %v5260_v36 = vpop.permute.xlu1 %906  ;;  %v5262_v16 = vpop.permute.xlu0 %912 }
 0x29d   : > { %6644 = vst [vmem:[#allocation131_spill] sm:$0xff] %v5260_v36  ;;  %6645 = vst [vmem:[#allocation132_spill] sm:$0xff] %v5262_v16 }
 0x29e   : > { %1058 = vrot.lane.b32.xlu1 %v4734_v5, %s4364_s25  ;;  %1100 = vrot.lane.b32.xlu0 %v4558_v14, %s4365_s26 }
 0x2a0   : > { %v5268_v17 = vpop.permute.xlu1 %910  ;;  %v5270_v23 = vpop.permute.xlu0 %916 }
 0x2a1   : > { %6646 = vst [vmem:[#allocation133_spill] sm:$0xff] %v5268_v17  ;;  %6647 = vst [vmem:[#allocation134_spill] sm:$0xff] %v5270_v23 }
 0x2a2   : > { %1062 = vrot.lane.b32.xlu1 %v4535_v63, %s4364_s25  ;;  %1104 = vrot.lane.b32.xlu0 %v4647_v44, %s4365_s26 }
 0x2a4   : > { %v5276_v36 = vpop.permute.xlu1 %914  ;;  %v5278_v16 = vpop.permute.xlu0 %920 }
 0x2a5   : > { %6648 = vst [vmem:[#allocation135_spill] sm:$0xff] %v5276_v36  ;;  %6649 = vst [vmem:[#allocation136_spill] sm:$0xff] %v5278_v16 }
 0x2a6   : > { %1102 = vrot.lane.b32.xlu1 %v4658_v47, %s4365_s26  ;;  %1108 = vrot.lane.b32.xlu0 %v4569_v20, %s4365_s26 }
 0x2a8   : > { %v5284_v13 = vpop.permute.xlu1 %918  ;;  %v5286_v17 = vpop.permute.xlu0 %924 }
 0x2a9   : > { %6650 = vst [vmem:[#allocation137_spill] sm:$0xff] %v5284_v13  ;;  %6651 = vst [vmem:[#allocation138_spill] sm:$0xff] %v5286_v17 }
 0x2aa   : > { %1106 = vrot.lane.b32.xlu1 %v4882_v10, %s4365_s26  ;;  %1112 = vrot.lane.b32.xlu0 %v4654_v46, %s4365_s26 }
 0x2ac   : > { %v5292_v23 = vpop.permute.xlu1 %922  ;;  %v5294_v36 = vpop.permute.xlu0 %928 }
 0x2ad   : > { %6652 = vst [vmem:[#allocation139_spill] sm:$0xff] %v5292_v23  ;;  %6653 = vst [vmem:[#allocation140_spill] sm:$0xff] %v5294_v36 }
 0x2ae   : > { %1110 = vrot.lane.b32.xlu1 %v4670_v50, %s4365_s26  ;;  %1116 = vrot.lane.b32.xlu0 %v4517_v43, %s4365_s26 }
 0x2b0   : > { %v5300_v16 = vpop.permute.xlu1 %926  ;;  %v5302_v13 = vpop.permute.xlu0 %932 }
 0x2b1   : > { %6654 = vst [vmem:[#allocation141_spill] sm:$0xff] %v5300_v16  ;;  %6655 = vst [vmem:[#allocation142_spill] sm:$0xff] %v5302_v13 }
 0x2b2   : > { %1114 = vrot.lane.b32.xlu1 %v4898_v54, %s4365_s26  ;;  %1120 = vrot.lane.b32.xlu0 %v4666_v49, %s4365_s26 }
 0x2b4   : > { %v5308_v17 = vpop.permute.xlu1 %930  ;;  %v5310_v23 = vpop.permute.xlu0 %936 }
 0x2b5   : > { %6656 = vst [vmem:[#allocation143_spill] sm:$0xff] %v5308_v17  ;;  %6657 = vst [vmem:[#allocation144_spill] sm:$0xff] %v5310_v23 }
 0x2b6   : > { %1118 = vrot.lane.b32.xlu1 %v4580_v27, %s4365_s26  ;;  %1124 = vrot.lane.b32.xlu0 %v4858_v53, %s4365_s26 }
 0x2b8   : > { %v5316_v36 = vpop.permute.xlu1 %934  ;;  %v5318_v16 = vpop.permute.xlu0 %940 }
 0x2b9   : > { %6658 = vst [vmem:[#allocation145_spill] sm:$0xff] %v5316_v36  ;;  %6659 = vst [vmem:[#allocation146_spill] sm:$0xff] %v5318_v16 }
 0x2ba   : > { %1122 = vrot.lane.b32.xlu1 %v4677_v51, %s4365_s26  ;;  %1128 = vrot.lane.b32.xlu0 %v4683_v55, %s4365_s26 }
 0x2bc   : > { %v5324_v13 = vpop.permute.xlu1 %938  ;;  %v5326_v17 = vpop.permute.xlu0 %944 }
 0x2bd   : > { %6660 = vst [vmem:[#allocation147_spill] sm:$0xff] %v5324_v13  ;;  %6661 = vst [vmem:[#allocation148_spill] sm:$0xff] %v5326_v17 }
 0x2be   : > { %1126 = vrot.lane.b32.xlu1 %v4592_v33, %s4365_s26  ;;  %1132 = vrot.lane.b32.xlu0 %v4870_v62, %s4365_s26 }
 0x2c0   : > { %v5332_v23 = vpop.permute.xlu1 %942  ;;  %v5334_v36 = vpop.permute.xlu0 %948 }
 0x2c1   : > { %6662 = vst [vmem:[#allocation149_spill] sm:$0xff] %v5332_v23  ;;  %6663 = vst [vmem:[#allocation150_spill] sm:$0xff] %v5334_v36 }
 0x2c2   : > { %1130 = vrot.lane.b32.xlu1 %v4690_v57, %s4365_s26  ;;  %1136 = vrot.lane.b32.xlu0 %v4584_v29, %s4365_s26 }
 0x2c4   : > { %v5340_v16 = vpop.permute.xlu1 %946  ;;  %v5342_v13 = vpop.permute.xlu0 %952 }
 0x2c5   : > { %6664 = vst [vmem:[#allocation151_spill] sm:$0xff] %v5340_v16  ;;  %6665 = vst [vmem:[#allocation152_spill] sm:$0xff] %v5342_v13 }
 0x2c6   : > { %1134 = vrot.lane.b32.xlu1 %v4522_v52, %s4365_s26  ;;  %1140 = vrot.lane.b32.xlu0 %v4693_v58, %s4365_s26 }
 0x2c8   : > { %v5348_v17 = vpop.permute.xlu1 %950  ;;  %v5350_v23 = vpop.permute.xlu0 %992 }
 0x2c9   : > { %6666 = vst [vmem:[#allocation153_spill] sm:$0xff] %v5348_v17 }
 0x2ca   : > { %1138 = vrot.lane.b32.xlu1 %v4704_v61, %s4365_s26  ;;  %1144 = vrot.lane.b32.xlu0 %v4595_v35, %s4365_s26 }
 0x2cc   : > { %v5356_v36 = vpop.permute.xlu1 %954  ;;  %v5358_v16 = vpop.permute.xlu0 %996 }
 0x2cd   : > { %6667 = vst [vmem:[#allocation154_spill] sm:$0xff] %v5356_v36 }
 0x2ce   : > { %1142 = vrot.lane.b32.xlu1 %v4914_v11, %s4365_s26  ;;  %1148 = vrot.lane.b32.xlu0 %v4700_v60, %s4365_s26 }
 0x2d0   : > { %v5364_v13 = vpop.permute.xlu1 %994  ;;  %v5366_v17 = vpop.permute.xlu0 %1000 }
 0x2d1   : > { %6668 = vst [vmem:[#allocation155_spill] sm:$0xff] %v5366_v17 }
 0x2d2   : > { %1146 = vrot.lane.b32.xlu1 %v4712_v0, %s4365_s26  ;;  %1152 = vrot.lane.b32.xlu0 %v4527_v56, %s4365_s26 }
 0x2d4   : > { %v5372_v24 = vpop.permute.xlu1 %998  ;;  %v5374_v36 = vpop.permute.xlu0 %1004 }
 0x2d5   : > { %6669 = vst [vmem:[#allocation156_spill] sm:$0xff] %v5372_v24  ;;  %6670 = vst [vmem:[#allocation157_spill] sm:$0xff] %v5374_v36 }
 0x2d6   : > { %1150 = vrot.lane.b32.xlu1 %v4926_v42, %s4365_s26  ;;  %1156 = vrot.lane.b32.xlu0 %v4716_v1, %s4365_s26 }
 0x2d8   : > { %v5380_v21 = vpop.permute.xlu1 %1002  ;;  %v5382_v30 = vpop.permute.xlu0 %1008 }
 0x2d9   : > { %6671 = vst [vmem:[#allocation158_spill] sm:$0xff] %v5380_v21  ;;  %6672 = vst [vmem:[#allocation159_spill] sm:$0xff] %v5382_v30 }
 0x2da   : > { %1154 = vrot.lane.b32.xlu1 %v4603_v39, %s4365_s26  ;;  %1160 = vrot.lane.b32.xlu0 %v4886_v15, %s4365_s26 }
 0x2dc   : > { %v5388_v17 = vpop.permute.xlu1 %1006  ;;  %v5390_v32 = vpop.permute.xlu0 %1012 }
 0x2dd   : > { %6673 = vst [vmem:[#allocation160_spill] sm:$0xff] %v5388_v17  ;;  %6674 = vst [vmem:[#allocation161_spill] sm:$0xff] %v5390_v32 }
 0x2de   : > { %1158 = vrot.lane.b32.xlu1 %v4723_v2, %s4365_s26  ;;  %1164 = vrot.lane.b32.xlu0 %v4727_v4, %s4365_s26 }
 0x2e0   : > { %v5396_v36 = vpop.permute.xlu1 %1010  ;;  %v5398_v21 = vpop.permute.xlu0 %1016 }
 0x2e1   : > { %6675 = vst [vmem:[#allocation162_spill] sm:$0xff] %v5396_v36  ;;  %6676 = vst [vmem:[#allocation163_spill] sm:$0xff] %v5398_v21 }
 0x2e2   : > { %1162 = vrot.lane.b32.xlu1 %v4610_v41, %s4365_s26  ;;  %1168 = vrot.lane.b32.xlu0 %v4902_v26, %s4365_s26 }
 0x2e4   : > { %v5404_v30 = vpop.permute.xlu1 %1014  ;;  %v5406_v17 = vpop.permute.xlu0 %1020 }
 0x2e5   : > { %6677 = vst [vmem:[#allocation164_spill] sm:$0xff] %v5404_v30  ;;  %6678 = vst [vmem:[#allocation165_spill] sm:$0xff] %v5406_v17 }
 0x2e6   : > { %1166 = vrot.lane.b32.xlu1 %v4734_v5, %s4365_s26  ;;  %1208 = vrot.lane.b32.xlu0 %v4558_v14, %s4366_s27 }
 0x2e8   : > { %v5412_v32 = vpop.permute.xlu1 %1018  ;;  %v5414_v21 = vpop.permute.xlu0 %1024 }
 0x2e9   : > { %6679 = vst [vmem:[#allocation166_spill] sm:$0xff] %v5412_v32  ;;  %6680 = vst [vmem:[#allocation167_spill] sm:$0xff] %v5414_v21 }
 0x2ea   : > { %1170 = vrot.lane.b32.xlu1 %v4535_v63, %s4365_s26  ;;  %1212 = vrot.lane.b32.xlu0 %v4647_v44, %s4366_s27 }
 0x2ec   : > { %v5420_v30 = vpop.permute.xlu1 %1022  ;;  %v5422_v17 = vpop.permute.xlu0 %1028 }
 0x2ed   : > { %6681 = vst [vmem:[#allocation168_spill] sm:$0xff] %v5420_v30  ;;  %6682 = vst [vmem:[#allocation169_spill] sm:$0xff] %v5422_v17 }
 0x2ee   : > { %1210 = vrot.lane.b32.xlu1 %v4658_v47, %s4366_s27  ;;  %1216 = vrot.lane.b32.xlu0 %v4569_v20, %s4366_s27 }
 0x2f0   : > { %v5428_v36 = vpop.permute.xlu1 %1026  ;;  %v5430_v32 = vpop.permute.xlu0 %1032 }
 0x2f1   : > { %6683 = vst [vmem:[#allocation170_spill] sm:$0xff] %v5428_v36  ;;  %6684 = vst [vmem:[#allocation171_spill] sm:$0xff] %v5430_v32  ;;  %v4367_v32 = vmov 0  }
 0x2f2   : > { %1214 = vrot.lane.b32.xlu1 %v4882_v10, %s4366_s27  ;;  %1220 = vrot.lane.b32.xlu0 %v4654_v46, %s4366_s27 }
 0x2f3   : > { %4287 = vset.pattern.permute.xlu0 %v4367_v32  ;;  %4288 = vset.pattern.permute.xlu1 %v4367_v32 }
 0x2f4   : > { %v5436_v21 = vpop.permute.xlu1 %1030  ;;  %v5438_v30 = vpop.permute.xlu0 %1036 }
 0x2f5   : > { %6685 = vst [vmem:[#allocation172_spill] sm:$0xff] %v5436_v21  ;;  %6686 = vst [vmem:[#allocation173_spill] sm:$0xff] %v5438_v30 }
 0x2f6   : > { %1218 = vrot.lane.b32.xlu1 %v4670_v50, %s4366_s27  ;;  %1224 = vrot.lane.b32.xlu0 %v4517_v43, %s4366_s27 }
 0x2f8   : > { %v5444_v17 = vpop.permute.xlu1 %1034  ;;  %v5446_v36 = vpop.permute.xlu0 %1040 }
 0x2f9   : > { %6687 = vst [vmem:[#allocation174_spill] sm:$0xff] %v5444_v17  ;;  %6688 = vst [vmem:[#allocation175_spill] sm:$0xff] %v5446_v36 }
 0x2fa   : > { %1222 = vrot.lane.b32.xlu1 %v4898_v54, %s4366_s27  ;;  %1228 = vrot.lane.b32.xlu0 %v4666_v49, %s4366_s27 }
 0x2fc   : > { %v5452_v30 = vpop.permute.xlu1 %1038  ;;  %v5454_v21 = vpop.permute.xlu0 %1044 }
 0x2fd   : > { %6689 = vst [vmem:[#allocation176_spill] sm:$0xff] %v5452_v30  ;;  %6690 = vst [vmem:[#allocation177_spill] sm:$0xff] %v5454_v21 }
 0x2fe   : > { %1226 = vrot.lane.b32.xlu1 %v4580_v27, %s4366_s27  ;;  %1232 = vrot.lane.b32.xlu0 %v4858_v53, %s4366_s27 }
 0x300   : > { %v5460_v36 = vpop.permute.xlu1 %1042  ;;  %v5462_v17 = vpop.permute.xlu0 %1048 }
 0x301   : > { %6691 = vst [vmem:[#allocation178_spill] sm:$0xff] %v5460_v36  ;;  %6692 = vst [vmem:[#allocation179_spill] sm:$0xff] %v5462_v17 }
 0x302   : > { %1230 = vrot.lane.b32.xlu1 %v4677_v51, %s4366_s27  ;;  %1236 = vrot.lane.b32.xlu0 %v4683_v55, %s4366_s27 }
 0x304   : > { %v5468_v32 = vpop.permute.xlu1 %1046  ;;  %v5470_v30 = vpop.permute.xlu0 %1052 }
 0x305   : > { %6693 = vst [vmem:[#allocation180_spill] sm:$0xff] %v5468_v32  ;;  %6694 = vst [vmem:[#allocation181_spill] sm:$0xff] %v5470_v30 }
 0x306   : > { %1234 = vrot.lane.b32.xlu1 %v4592_v33, %s4366_s27  ;;  %1240 = vrot.lane.b32.xlu0 %v4870_v62, %s4366_s27 }
 0x308   : > { %v5476_v21 = vpop.permute.xlu1 %1050  ;;  %v5478_v36 = vpop.permute.xlu0 %1056 }
 0x309   : > { %6695 = vst [vmem:[#allocation182_spill] sm:$0xff] %v5476_v21  ;;  %6696 = vst [vmem:[#allocation183_spill] sm:$0xff] %v5478_v36 }
 0x30a   : > { %1238 = vrot.lane.b32.xlu1 %v4690_v57, %s4366_s27  ;;  %1244 = vrot.lane.b32.xlu0 %v4584_v29, %s4366_s27 }
 0x30c   : > { %v5484_v17 = vpop.permute.xlu1 %1054  ;;  %v5486_v32 = vpop.permute.xlu0 %1060 }
 0x30d   : > { %6697 = vst [vmem:[#allocation184_spill] sm:$0xff] %v5484_v17  ;;  %6698 = vst [vmem:[#allocation185_spill] sm:$0xff] %v5486_v32 }
 0x30e   : > { %1242 = vrot.lane.b32.xlu1 %v4522_v52, %s4366_s27  ;;  %1248 = vrot.lane.b32.xlu0 %v4693_v58, %s4366_s27 }
 0x310   : > { %v5492_v30 = vpop.permute.xlu1 %1058  ;;  %v5494_v21 = vpop.permute.xlu0 %1100 }
 0x311   : > { %6699 = vst [vmem:[#allocation186_spill] sm:$0xff] %v5492_v30 }
 0x312   : > { %1246 = vrot.lane.b32.xlu1 %v4704_v61, %s4366_s27  ;;  %1252 = vrot.lane.b32.xlu0 %v4595_v35, %s4366_s27 }
 0x314   : > { %v5500_v36 = vpop.permute.xlu1 %1062  ;;  %v5502_v17 = vpop.permute.xlu0 %1104 }
 0x315   : > { %6700 = vst [vmem:[#allocation187_spill] sm:$0xff] %v5500_v36 }
 0x316   : > { %1250 = vrot.lane.b32.xlu1 %v4914_v11, %s4366_s27  ;;  %1256 = vrot.lane.b32.xlu0 %v4700_v60, %s4366_s27 }
 0x318   : > { %v5508_v32 = vpop.permute.xlu1 %1102  ;;  %v5510_v30 = vpop.permute.xlu0 %1108 }
 0x319   : > { %6701 = vst [vmem:[#allocation188_spill] sm:$0xff] %v5510_v30 }
 0x31a   : > { %1254 = vrot.lane.b32.xlu1 %v4712_v0, %s4366_s27  ;;  %1260 = vrot.lane.b32.xlu0 %v4527_v56, %s4366_s27 }
 0x31c   : > { %v5516_v59 = vpop.permute.xlu1 %1106  ;;  %v5518_v36 = vpop.permute.xlu0 %1112 }
 0x31d   : > { %6702 = vst [vmem:[#allocation189_spill] sm:$0xff] %v5518_v36 }
 0x31e   : > { %1258 = vrot.lane.b32.xlu1 %v4926_v42, %s4366_s27  ;;  %1264 = vrot.lane.b32.xlu0 %v4716_v1, %s4366_s27 }
 0x320   : > { %v5524_v22 = vpop.permute.xlu1 %1110  ;;  %v5526_v40 = vpop.permute.xlu0 %1116 }
 0x321   : > { %6703 = vst [vmem:[#allocation190_spill] sm:$0xff] %v5524_v22  ;;  %6704 = vst [vmem:[#allocation191_spill] sm:$0xff] %v5526_v40 }
 0x322   : > { %1262 = vrot.lane.b32.xlu1 %v4603_v39, %s4366_s27  ;;  %1268 = vrot.lane.b32.xlu0 %v4886_v15, %s4366_s27 }
 0x324   : > { %v5532_v30 = vpop.permute.xlu1 %1114  ;;  %v5534_v24 = vpop.permute.xlu0 %1120 }
 0x325   : > { %6705 = vst [vmem:[#allocation192_spill] sm:$0xff] %v5532_v30  ;;  %6706 = vst [vmem:[#allocation193_spill] sm:$0xff] %v5534_v24 }
 0x326   : > { %1266 = vrot.lane.b32.xlu1 %v4723_v2, %s4366_s27  ;;  %1272 = vrot.lane.b32.xlu0 %v4727_v4, %s4366_s27 }
 0x328   : > { %v5540_v36 = vpop.permute.xlu1 %1118  ;;  %v5542_v22 = vpop.permute.xlu0 %1124 }
 0x329   : > { %6707 = vst [vmem:[#allocation194_spill] sm:$0xff] %v5540_v36  ;;  %6708 = vst [vmem:[#allocation195_spill] sm:$0xff] %v5542_v22 }
 0x32a   : > { %1270 = vrot.lane.b32.xlu1 %v4610_v41, %s4366_s27  ;;  %1276 = vrot.lane.b32.xlu0 %v4902_v26, %s4366_s27 }
 0x32c   : > { %v5548_v40 = vpop.permute.xlu1 %1122  ;;  %v5550_v30 = vpop.permute.xlu0 %1128 }
 0x32d   : > { %6709 = vst [vmem:[#allocation196_spill] sm:$0xff] %v5548_v40  ;;  %6710 = vst [vmem:[#allocation197_spill] sm:$0xff] %v5550_v30 }
 0x32e   : > { %1274 = vrot.lane.b32.xlu1 %v4734_v5, %s4366_s27  ;;  %1316 = vrot.lane.b32.xlu0 %v4558_v14, %s4368_s28 }
 0x330   : > { %v5556_v24 = vpop.permute.xlu1 %1126  ;;  %v5558_v22 = vpop.permute.xlu0 %1132 }
 0x331   : > { %6711 = vst [vmem:[#allocation198_spill] sm:$0xff] %v5556_v24  ;;  %6712 = vst [vmem:[#allocation199_spill] sm:$0xff] %v5558_v22 }
 0x332   : > { %1278 = vrot.lane.b32.xlu1 %v4535_v63, %s4366_s27  ;;  %1320 = vrot.lane.b32.xlu0 %v4647_v44, %s4368_s28 }
 0x334   : > { %v5564_v40 = vpop.permute.xlu1 %1130  ;;  %v5566_v30 = vpop.permute.xlu0 %1136 }
 0x335   : > { %6713 = vst [vmem:[#allocation200_spill] sm:$0xff] %v5564_v40  ;;  %6714 = vst [vmem:[#allocation201_spill] sm:$0xff] %v5566_v30 }
 0x336   : > { %1318 = vrot.lane.b32.xlu1 %v4658_v47, %s4368_s28  ;;  %1324 = vrot.lane.b32.xlu0 %v4569_v20, %s4368_s28 }
 0x338   : > { %v5572_v36 = vpop.permute.xlu1 %1134  ;;  %v5574_v24 = vpop.permute.xlu0 %1140 }
 0x339   : > { %6715 = vst [vmem:[#allocation202_spill] sm:$0xff] %v5572_v36  ;;  %6716 = vst [vmem:[#allocation203_spill] sm:$0xff] %v5574_v24 }
 0x33a   : > { %1322 = vrot.lane.b32.xlu1 %v4882_v10, %s4368_s28  ;;  %1328 = vrot.lane.b32.xlu0 %v4654_v46, %s4368_s28 }
 0x33c   : > { %v5580_v22 = vpop.permute.xlu1 %1138  ;;  %v5582_v40 = vpop.permute.xlu0 %1144 }
 0x33d   : > { %6717 = vst [vmem:[#allocation204_spill] sm:$0xff] %v5580_v22  ;;  %6718 = vst [vmem:[#allocation205_spill] sm:$0xff] %v5582_v40 }
 0x33e   : > { %1326 = vrot.lane.b32.xlu1 %v4670_v50, %s4368_s28  ;;  %1332 = vrot.lane.b32.xlu0 %v4517_v43, %s4368_s28 }
 0x340   : > { %v5588_v30 = vpop.permute.xlu1 %1142  ;;  %v5590_v36 = vpop.permute.xlu0 %1148 }
 0x341   : > { %6719 = vst [vmem:[#allocation206_spill] sm:$0xff] %v5588_v30  ;;  %6720 = vst [vmem:[#allocation207_spill] sm:$0xff] %v5590_v36 }
 0x342   : > { %1330 = vrot.lane.b32.xlu1 %v4898_v54, %s4368_s28  ;;  %1336 = vrot.lane.b32.xlu0 %v4666_v49, %s4368_s28 }
 0x344   : > { %v5596_v24 = vpop.permute.xlu1 %1146  ;;  %v5598_v22 = vpop.permute.xlu0 %1152 }
 0x345   : > { %6721 = vst [vmem:[#allocation208_spill] sm:$0xff] %v5596_v24  ;;  %6722 = vst [vmem:[#allocation209_spill] sm:$0xff] %v5598_v22 }
 0x346   : > { %1334 = vrot.lane.b32.xlu1 %v4580_v27, %s4368_s28  ;;  %1340 = vrot.lane.b32.xlu0 %v4858_v53, %s4368_s28 }
 0x348   : > { %v5604_v40 = vpop.permute.xlu1 %1150  ;;  %v5606_v30 = vpop.permute.xlu0 %1156 }
 0x349   : > { %6723 = vst [vmem:[#allocation210_spill] sm:$0xff] %v5604_v40  ;;  %6724 = vst [vmem:[#allocation211_spill] sm:$0xff] %v5606_v30 }
 0x34a   : > { %1338 = vrot.lane.b32.xlu1 %v4677_v51, %s4368_s28  ;;  %1344 = vrot.lane.b32.xlu0 %v4683_v55, %s4368_s28 }
 0x34c   : > { %v5612_v36 = vpop.permute.xlu1 %1154  ;;  %v5614_v24 = vpop.permute.xlu0 %1160 }
 0x34d   : > { %6725 = vst [vmem:[#allocation212_spill] sm:$0xff] %v5612_v36  ;;  %6726 = vst [vmem:[#allocation213_spill] sm:$0xff] %v5614_v24 }
 0x34e   : > { %1342 = vrot.lane.b32.xlu1 %v4592_v33, %s4368_s28  ;;  %1348 = vrot.lane.b32.xlu0 %v4870_v62, %s4368_s28 }
 0x350   : > { %v5620_v22 = vpop.permute.xlu1 %1158  ;;  %v5622_v40 = vpop.permute.xlu0 %1164 }
 0x351   : > { %6727 = vst [vmem:[#allocation214_spill] sm:$0xff] %v5620_v22  ;;  %6728 = vst [vmem:[#allocation215_spill] sm:$0xff] %v5622_v40 }
 0x352   : > { %1346 = vrot.lane.b32.xlu1 %v4690_v57, %s4368_s28  ;;  %1352 = vrot.lane.b32.xlu0 %v4584_v29, %s4368_s28 }
 0x354   : > { %v5628_v30 = vpop.permute.xlu1 %1162  ;;  %v5630_v36 = vpop.permute.xlu0 %1168 }
 0x355   : > { %6729 = vst [vmem:[#allocation216_spill] sm:$0xff] %v5628_v30  ;;  %6730 = vst [vmem:[#allocation217_spill] sm:$0xff] %v5630_v36  ;;  %v4369_v36 = vmov 1934713408  }
 0x356   : > { %1350 = vrot.lane.b32.xlu1 %v4522_v52, %s4368_s28  ;;  %1356 = vrot.lane.b32.xlu0 %v4693_v58, %s4368_s28  ;;  %v1390_v29 = vunpack.c.l.s4 %v4369_v36 }
 0x358   : > { %v5636_v24 = vpop.permute.xlu1 %1166  ;;  %v1209_v22 = vpop.permute.xlu0 %1208 }
 0x359   : > { %6731 = vst [vmem:[#allocation218_spill] sm:$0xff] %v5636_v24 }
 0x35a   : > { %1354 = vrot.lane.b32.xlu1 %v4704_v61, %s4368_s28  ;;  %1360 = vrot.lane.b32.xlu0 %v4595_v35, %s4368_s28  ;;  %v1391_v61 = vunpack.c.0.s8 %v1390_v29  ;;  %v1404_v29 = vcombine.low %v4910_v7, %v5350_v23 }
 0x35c   : > { %v5642_v40 = vpop.permute.xlu1 %1170  ;;  %v5644_v30 = vpop.permute.xlu0 %1212 }
 0x35d   : > { %6732 = vst [vmem:[#allocation219_spill] sm:$0xff] %v5642_v40  ;;  %v1412_v40 = vcombine.low %v5494_v21, %v1209_v22  ;;  %v1388_v21 = vcombine.low %v4558_v14, %v4790_v18 }
 0x35e   : > { %1358 = vrot.lane.b32.xlu1 %v4914_v11, %s4368_s28  ;;  %1364 = vrot.lane.b32.xlu0 %v4700_v60, %s4368_s28  ;;  %v5664_v11 = vsub.s32 %v1391_v61, %v4511_v34  ;;  %v1396_v60 = vcombine.low %v4822_v28, %v4854_v48 }
 0x360   : > { %v5650_v24 = vpop.permute.xlu1 %1210  ;;  %v5652_v58 = vpop.permute.xlu0 %1216  ;;  %v1419_v22 = vrot.slane %v1412_v40, %v5664_v11  ;;  %v1403_v28 = vrot.slane %v1396_v60, %v5664_v11  ;;  %v1411_v48 = vrot.slane %v1404_v29, %v5664_v11  ;;  %v1395_v7 = vrot.slane %v1388_v21, %v5664_v11 }
 0x362   : > { %1362 = vrot.lane.b32.xlu1 %v4712_v0, %s4368_s28  ;;  %1368 = vrot.lane.b32.xlu0 %v4527_v56, %s4368_s28  ;;  %v2685_v23 = vcombine.low %v1411_v48, %v1419_v22  ;;  %v2684_v40 = vcombine.low %v1395_v7, %v1403_v28  ;;  %v1540_v0 = vcombine.low %v5508_v32, %v5650_v24 }
 0x363   : > { %v1652_v24 = vcombine.low %v4990_v31, %v5054_v19 }
 0x364   : > { %v5659_v36 = vpop.permute.xlu1 %1214  ;;  %v5661_v35 = vpop.permute.xlu0 %1220  ;;  %v2699_v60 = vrot.slane %v2685_v23, %v4514_v38  ;;  %v2692_v21 = vrot.slane %v2684_v40, %v4514_v38 }
 0x365   : > { %v1796_v31 = vcombine.low %v5516_v59, %v5659_v36  ;;  %v1659_v19 = vrot.slane %v1652_v24, %v5664_v11 }
 0x366   : > { %1366 = vrot.lane.b32.xlu1 %v4926_v42, %s4368_s28  ;;  %1372 = vrot.lane.b32.xlu0 %v4716_v1, %s4368_s28  ;;  %v2700_v48 = vcombine.low %v2692_v21, %v2699_v60 }
 0x368   : > { %v5677_v56 = vpop.permute.xlu1 %1218  ;;  %v5679_v61 = vpop.permute.xlu0 %1224 }
 0x36a   : > { %1370 = vrot.lane.b32.xlu1 %v4603_v39, %s4368_s28  ;;  %1376 = vrot.lane.b32.xlu0 %v4886_v15, %s4368_s28 }
 0x36c   : > { %v5688_v14 = vpop.permute.xlu1 %1222  ;;  %v5690_v18 = vpop.permute.xlu0 %1228 }
 0x36e   : > { %1374 = vrot.lane.b32.xlu1 %v4723_v2, %s4368_s28  ;;  %1380 = vrot.lane.b32.xlu0 %v4727_v4, %s4368_s28 }
 0x370   : > { %v5697_v29 = vpop.permute.xlu1 %1226  ;;  %v5699_v34 = vpop.permute.xlu0 %1232 }
 0x372   : > { %1378 = vrot.lane.b32.xlu1 %v4610_v41, %s4368_s28  ;;  %1384 = vrot.lane.b32.xlu0 %v4902_v26, %s4368_s28 }
 0x374   : > { %v5706_v22 = vpop.permute.xlu1 %1230  ;;  %v5708_v28 = vpop.permute.xlu0 %1236 }
 0x376   : > { %1382 = vrot.lane.b32.xlu1 %v4734_v5, %s4368_s28  ;;  %3549 = vperm.xlu0 %4287, %v2700_v48  }
 0x378   : > { %v5712_v7 = vpop.permute.xlu1 %1234  ;;  %v5714_v23 = vpop.permute.xlu0 %1240 }
 0x37a   : > { %1386 = vrot.lane.b32.xlu1 %v4535_v63, %s4368_s28 }
 0x37c   : > { %v5718_v40 = vpop.permute.xlu1 %1238  ;;  %v5720_v4 = vpop.permute.xlu0 %1244 }
 0x380   : > { %v5722_v26 = vpop.permute.xlu1 %1242  ;;  %v5724_v41 = vpop.permute.xlu0 %1248 }
 0x384   : > { %v5726_v60 = vpop.permute.xlu1 %1246  ;;  %v5728_v21 = vpop.permute.xlu0 %1252 }
 0x385   : > { %6733 = vst [vmem:[#allocation220_spill] sm:$0xff] %v5728_v21  ;;  %v1524_v21 = vcombine.low %v4996_v8, %v5060_v37  ;;  %v1644_v37 = vcombine.low %v4647_v44, %v4922_v25  ;;  %v6742_v25 = vld [vmem:[#allocation123_spill] sm:$0xff] }
 0x387   : > { %v1531_v8 = vrot.slane %v1524_v21, %v5664_v11  ;;  %v1651_v21 = vrot.slane %v1644_v37, %v5664_v11  ;;  %v6747_v37 = vld [vmem:[#allocation155_spill] sm:$0xff] }
 0x388   : > { %v5730_v48 = vpop.permute.xlu1 %1250  ;;  %v5732_v5 = vpop.permute.xlu0 %1256 }
 0x389   : > { %6734 = vst [vmem:[#allocation221_spill] sm:$0xff] %v5732_v5  ;;  %v1532_v5 = vcombine.low %v5124_v6, %v5364_v13  ;;  %v1660_v6 = vcombine.low %v5214_v12, %v5358_v16  ;;  %v6741_v16 = vld [vmem:[#allocation156_spill] sm:$0xff] }
 0x38b   : > { %v1539_v13 = vrot.slane %v1532_v5, %v5664_v11  ;;  %v1780_v5 = vcombine.low %v5164_v9, %v5196_v3  ;;  %v1667_v44 = vrot.slane %v1660_v6, %v5664_v11  ;;  %v1803_v9 = vrot.slane %v1796_v31, %v5664_v11  ;;  %v6745_v6 = vld [vmem:[#allocation47_spill] sm:$0xff] }
 0x38c   : > { %v5734_v15 = vpop.permute.xlu1 %1254  ;;  %v5736_v2 = vpop.permute.xlu0 %1260 }
 0x38d   : > { %6735 = vst [vmem:[#allocation222_spill] sm:$0xff] %v5734_v15  ;;  %6736 = vst [vmem:[#allocation223_spill] sm:$0xff] %v5736_v2 }
 0x390   : > { %v5738_v63 = vpop.permute.xlu1 %1258  ;;  %v5740_v1 = vpop.permute.xlu0 %1264 }
 0x391   : > { %6737 = vst [vmem:[#allocation224_spill] sm:$0xff] %v5740_v1  ;;  %v1516_v1 = vcombine.low %v4658_v47, %v4932_v45  ;;  %v1788_v45 = vcombine.low %v6742_v25, %v6741_v16  ;;  %v6748_v25 = vld [vmem:[#allocation122_spill] sm:$0xff] }
 0x394   : > { %v5742_v39 = vpop.permute.xlu1 %1262  ;;  %v5744_v42 = vpop.permute.xlu0 %1268 }
 0x395   : > { %6738 = vst [vmem:[#allocation225_spill] sm:$0xff] %v5742_v39  ;;  %6739 = vst [vmem:[#allocation226_spill] sm:$0xff] %v5744_v42  ;;  %v1668_v39 = vcombine.low %v5502_v17, %v5644_v30  ;;  %v1547_v42 = vrot.slane %v1540_v0, %v5664_v11  ;;  %v1523_v17 = vrot.slane %v1516_v1, %v5664_v11  ;;  %v6743_v1 = vld [vmem:[#allocation102_spill] sm:$0xff] }
 0x397   : > { %v1675_v0 = vrot.slane %v1668_v39, %v5664_v11  ;;  %v2709_v30 = vcombine.low %v1539_v13, %v1547_v42  ;;  %v2708_v12 = vcombine.low %v1523_v17, %v1531_v8  ;;  %v1772_v39 = vcombine.low %v4882_v10, %v6743_v1  ;;  %v6744_v42 = vld [vmem:[#allocation188_spill] sm:$0xff] }
 0x398   : > { %v5752_v15 = vpop.permute.xlu1 %1266  ;;  %v5754_v2 = vpop.permute.xlu0 %1272  ;;  %v1924_v13 = vcombine.low %v6744_v42, %v5652_v58  ;;  %v6746_v17 = vld [vmem:[#allocation40_spill] sm:$0xff]  ;;  %v2732_v10 = vcombine.low %v1651_v21, %v1659_v19  ;;  %v1787_v58 = vrot.slane %v1780_v5, %v5664_v11  ;;  %v1795_v42 = vrot.slane %v1788_v45, %v5664_v11  ;;  %v6751_v19 = vld [vmem:[#allocation190_spill] sm:$0xff] }
 0x399   : > { %v2733_v24 = vcombine.low %v1667_v44, %v1675_v0  ;;  %v2723_v8 = vrot.slane %v2709_v30, %v4514_v38  ;;  %v1908_v16 = vcombine.low %v6746_v17, %v6745_v6  ;;  %v2716_v1 = vrot.slane %v2708_v12, %v4514_v38  ;;  %v6749_v0 = vld [vmem:[#allocation33_spill] sm:$0xff] }
 0x39a   : > { %v1900_v30 = vcombine.low %v4569_v20, %v6749_v0  ;;  %v1779_v31 = vrot.slane %v1772_v39, %v5664_v11  ;;  %v1931_v44 = vrot.slane %v1924_v13, %v5664_v11  ;;  %v2757_v17 = vcombine.low %v1795_v42, %v1803_v9  ;;  %v6752_v20 = vld [vmem:[#allocation87_spill] sm:$0xff]  ;;  %v6754_v13 = vld [vmem:[#allocation158_spill] sm:$0xff]  ;;  %v6755_v0 = vld [vmem:[#allocation125_spill] sm:$0xff] }
 0x39b   : > { %v2747_v6 = vrot.slane %v2733_v24, %v4514_v38  ;;  %v2052_v12 = vcombine.low %v6751_v19, %v5677_v56  ;;  %v2724_v21 = vcombine.low %v2716_v1, %v2723_v8  ;;  %v1915_v5 = vrot.slane %v1908_v16, %v5664_v11  ;;  %v6756_v9 = vld [vmem:[#allocation59_spill] sm:$0xff]  ;;  %v6757_v16 = vld [vmem:[#allocation189_spill] sm:$0xff] }
 0x39c   : > { %v5769_v32 = vpop.permute.xlu1 %1270  ;;  %v5771_v47 = vpop.permute.xlu0 %1276  ;;  %v1907_v24 = vrot.slane %v1900_v30, %v5664_v11  ;;  %v2028_v56 = vcombine.low %v4670_v50, %v6756_v9  ;;  %v2180_v1 = vcombine.low %v6757_v16, %v5661_v35  ;;  %v6760_v30 = vld [vmem:[#allocation157_spill] sm:$0xff]  ;;  %v6763_v9 = vld [vmem:[#allocation192_spill] sm:$0xff] }
 0x39d   : > { %6740 = vst [vmem:[#allocation227_spill] sm:$0xff] %v5771_v47  ;;  %v1916_v47 = vcombine.low %v6748_v25, %v6747_v37  ;;  %v6753_v37 = vld [vmem:[#allocation73_spill] sm:$0xff]  ;;  %v2756_v25 = vcombine.low %v1779_v31, %v1787_v58  ;;  %v2059_v42 = vrot.slane %v2052_v12, %v5664_v11  ;;  %v2308_v16 = vcombine.low %v6763_v9, %v5688_v14 }
 0x39e   : > { %v2036_v39 = vcombine.low %v6753_v37, %v6752_v20  ;;  %v2780_v19 = vcombine.low %v1907_v24, %v1915_v5  ;;  %v6758_v20 = vld [vmem:[#allocation86_spill] sm:$0xff] }
 0x39f   : > { %v1923_v45 = vrot.slane %v1916_v47, %v5664_v11  ;;  %v2764_v35 = vrot.slane %v2756_v25, %v4514_v38 }
 0x3a0   : > { %v5788_v59 = vpop.permute.xlu1 %1274  ;;  %v1317_v36 = vpop.permute.xlu0 %1316 }
 0x3a1   : > { %v2707_v3 = vrot.slane %v1317_v36, %v4514_v38  ;;  %v2781_v8 = vcombine.low %v1923_v45, %v1931_v44  ;;  %v2043_v44 = vrot.slane %v2036_v39, %v5664_v11 }
 0x3a3   : > { %3552 = vperm.xlu1 %4288, %v2707_v3   ;;  %v2740_v3 = vrot.slane %v2732_v10, %v4514_v38  ;;  %v2771_v10 = vrot.slane %v2757_v17, %v4514_v38  ;;  %v6762_v17 = vld [vmem:[#allocation58_spill] sm:$0xff]  ;;  %v2795_v5 = vrot.slane %v2781_v8, %v4514_v38 }
 0x3a4   : > { %v5804_v36 = vpop.permute.xlu1 %1278  ;;  %v1321_v50 = vpop.permute.xlu0 %1320  ;;  %v2156_v12 = vcombine.low %v4654_v46, %v6762_v17  ;;  %v6771_v17 = vld [vmem:[#allocation24_spill] sm:$0xff] }
 0x3a5   : > { %6750 = vst [vmem:[#allocation156_spill] sm:$0xff] %v5804_v36  ;;  %v2044_v36 = vcombine.low %v6755_v0, %v6754_v13  ;;  %v2748_v31 = vcombine.low %v2740_v3, %v2747_v6  ;;  %v6761_v13 = vld [vmem:[#allocation124_spill] sm:$0xff]  ;;  %v2035_v6 = vrot.slane %v2028_v56, %v5664_v11  ;;  %v2187_v3 = vrot.slane %v2180_v1, %v5664_v11  ;;  %v6764_v56 = vld [vmem:[#allocation118_spill] sm:$0xff]  ;;  %v6767_v1 = vld [vmem:[#allocation127_spill] sm:$0xff] }
 0x3a6   : > { %v2172_v0 = vcombine.low %v6761_v13, %v6760_v30  ;;  %v2755_v39 = vrot.slane %v1321_v50, %v4514_v38  ;;  %v2772_v25 = vcombine.low %v2764_v35, %v2771_v10  ;;  %v2163_v14 = vrot.slane %v2156_v12, %v5664_v11  ;;  %v6768_v30 = vld [vmem:[#allocation104_spill] sm:$0xff]  ;;  %v6773_v12 = vld [vmem:[#allocation126_spill] sm:$0xff] }
 0x3a7   : > { %3555 = vperm.xlu1 %4288, %v2724_v21   ;;  %v6759_v21 = vld [vmem:[#allocation72_spill] sm:$0xff]  ;;  %v2051_v45 = vrot.slane %v2044_v36, %v5664_v11  ;;  %v2788_v36 = vrot.slane %v2780_v19, %v4514_v38  ;;  %v2284_v10 = vcombine.low %v4898_v54, %v6768_v30  ;;  %v2315_v50 = vrot.slane %v2308_v16, %v5664_v11 }
 0x3a8   : > { %v1319_v47 = vpop.permute.xlu1 %1318  ;;  %v2164_v37 = vcombine.low %v6759_v21, %v6758_v20  ;;  %v6765_v20 = vld [vmem:[#allocation111_spill] sm:$0xff]  ;;  %v6766_v21 = vld [vmem:[#allocation160_spill] sm:$0xff] }
 0x3a9   : > { %v2731_v58 = vrot.slane %v1319_v47, %v4514_v38  ;;  %v2805_v24 = vcombine.low %v2051_v45, %v2059_v42  ;;  %v2292_v8 = vcombine.low %v6765_v20, %v6764_v56  ;;  %v2300_v42 = vcombine.low %v6767_v1, %v6766_v21  ;;  %v6770_v45 = vld [vmem:[#allocation28_spill] sm:$0xff]  ;;  %v1325_v56 = vpop.permute.xlu0 %1324 }
 0x3aa   : > { %v2171_v47 = vrot.slane %v2164_v37, %v5664_v11  ;;  %v6769_v37 = vld [vmem:[#allocation191_spill] sm:$0xff]  ;;  %v2796_v35 = vcombine.low %v2788_v36, %v2795_v5  ;;  %v2291_v5 = vrot.slane %v2284_v10, %v5664_v11  ;;  %v6776_v1 = vld [vmem:[#allocation48_spill] sm:$0xff] }
 0x3ab   : > { %3558 = vperm.xlu0 %4287, %v2731_v58   ;;  %3561 = vperm.xlu1 %4288, %v2748_v31   ;;  %v2179_v58 = vrot.slane %v2172_v0, %v5664_v11  ;;  %v2804_v31 = vcombine.low %v2035_v6, %v2043_v44  ;;  %v2436_v13 = vcombine.low %v6769_v37, %v5679_v61  ;;  %v6778_v37 = vld [vmem:[#allocation162_spill] sm:$0xff] }
 0x3ac   : > { %v1323_v46 = vpop.permute.xlu1 %1322  ;;  %v2819_v0 = vrot.slane %v2805_v24, %v4514_v38  ;;  %v2420_v6 = vcombine.low %v6771_v17, %v6770_v45  ;;  %v2828_v9 = vcombine.low %v2163_v14, %v2171_v47  ;;  %v2307_v61 = vrot.slane %v2300_v42, %v5664_v11  ;;  %v6774_v24 = vld [vmem:[#allocation21_spill] sm:$0xff] }
 0x3ad   : > { %v2829_v19 = vcombine.low %v2179_v58, %v2187_v3  ;;  %v2779_v44 = vrot.slane %v1323_v46, %v4514_v38  ;;  %v2812_v54 = vrot.slane %v2804_v31, %v4514_v38  ;;  %v2299_v3 = vrot.slane %v2292_v8, %v5664_v11  ;;  %v6775_v46 = vld [vmem:[#allocation194_spill] sm:$0xff]  ;;  %v6777_v42 = vld [vmem:[#allocation41_spill] sm:$0xff] }
 0x3ae   : > { %v2412_v16 = vcombine.low %v4517_v43, %v6774_v24  ;;  %v2443_v47 = vrot.slane %v2436_v13, %v5664_v11  ;;  %v2853_v58 = vcombine.low %v2307_v61, %v2315_v50  ;;  %v1444_v20 = vcombine.low %v6775_v46, %v5697_v29  ;;  %v6779_v13 = vld [vmem:[#allocation129_spill] sm:$0xff]  ;;  %v6785_v24 = vld [vmem:[#allocation128_spill] sm:$0xff] }
 0x3af   : > { %3567 = vperm.xlu1 %4288, %v2772_v25   ;;  %3564 = vperm.xlu0 %4287, %v2755_v39   ;;  %v6772_v39 = vld [vmem:[#allocation159_spill] sm:$0xff]  ;;  %v2843_v36 = vrot.slane %v2829_v19, %v4514_v38  ;;  %v2803_v31 = vrot.slane %v1325_v56, %v4514_v38  ;;  %v2820_v8 = vcombine.low %v2812_v54, %v2819_v0  ;;  %v6781_v45 = vld [vmem:[#allocation193_spill] sm:$0xff]  ;;  %v6782_v56 = vld [vmem:[#allocation88_spill] sm:$0xff] }
 0x3b0   : > { %v2428_v25 = vcombine.low %v6773_v12, %v6772_v39  ;;  %v2427_v21 = vrot.slane %v2420_v6, %v5664_v11  ;;  %v1428_v14 = vcombine.low %v6777_v42, %v6776_v1  ;;  %v1327_v30 = vpop.permute.xlu1 %1326  ;;  %v2836_v10 = vrot.slane %v2828_v9, %v4514_v38  ;;  %v6783_v54 = vld [vmem:[#allocation74_spill] sm:$0xff]  ;;  %v6784_v61 = vld [vmem:[#allocation161_spill] sm:$0xff]  ;;  %v6786_v46 = vld [vmem:[#allocation60_spill] sm:$0xff] }
 0x3b1   : > { %v2852_v19 = vcombine.low %v2291_v5, %v2299_v3  ;;  %v1436_v50 = vcombine.low %v6779_v13, %v6778_v37  ;;  %v2419_v29 = vrot.slane %v2412_v16, %v5664_v11  ;;  %v1572_v17 = vcombine.low %v6781_v45, %v5690_v18  ;;  %v6787_v1 = vld [vmem:[#allocation196_spill] sm:$0xff]  ;;  %v6789_v13 = vld [vmem:[#allocation75_spill] sm:$0xff] }
 0x3b2   : > { %v2435_v43 = vrot.slane %v2428_v25, %v5664_v11  ;;  %v2867_v6 = vrot.slane %v2853_v58, %v4514_v38  ;;  %v1451_v39 = vrot.slane %v1444_v20, %v5664_v11  ;;  %v2827_v9 = vrot.slane %v1327_v30, %v4514_v38 }
 0x3b3   : > { %3573 = vperm.xlu1 %4288, %v2796_v35   ;;  %3570 = vperm.xlu0 %4287, %v2779_v44   ;;  %v6780_v44 = vld [vmem:[#allocation34_spill] sm:$0xff]  ;;  %v2844_v12 = vcombine.low %v2836_v10, %v2843_v36  ;;  %v1435_v25 = vrot.slane %v1428_v14, %v5664_v11  ;;  %v1556_v3 = vcombine.low %v6783_v54, %v6782_v56 }
 0x3b4   : > { %v1420_v0 = vcombine.low %v4580_v27, %v6780_v44  ;;  %v2877_v35 = vcombine.low %v2435_v43, %v2443_v47  ;;  %v1564_v16 = vcombine.low %v6785_v24, %v6784_v61  ;;  %v1329_v27 = vpop.permute.xlu0 %1328  ;;  %v2876_v5 = vcombine.low %v2419_v29, %v2427_v21  ;;  %v6790_v29 = vld [vmem:[#allocation164_spill] sm:$0xff]  ;;  %v6791_v44 = vld [vmem:[#allocation131_spill] sm:$0xff]  ;;  %v6795_v24 = vld [vmem:[#allocation130_spill] sm:$0xff] }
 0x3b5   : > { %v2860_v47 = vrot.slane %v2852_v19, %v4514_v38  ;;  %v1443_v18 = vrot.slane %v1436_v50, %v5664_v11  ;;  %v1548_v36 = vcombine.low %v4666_v49, %v6786_v46  ;;  %v1700_v42 = vcombine.low %v6787_v1, %v5706_v22  ;;  %v1331_v19 = vpop.permute.xlu1 %1330  ;;  %v6788_v49 = vld [vmem:[#allocation89_spill] sm:$0xff]  ;;  %v6794_v61 = vld [vmem:[#allocation163_spill] sm:$0xff]  ;;  %v6798_v46 = vld [vmem:[#allocation100_spill] sm:$0xff] }
 0x3b6   : > { %v1427_v58 = vrot.slane %v1420_v0, %v5664_v11  ;;  %v2891_v20 = vrot.slane %v2877_v35, %v4514_v38  ;;  %v2851_v21 = vrot.slane %v1329_v27, %v4514_v38  ;;  %v1563_v30 = vrot.slane %v1556_v3, %v5664_v11  ;;  %v6792_v35 = vld [vmem:[#allocation61_spill] sm:$0xff]  ;;  %v6799_v1 = vld [vmem:[#allocation198_spill] sm:$0xff] }
 0x3b7   : > { %3579 = vperm.xlu1 %4288, %v2820_v8   ;;  %3576 = vperm.xlu0 %4287, %v2803_v31   ;;  %v1579_v31 = vrot.slane %v1572_v17, %v5664_v11  ;;  %v2901_v8 = vcombine.low %v1443_v18, %v1451_v39  ;;  %v2868_v14 = vcombine.low %v2860_v47, %v2867_v6  ;;  %v6793_v6 = vld [vmem:[#allocation195_spill] sm:$0xff] }
 0x3b8   : > { %v2900_v43 = vcombine.low %v1427_v58, %v1435_v25  ;;  %v1571_v10 = vrot.slane %v1564_v16, %v5664_v11  ;;  %v2884_v37 = vrot.slane %v2876_v5, %v4514_v38  ;;  %v1684_v50 = vcombine.low %v6789_v13, %v6788_v49  ;;  %v1333_v27 = vpop.permute.xlu0 %1332  ;;  %v6796_v5 = vld [vmem:[#allocation114_spill] sm:$0xff]  ;;  %v6797_v47 = vld [vmem:[#allocation107_spill] sm:$0xff] }
 0x3b9   : > { %v1692_v0 = vcombine.low %v6791_v44, %v6790_v29  ;;  %v1555_v22 = vrot.slane %v1548_v36, %v5664_v11  ;;  %v1676_v45 = vcombine.low %v4677_v51, %v6792_v35  ;;  %v1828_v39 = vcombine.low %v6793_v6, %v5699_v34  ;;  %v1335_v49 = vpop.permute.xlu1 %1334  ;;  %v6803_v29 = vld [vmem:[#allocation133_spill] sm:$0xff] }
 0x3ba   : > { %v2925_v17 = vcombine.low %v1571_v10, %v1579_v31  ;;  %v2875_v25 = vrot.slane %v1331_v19, %v4514_v38  ;;  %v2892_v56 = vcombine.low %v2884_v37, %v2891_v20  ;;  %v2908_v54 = vrot.slane %v2900_v43, %v4514_v38  ;;  %v6800_v43 = vld [vmem:[#allocation51_spill] sm:$0xff] }
 0x3bb   : > { %3585 = vperm.xlu1 %4288, %v2844_v12   ;;  %3582 = vperm.xlu0 %4287, %v2827_v9   ;;  %v2915_v9 = vrot.slane %v2901_v8, %v4514_v38  ;;  %v1707_v12 = vrot.slane %v1700_v42, %v5664_v11  ;;  %v2924_v3 = vcombine.low %v1555_v22, %v1563_v30  ;;  %v6801_v30 = vld [vmem:[#allocation43_spill] sm:$0xff] }
 0x3bc   : > { %v1820_v16 = vcombine.low %v6795_v24, %v6794_v61  ;;  %v1691_v51 = vrot.slane %v1684_v50, %v5664_v11  ;;  %v1812_v18 = vcombine.low %v6797_v47, %v6796_v5  ;;  %v1699_v34 = vrot.slane %v1692_v0, %v5664_v11  ;;  %v6802_v50 = vld [vmem:[#allocation166_spill] sm:$0xff]  ;;  %v6808_v61 = vld [vmem:[#allocation165_spill] sm:$0xff] }
 0x3bd   : > { %v1683_v58 = vrot.slane %v1676_v45, %v5664_v11  ;;  %v1804_v36 = vcombine.low %v4858_v53, %v6798_v46  ;;  %v2939_v20 = vrot.slane %v2925_v17, %v4514_v38  ;;  %v1835_v31 = vrot.slane %v1828_v39, %v5664_v11  ;;  %v6805_v45 = vld [vmem:[#allocation197_spill] sm:$0xff]  ;;  %v6810_v47 = vld [vmem:[#allocation62_spill] sm:$0xff] }
 0x3be   : > { %v2949_v8 = vcombine.low %v1699_v34, %v1707_v12  ;;  %v1956_v42 = vcombine.low %v6799_v1, %v5712_v7  ;;  %v1940_v10 = vcombine.low %v6801_v30, %v6800_v43  ;;  %v2932_v19 = vrot.slane %v2924_v3, %v4514_v38  ;;  %v6804_v7 = vld [vmem:[#allocation36_spill] sm:$0xff]  ;;  %v6812_v43 = vld [vmem:[#allocation91_spill] sm:$0xff]  ;;  %v6813_v30 = vld [vmem:[#allocation77_spill] sm:$0xff] }
 0x3bf   : > { %3591 = vperm.xlu1 %4288, %v2868_v14   ;;  %3588 = vperm.xlu0 %4287, %v2851_v21   ;;  %v2899_v21 = vrot.slane %v1333_v27, %v4514_v38  ;;  %v2916_v14 = vcombine.low %v2908_v54, %v2915_v9  ;;  %v1827_v37 = vrot.slane %v1820_v16, %v5664_v11  ;;  %v6807_v54 = vld [vmem:[#allocation76_spill] sm:$0xff]  ;;  %v1337_v16 = vpop.permute.xlu0 %1336 }
 0x3c0   : > { %v2948_v53 = vcombine.low %v1683_v58, %v1691_v51  ;;  %v1819_v13 = vrot.slane %v1812_v18, %v5664_v11  ;;  %v1948_v44 = vcombine.low %v6803_v29, %v6802_v50  ;;  %v1932_v0 = vcombine.low %v4592_v33, %v6804_v7  ;;  %v6809_v33 = vld [vmem:[#allocation132_spill] sm:$0xff]  ;;  %v6817_v29 = vld [vmem:[#allocation199_spill] sm:$0xff] }
 0x3c1   : > { %v1811_v22 = vrot.slane %v1804_v36, %v5664_v11  ;;  %v2973_v35 = vcombine.low %v1827_v37, %v1835_v31  ;;  %v2084_v17 = vcombine.low %v6805_v45, %v5708_v28  ;;  %v2963_v6 = vrot.slane %v2949_v8, %v4514_v38  ;;  %v6811_v36 = vld [vmem:[#allocation200_spill] sm:$0xff]  ;;  %v6815_v37 = vld [vmem:[#allocation135_spill] sm:$0xff] }
 0x3c2   : > { %v1963_v39 = vrot.slane %v1956_v42, %v5664_v11  ;;  %v2923_v9 = vrot.slane %v1335_v49, %v4514_v38  ;;  %v2940_v12 = vcombine.low %v2932_v19, %v2939_v20  ;;  %v2076_v24 = vcombine.low %v6809_v33, %v6808_v61  ;;  %v6814_v19 = vld [vmem:[#allocation168_spill] sm:$0xff]  ;;  %v6822_v61 = vld [vmem:[#allocation101_spill] sm:$0xff] }
 0x3c3   : > { %3597 = vperm.xlu1 %4288, %v2892_v56   ;;  %3594 = vperm.xlu0 %4287, %v2875_v25   ;;  %v1947_v25 = vrot.slane %v1940_v10, %v5664_v11  ;;  %v6806_v56 = vld [vmem:[#allocation90_spill] sm:$0xff]  ;;  %v2956_v27 = vrot.slane %v2948_v53, %v4514_v38  ;;  %v2972_v51 = vcombine.low %v1811_v22, %v1819_v13  ;;  %v6816_v53 = vld [vmem:[#allocation63_spill] sm:$0xff] }
 0x3c4   : > { %v2068_v3 = vcombine.low %v6807_v54, %v6806_v56  ;;  %v1955_v28 = vrot.slane %v1948_v44, %v5664_v11  ;;  %v1939_v5 = vrot.slane %v1932_v0, %v5664_v11  ;;  %v2060_v18 = vcombine.low %v4683_v55, %v6810_v47  ;;  %v6821_v56 = vld [vmem:[#allocation109_spill] sm:$0xff] }
 0x3c5   : > { %v2987_v34 = vrot.slane %v2973_v35, %v4514_v38  ;;  %v2091_v58 = vrot.slane %v2084_v17, %v5664_v11  ;;  %v2212_v20 = vcombine.low %v6811_v36, %v5718_v40  ;;  %v2947_v31 = vrot.slane %v1337_v16, %v4514_v38 }
 0x3c6   : > { %v2997_v46 = vcombine.low %v1955_v28, %v1963_v39  ;;  %v2964_v8 = vcombine.low %v2956_v27, %v2963_v6  ;;  %v2996_v1 = vcombine.low %v1939_v5, %v1947_v25  ;;  %v2075_v42 = vrot.slane %v2068_v3, %v5664_v11  ;;  %v6818_v6 = vld [vmem:[#allocation167_spill] sm:$0xff]  ;;  %v6819_v39 = vld [vmem:[#allocation134_spill] sm:$0xff]  ;;  %v6820_v25 = vld [vmem:[#allocation116_spill] sm:$0xff] }
 0x3c7   : > { %3603 = vperm.xlu1 %4288, %v2916_v14   ;;  %3600 = vperm.xlu0 %4287, %v2899_v21   ;;  %v2083_v21 = vrot.slane %v2076_v24, %v5664_v11  ;;  %v1339_v14 = vpop.permute.xlu1 %1338  ;;  %v2196_v55 = vcombine.low %v6813_v30, %v6812_v43  ;;  %v2980_v10 = vrot.slane %v2972_v51, %v4514_v38  ;;  %v6823_v51 = vld [vmem:[#allocation202_spill] sm:$0xff]  ;;  %v6829_v30 = vld [vmem:[#allocation201_spill] sm:$0xff] }
 0x3c8   : > { %v2204_v49 = vcombine.low %v6815_v37, %v6814_v19  ;;  %v2067_v40 = vrot.slane %v2060_v18, %v5664_v11  ;;  %v2188_v13 = vcombine.low %v4690_v57, %v6816_v53  ;;  %v2340_v44 = vcombine.low %v6817_v29, %v5714_v23  ;;  %v6824_v18 = vld [vmem:[#allocation31_spill] sm:$0xff]  ;;  %v6830_v53 = vld [vmem:[#allocation49_spill] sm:$0xff] }
 0x3c9   : > { %v3021_v50 = vcombine.low %v2083_v21, %v2091_v58  ;;  %v3011_v7 = vrot.slane %v2997_v46, %v4514_v38  ;;  %v2219_v0 = vrot.slane %v2212_v20, %v5664_v11  ;;  %v2971_v22 = vrot.slane %v1339_v14, %v4514_v38  ;;  %v6832_v29 = vld [vmem:[#allocation169_spill] sm:$0xff] }
 0x3ca   : > { %v2988_v35 = vcombine.low %v2980_v10, %v2987_v34  ;;  %v3004_v45 = vrot.slane %v2996_v1, %v4514_v38  ;;  %v3020_v17 = vcombine.low %v2067_v40, %v2075_v42  ;;  %v2203_v57 = vrot.slane %v2196_v55, %v5664_v11  ;;  %v6825_v34 = vld [vmem:[#allocation27_spill] sm:$0xff]  ;;  %v6827_v1 = vld [vmem:[#allocation137_spill] sm:$0xff] }
 0x3cb   : > { %3609 = vperm.xlu1 %4288, %v2940_v12   ;;  %3606 = vperm.xlu0 %4287, %v2923_v9   ;;  %v2332_v9 = vcombine.low %v6819_v39, %v6818_v6  ;;  %v1341_v12 = vpop.permute.xlu0 %1340  ;;  %v2324_v54 = vcombine.low %v6821_v56, %v6820_v25  ;;  %v2211_v23 = vrot.slane %v2204_v49, %v5664_v11  ;;  %v1343_v20 = vpop.permute.xlu1 %1342 }
 0x3cc   : > { %v2195_v3 = vrot.slane %v2188_v13, %v5664_v11  ;;  %v2316_v33 = vcombine.low %v4870_v62, %v6822_v61  ;;  %v3035_v24 = vrot.slane %v3021_v50, %v4514_v38  ;;  %v2347_v16 = vrot.slane %v2340_v44, %v5664_v11  ;;  %v6831_v13 = vld [vmem:[#allocation42_spill] sm:$0xff] }
 0x3cd   : > { %v3045_v27 = vcombine.low %v2211_v23, %v2219_v0  ;;  %v2468_v28 = vcombine.low %v6823_v51, %v5722_v26  ;;  %v2995_v5 = vrot.slane %v1341_v12, %v4514_v38  ;;  %v3012_v47 = vcombine.low %v3004_v45, %v3011_v7  ;;  %v6828_v26 = vld [vmem:[#allocation23_spill] sm:$0xff] }
 0x3ce   : > { %v2452_v58 = vcombine.low %v6825_v34, %v6824_v18  ;;  %v3028_v46 = vrot.slane %v3020_v17, %v4514_v38  ;;  %v2339_v36 = vrot.slane %v2332_v9, %v5664_v11  ;;  %v3044_v62 = vcombine.low %v2195_v3, %v2203_v57  ;;  %v6834_v45 = vld [vmem:[#allocation35_spill] sm:$0xff]  ;;  %v6835_v17 = vld [vmem:[#allocation9_spill] sm:$0xff]  ;;  %v6836_v57 = vld [vmem:[#allocation204_spill] sm:$0xff] }
 0x3cf   : > { %3615 = vperm.xlu1 %4288, %v2964_v8   ;;  %3612 = vperm.xlu0 %4287, %v2947_v31   ;;  %v2331_v31 = vrot.slane %v2324_v54, %v5664_v11  ;;  %v6826_v8 = vld [vmem:[#allocation170_spill] sm:$0xff]  ;;  %v2444_v21 = vcombine.low %v4522_v52, %v6828_v26  ;;  %v2323_v14 = vrot.slane %v2316_v33, %v5664_v11  ;;  %v6833_v52 = vld [vmem:[#allocation136_spill] sm:$0xff]  ;;  %v1345_v7 = vpop.permute.xlu0 %1344  ;;  %v1347_v33 = vpop.permute.xlu1 %1346  ;;  %v6841_v18 = vld [vmem:[#allocation65_spill] sm:$0xff] }
 0x3d0   : > { %v2460_v42 = vcombine.low %v6827_v1, %v6826_v8  ;;  %v3069_v43 = vcombine.low %v2339_v36, %v2347_v16  ;;  %v1476_v55 = vcombine.low %v6829_v30, %v5720_v4  ;;  %v3059_v10 = vrot.slane %v3045_v27, %v4514_v38  ;;  %v6838_v16 = vld [vmem:[#allocation79_spill] sm:$0xff]  ;;  %v6844_v26 = vld [vmem:[#allocation92_spill] sm:$0xff]  ;;  %v6847_v30 = vld [vmem:[#allocation138_spill] sm:$0xff] }
 0x3d1   : > { %v2475_v19 = vrot.slane %v2468_v28, %v5664_v11  ;;  %v3019_v37 = vrot.slane %v1343_v20, %v4514_v38  ;;  %v3036_v49 = vcombine.low %v3028_v46, %v3035_v24  ;;  %v2459_v40 = vrot.slane %v2452_v58, %v5664_v11  ;;  %v6837_v24 = vld [vmem:[#allocation93_spill] sm:$0xff]  ;;  %v6839_v28 = vld [vmem:[#allocation172_spill] sm:$0xff]  ;;  %v6842_v34 = vld [vmem:[#allocation15_spill] sm:$0xff] }
 0x3d2   : > { %v1460_v50 = vcombine.low %v6831_v13, %v6830_v53  ;;  %v1468_v44 = vcombine.low %v6833_v52, %v6832_v29  ;;  %v3052_v0 = vrot.slane %v3044_v62, %v4514_v38  ;;  %v2467_v4 = vrot.slane %v2460_v42, %v5664_v11  ;;  %v6843_v36 = vld [vmem:[#allocation203_spill] sm:$0xff] }
 0x3d3   : > { %3621 = vperm.xlu1 %4288, %v2988_v35   ;;  %3618 = vperm.xlu0 %4287, %v2971_v22   ;;  %v3068_v22 = vcombine.low %v2323_v14, %v2331_v31  ;;  %v2451_v35 = vrot.slane %v2444_v21, %v5664_v11  ;;  %v1452_v6 = vcombine.low %v6835_v17, %v6834_v45  ;;  %v6845_v21 = vld [vmem:[#allocation78_spill] sm:$0xff]  ;;  %v1351_v52 = vpop.permute.xlu1 %1350 }
 0x3d4   : > { %v3083_v39 = vrot.slane %v3069_v43, %v4514_v38  ;;  %v1483_v9 = vrot.slane %v1476_v55, %v5664_v11  ;;  %v3093_v12 = vcombine.low %v2467_v4, %v2475_v19  ;;  %v1604_v25 = vcombine.low %v6836_v57, %v5726_v60  ;;  %v6846_v43 = vld [vmem:[#allocation171_spill] sm:$0xff]  ;;  %v6853_v57 = vld [vmem:[#allocation174_spill] sm:$0xff] }
 0x3d5   : > { %v3043_v56 = vrot.slane %v1345_v7, %v4514_v38  ;;  %v3060_v54 = vcombine.low %v3052_v0, %v3059_v10  ;;  %v3092_v23 = vcombine.low %v2451_v35, %v2459_v40  ;;  %v1467_v3 = vrot.slane %v1460_v50, %v5664_v11  ;;  %v1349_v10 = vpop.permute.xlu0 %1348  ;;  %v6849_v40 = vld [vmem:[#allocation13_spill] sm:$0xff]  ;;  %v6850_v7 = vld [vmem:[#allocation206_spill] sm:$0xff] }
 0x3d6   : > { %v1475_v61 = vrot.slane %v1468_v44, %v5664_v11  ;;  %v1588_v27 = vcombine.low %v6838_v16, %v6837_v24  ;;  %v3076_v51 = vrot.slane %v3068_v22, %v4514_v38  ;;  %v1459_v60 = vrot.slane %v1452_v6, %v5664_v11  ;;  %v6858_v24 = vld [vmem:[#allocation205_spill] sm:$0xff] }
 0x3d7   : > { %3627 = vperm.xlu1 %4288, %v3012_v47   ;;  %3624 = vperm.xlu0 %4287, %v2995_v5   ;;  %v6840_v5 = vld [vmem:[#allocation139_spill] sm:$0xff]  ;;  %v1580_v58 = vcombine.low %v6842_v34, %v6841_v18  ;;  %v1732_v20 = vcombine.low %v6843_v36, %v5724_v41  ;;  %v3107_v62 = vrot.slane %v3093_v12, %v4514_v38 }
 0x3d8   : > { %v1596_v47 = vcombine.low %v6840_v5, %v6839_v28  ;;  %v3117_v46 = vcombine.low %v1475_v61, %v1483_v9  ;;  %v1611_v31 = vrot.slane %v1604_v25, %v5664_v11  ;;  %v3067_v8 = vrot.slane %v1347_v33, %v4514_v38  ;;  %v6852_v9 = vld [vmem:[#allocation113_spill] sm:$0xff]  ;;  %v6857_v33 = vld [vmem:[#allocation220_spill] sm:$0xff] }
 0x3d9   : > { %v3084_v1 = vcombine.low %v3076_v51, %v3083_v39  ;;  %v3116_v42 = vcombine.low %v1459_v60, %v1467_v3  ;;  %v1716_v14 = vcombine.low %v6845_v21, %v6844_v26  ;;  %v1724_v55 = vcombine.low %v6847_v30, %v6846_v43  ;;  %v6851_v39 = vld [vmem:[#allocation120_spill] sm:$0xff]  ;;  %v6854_v25 = vld [vmem:[#allocation141_spill] sm:$0xff]  ;;  %v6864_v26 = vld [vmem:[#allocation10_spill] sm:$0xff] }
 0x3da   : > { %v3100_v19 = vrot.slane %v3092_v23, %v4514_v38  ;;  %v1603_v41 = vrot.slane %v1596_v47, %v5664_v11  ;;  %v1587_v13 = vrot.slane %v1580_v58, %v5664_v11  ;;  %v3131_v50 = vrot.slane %v3117_v46, %v4514_v38  ;;  %v6856_v23 = vld [vmem:[#allocation55_spill] sm:$0xff]  ;;  %v6859_v47 = vld [vmem:[#allocation52_spill] sm:$0xff]  ;;  %v6861_v58 = vld [vmem:[#allocation173_spill] sm:$0xff] }
 0x3db   : > { %3633 = vperm.xlu1 %4288, %v3036_v49   ;;  %3630 = vperm.xlu0 %4287, %v3019_v37   ;;  %v1595_v37 = vrot.slane %v1588_v27, %v5664_v11  ;;  %v6848_v49 = vld [vmem:[#allocation64_spill] sm:$0xff]  ;;  %v1739_v29 = vrot.slane %v1732_v20, %v5664_v11  ;;  %v1860_v0 = vcombine.low %v6850_v7, %v5730_v48  ;;  %v1353_v20 = vpop.permute.xlu0 %1352 }
 0x3dc   : > { %v1708_v53 = vcombine.low %v6849_v40, %v6848_v49  ;;  %v3141_v44 = vcombine.low %v1603_v41, %v1611_v31  ;;  %v3091_v22 = vrot.slane %v1349_v10, %v4514_v38  ;;  %v3108_v4 = vcombine.low %v3100_v19, %v3107_v62  ;;  %v6860_v60 = vld [vmem:[#allocation44_spill] sm:$0xff]  ;;  %v1355_v62 = vpop.permute.xlu1 %1354  ;;  %v6865_v10 = vld [vmem:[#allocation222_spill] sm:$0xff] }
 0x3dd   : > { %v3124_v35 = vrot.slane %v3116_v42, %v4514_v38  ;;  %v1723_v45 = vrot.slane %v1716_v14, %v5664_v11  ;;  %v1731_v17 = vrot.slane %v1724_v55, %v5664_v11  ;;  %v3140_v6 = vcombine.low %v1587_v13, %v1595_v37  ;;  %v6862_v46 = vld [vmem:[#allocation140_spill] sm:$0xff]  ;;  %v6863_v42 = vld [vmem:[#allocation37_spill] sm:$0xff] }
 0x3de   : > { %v1844_v12 = vcombine.low %v6852_v9, %v6851_v39  ;;  %v1715_v48 = vrot.slane %v1708_v53, %v5664_v11  ;;  %v1988_v16 = vcombine.low %v6858_v24, %v6857_v33  ;;  %v3155_v27 = vrot.slane %v3141_v44, %v4514_v38  ;;  %v6866_v19 = vld [vmem:[#allocation208_spill] sm:$0xff]  ;;  %v6873_v39 = vld [vmem:[#allocation221_spill] sm:$0xff]  ;;  %v6874_v9 = vld [vmem:[#allocation207_spill] sm:$0xff] }
 0x3df   : > { %3639 = vperm.xlu1 %4288, %v3060_v54   ;;  %3636 = vperm.xlu0 %4287, %v3043_v56   ;;  %v1852_v56 = vcombine.low %v6854_v25, %v6853_v57  ;;  %v6855_v54 = vld [vmem:[#allocation106_spill] sm:$0xff]  ;;  %v3165_v61 = vcombine.low %v1731_v17, %v1739_v29  ;;  %v1867_v51 = vrot.slane %v1860_v0, %v5664_v11  ;;  %v6868_v29 = vld [vmem:[#allocation81_spill] sm:$0xff]  ;;  %v6869_v7 = vld [vmem:[#allocation176_spill] sm:$0xff] }
 0x3e0   : > { %v1836_v3 = vcombine.low %v6856_v23, %v6855_v54  ;;  %v3115_v28 = vrot.slane %v1351_v52, %v4514_v38  ;;  %v3132_v5 = vcombine.low %v3124_v35, %v3131_v50  ;;  %v1972_v18 = vcombine.low %v6860_v60, %v6859_v47  ;;  %v6867_v50 = vld [vmem:[#allocation95_spill] sm:$0xff]  ;;  %v1359_v57 = vpop.permute.xlu1 %1358  ;;  %v6879_v60 = vld [vmem:[#allocation66_spill] sm:$0xff] }
 0x3e1   : > { %v3164_v34 = vcombine.low %v1715_v48, %v1723_v45  ;;  %v1980_v36 = vcombine.low %v6862_v46, %v6861_v58  ;;  %v3148_v31 = vrot.slane %v3140_v6, %v4514_v38  ;;  %v1964_v21 = vcombine.low %v6864_v26, %v6863_v42  ;;  %v6870_v0 = vld [vmem:[#allocation143_spill] sm:$0xff]  ;;  %v6872_v45 = vld [vmem:[#allocation16_spill] sm:$0xff] }
 0x3e2   : > { %v1843_v14 = vrot.slane %v1836_v3, %v5664_v11  ;;  %v3179_v43 = vrot.slane %v3165_v61, %v4514_v38  ;;  %v1995_v30 = vrot.slane %v1988_v16, %v5664_v11  ;;  %v2116_v37 = vcombine.low %v6866_v19, %v6865_v10  ;;  %v6871_v35 = vld [vmem:[#allocation67_spill] sm:$0xff]  ;;  %v6875_v3 = vld [vmem:[#allocation94_spill] sm:$0xff]  ;;  %v6876_v61 = vld [vmem:[#allocation80_spill] sm:$0xff] }
 0x3e3   : > { %3645 = vperm.xlu1 %4288, %v3084_v1   ;;  %3642 = vperm.xlu0 %4287, %v3067_v8   ;;  %v1851_v8 = vrot.slane %v1844_v12, %v5664_v11  ;;  %v1859_v1 = vrot.slane %v1852_v56, %v5664_v11  ;;  %v3139_v41 = vrot.slane %v1353_v20, %v4514_v38  ;;  %v6877_v24 = vld [vmem:[#allocation175_spill] sm:$0xff]  ;;  %v6878_v16 = vld [vmem:[#allocation142_spill] sm:$0xff] }
 0x3e4   : > { %v3156_v49 = vcombine.low %v3148_v31, %v3155_v27  ;;  %v1979_v40 = vrot.slane %v1972_v18, %v5664_v11  ;;  %v3172_v53 = vrot.slane %v3164_v34, %v4514_v38  ;;  %v1987_v13 = vrot.slane %v1980_v36, %v5664_v11  ;;  %v6880_v18 = vld [vmem:[#allocation14_spill] sm:$0xff] }
 0x3e5   : > { %v3189_v55 = vcombine.low %v1859_v1, %v1867_v51  ;;  %v2100_v52 = vcombine.low %v6868_v29, %v6867_v50  ;;  %v3188_v44 = vcombine.low %v1843_v14, %v1851_v8  ;;  %v2092_v17 = vcombine.low %v6872_v45, %v6871_v35  ;;  %v1357_v51 = vpop.permute.xlu0 %1356  ;;  %v1363_v14 = vpop.permute.xlu1 %1362  ;;  %v6884_v19 = vld [vmem:[#allocation178_spill] sm:$0xff]  ;;  %v6888_v50 = vld [vmem:[#allocation223_spill] sm:$0xff]  ;;  %v6889_v29 = vld [vmem:[#allocation209_spill] sm:$0xff] }
 0x3e6   : > { %v3213_v6 = vcombine.low %v1987_v13, %v1995_v30  ;;  %v2244_v12 = vcombine.low %v6874_v9, %v6873_v39  ;;  %v2123_v56 = vrot.slane %v2116_v37, %v5664_v11  ;;  %v3163_v48 = vrot.slane %v1355_v62, %v4514_v38  ;;  %v6881_v62 = vld [vmem:[#allocation210_spill] sm:$0xff]  ;;  %v6882_v30 = vld [vmem:[#allocation121_spill] sm:$0xff]  ;;  %v6893_v39 = vld [vmem:[#allocation144_spill] sm:$0xff] }
 0x3e7   : > { %3651 = vperm.xlu1 %4288, %v3108_v4   ;;  %3648 = vperm.xlu0 %4287, %v3091_v22   ;;  %v2108_v22 = vcombine.low %v6870_v0, %v6869_v7  ;;  %v1971_v4 = vrot.slane %v1964_v21, %v5664_v11  ;;  %v3203_v25 = vrot.slane %v3189_v55, %v4514_v38  ;;  %v6883_v55 = vld [vmem:[#allocation115_spill] sm:$0xff]  ;;  %v6885_v37 = vld [vmem:[#allocation145_spill] sm:$0xff]  ;;  %v6891_v35 = vld [vmem:[#allocation26_spill] sm:$0xff] }
 0x3e8   : > { %v3180_v54 = vcombine.low %v3172_v53, %v3179_v43  ;;  %v2228_v33 = vcombine.low %v6876_v61, %v6875_v3  ;;  %v2236_v27 = vcombine.low %v6878_v16, %v6877_v24  ;;  %v2220_v34 = vcombine.low %v6880_v18, %v6879_v60  ;;  %v6898_v18 = vld [vmem:[#allocation54_spill] sm:$0xff] }
 0x3e9   : > { %v3212_v23 = vcombine.low %v1971_v4, %v1979_v40  ;;  %v2115_v47 = vrot.slane %v2108_v22, %v5664_v11  ;;  %v2099_v58 = vrot.slane %v2092_v17, %v5664_v11  ;;  %v3227_v46 = vrot.slane %v3213_v6, %v4514_v38  ;;  %v6887_v40 = vld [vmem:[#allocation57_spill] sm:$0xff]  ;;  %v6890_v4 = vld [vmem:[#allocation30_spill] sm:$0xff]  ;;  %v6136_v24 = vpop.permute.xlu1 %1366 }
 0x3ea   : > { %v2251_v36 = vrot.slane %v2244_v12, %v5664_v11  ;;  %v2372_v31 = vcombine.low %v6881_v62, %v5738_v63  ;;  %v3187_v8 = vrot.slane %v1357_v51, %v4514_v38  ;;  %v2235_v26 = vrot.slane %v2228_v33, %v5664_v11  ;;  %v6892_v6 = vld [vmem:[#allocation177_spill] sm:$0xff]  ;;  %v1361_v12 = vpop.permute.xlu0 %1360  ;;  %v6897_v51 = vld [vmem:[#allocation212_spill] sm:$0xff] }
 0x3eb   : > { %3657 = vperm.xlu1 %4288, %v3132_v5   ;;  %3654 = vperm.xlu0 %4287, %v3115_v28   ;;  %v2107_v28 = vrot.slane %v2100_v52, %v5664_v11  ;;  %v3196_v5 = vrot.slane %v3188_v44, %v4514_v38  ;;  %v3237_v20 = vcombine.low %v2115_v47, %v2123_v56  ;;  %v6900_v62 = vld [vmem:[#allocation180_spill] sm:$0xff] }
 0x3ec   : > { %v3220_v42 = vrot.slane %v3212_v23, %v4514_v38  ;;  %v2243_v21 = vrot.slane %v2236_v27, %v5664_v11  ;;  %v2356_v10 = vcombine.low %v6883_v55, %v6882_v30  ;;  %v2227_v63 = vrot.slane %v2220_v34, %v5664_v11  ;;  %v6895_v23 = vld [vmem:[#allocation7_spill] sm:$0xff]  ;;  %v6896_v27 = vld [vmem:[#allocation225_spill] sm:$0xff]  ;;  %v6904_v30 = vld [vmem:[#allocation224_spill] sm:$0xff] }
 0x3ed   : > { %v3204_v1 = vcombine.low %v3196_v5, %v3203_v25  ;;  %v3236_v43 = vcombine.low %v2099_v58, %v2107_v28  ;;  %v2500_v52 = vcombine.low %v6889_v29, %v6888_v50  ;;  %v3251_v44 = vrot.slane %v3237_v20, %v4514_v38  ;;  %v6899_v34 = vld [vmem:[#allocation45_spill] sm:$0xff]  ;;  %v6905_v55 = vld [vmem:[#allocation211_spill] sm:$0xff] }
 0x3ee   : > { %v3261_v13 = vcombine.low %v2243_v21, %v2251_v36  ;;  %v2379_v7 = vrot.slane %v2372_v31, %v5664_v11  ;;  %v3211_v0 = vrot.slane %v1359_v57, %v4514_v38  ;;  %v3228_v22 = vcombine.low %v3220_v42, %v3227_v46  ;;  %v6901_v31 = vld [vmem:[#allocation147_spill] sm:$0xff]  ;;  %v6902_v42 = vld [vmem:[#allocation38_spill] sm:$0xff] }
 0x3ef   : > { %3663 = vperm.xlu1 %4288, %v3156_v49   ;;  %3660 = vperm.xlu0 %4287, %v3139_v41   ;;  %v2364_v41 = vcombine.low %v6885_v37, %v6884_v19  ;;  %v6886_v49 = vld [vmem:[#allocation108_spill] sm:$0xff]  ;;  %v2484_v45 = vcombine.low %v6891_v35, %v6890_v4  ;;  %v3260_v17 = vcombine.low %v2227_v63, %v2235_v26  ;;  %v6903_v26 = vld [vmem:[#allocation11_spill] sm:$0xff]  ;;  %v1365_v19 = vpop.permute.xlu0 %1364 }
 0x3f0   : > { %v2348_v53 = vcombine.low %v6887_v40, %v6886_v49  ;;  %v2492_v9 = vcombine.low %v6893_v39, %v6892_v6  ;;  %v3244_v25 = vrot.slane %v3236_v43, %v4514_v38  ;;  %v2363_v56 = vrot.slane %v2356_v10, %v5664_v11  ;;  %v6908_v29 = vld [vmem:[#allocation179_spill] sm:$0xff]  ;;  %v6910_v35 = vld [vmem:[#allocation68_spill] sm:$0xff] }
 0x3f1   : > { %v3275_v61 = vrot.slane %v3261_v13, %v4514_v38  ;;  %v2507_v33 = vrot.slane %v2500_v52, %v5664_v11  ;;  %v1508_v28 = vcombine.low %v6897_v51, %v6896_v27  ;;  %v3235_v5 = vrot.slane %v1361_v12, %v4514_v38  ;;  %v6907_v13 = vld [vmem:[#allocation82_spill] sm:$0xff] }
 0x3f2   : > { %v2355_v3 = vrot.slane %v2348_v53, %v5664_v11  ;;  %v3252_v47 = vcombine.low %v3244_v25, %v3251_v44  ;;  %v2491_v60 = vrot.slane %v2484_v45, %v5664_v11  ;;  %v1492_v58 = vcombine.low %v6899_v34, %v6898_v18  ;;  %v6906_v53 = vld [vmem:[#allocation96_spill] sm:$0xff]  ;;  %v6909_v52 = vld [vmem:[#allocation146_spill] sm:$0xff]  ;;  %v6911_v45 = vld [vmem:[#allocation17_spill] sm:$0xff] }
 0x3f3   : > { %3669 = vperm.xlu1 %4288, %v3180_v54   ;;  %3666 = vperm.xlu0 %4287, %v3163_v48   ;;  %v2371_v48 = vrot.slane %v2364_v41, %v5664_v11  ;;  %v6894_v54 = vld [vmem:[#allocation22_spill] sm:$0xff]  ;;  %v2499_v46 = vrot.slane %v2492_v9, %v5664_v11  ;;  %v3268_v36 = vrot.slane %v3260_v17, %v4514_v38 }
 0x3f4   : > { %v2476_v57 = vcombine.low %v6895_v23, %v6894_v54  ;;  %v3284_v20 = vcombine.low %v2355_v3, %v2363_v56  ;;  %v1484_v21 = vcombine.low %v6903_v26, %v6902_v42  ;;  %v1636_v10 = vcombine.low %v6905_v55, %v6904_v30  ;;  %v6912_v12 = vld [vmem:[#allocation214_spill] sm:$0xff]  ;;  %v1369_v3 = vpop.permute.xlu0 %1368 }
 0x3f5   : > { %v3285_v16 = vcombine.low %v2371_v48, %v2379_v7  ;;  %v3309_v43 = vcombine.low %v2499_v46, %v2507_v33  ;;  %v1515_v41 = vrot.slane %v1508_v28, %v5664_v11  ;;  %v3259_v63 = vrot.slane %v1363_v14, %v4514_v38  ;;  %v6161_v7 = vpop.permute.xlu1 %1370  ;;  %v6913_v33 = vld [vmem:[#allocation97_spill] sm:$0xff]  ;;  %v6915_v51 = vld [vmem:[#allocation182_spill] sm:$0xff] }
 0x3f6   : > { %v3276_v49 = vcombine.low %v3268_v36, %v3275_v61  ;;  %v1499_v40 = vrot.slane %v1492_v58, %v5664_v11  ;;  %v1620_v50 = vcombine.low %v6907_v13, %v6906_v53  ;;  %v1628_v44 = vcombine.low %v6909_v52, %v6908_v29  ;;  %v6916_v28 = vld [vmem:[#allocation149_spill] sm:$0xff]  ;;  %v6919_v58 = vld [vmem:[#allocation226_spill] sm:$0xff]  ;;  %v6927_v52 = vld [vmem:[#allocation216_spill] sm:$0xff] }
 0x3f7   : > { %3675 = vperm.xlu1 %4288, %v3204_v1   ;;  %3672 = vperm.xlu0 %4287, %v3187_v8   ;;  %v1500_v8 = vcombine.low %v6901_v31, %v6900_v62  ;;  %v2483_v1 = vrot.slane %v2476_v57, %v5664_v11  ;;  %v3299_v37 = vrot.slane %v3285_v16, %v4514_v38  ;;  %v6914_v16 = vld [vmem:[#allocation83_spill] sm:$0xff]  ;;  %v6920_v46 = vld [vmem:[#allocation213_spill] sm:$0xff] }
 0x3f8   : > { %v1491_v14 = vrot.slane %v1484_v21, %v5664_v11  ;;  %v1612_v17 = vcombine.low %v6911_v45, %v6910_v35  ;;  %v3323_v6 = vrot.slane %v3309_v43, %v4514_v38  ;;  %v1643_v39 = vrot.slane %v1636_v10, %v5664_v11  ;;  %v6921_v21 = vld [vmem:[#allocation181_spill] sm:$0xff]  ;;  %v6922_v43 = vld [vmem:[#allocation148_spill] sm:$0xff] }
 0x3f9   : > { %v1507_v4 = vrot.slane %v1500_v8, %v5664_v11  ;;  %v1764_v25 = vcombine.low %v6912_v12, %v5752_v15  ;;  %v3283_v56 = vrot.slane %v1365_v19, %v4514_v38  ;;  %v1627_v23 = vrot.slane %v1620_v50, %v5664_v11  ;;  %v6923_v10 = vld [vmem:[#allocation117_spill] sm:$0xff]  ;;  %v6924_v19 = vld [vmem:[#allocation110_spill] sm:$0xff]  ;;  %v1373_v50 = vpop.permute.xlu0 %1372  ;;  %v6930_v12 = vld [vmem:[#allocation184_spill] sm:$0xff] }
 0x3fa   : > { %v3332_v54 = vcombine.low %v1491_v14, %v1499_v40  ;;  %v1635_v57 = vrot.slane %v1628_v44, %v5664_v11  ;;  %v1748_v27 = vcombine.low %v6914_v16, %v6913_v33  ;;  %v1619_v15 = vrot.slane %v1612_v17, %v5664_v11  ;;  %v6929_v14 = vld [vmem:[#allocation46_spill] sm:$0xff] }
 0x3fb   : > { %3681 = vperm.xlu1 %4288, %v3228_v22   ;;  %3678 = vperm.xlu0 %4287, %v3211_v0   ;;  %v3308_v0 = vcombine.low %v2483_v1, %v2491_v60  ;;  %v3292_v22 = vrot.slane %v3284_v20, %v4514_v38  ;;  %v3333_v9 = vcombine.low %v1507_v4, %v1515_v41  ;;  %v6918_v60 = vld [vmem:[#allocation18_spill] sm:$0xff]  ;;  %v6185_v20 = vpop.permute.xlu1 %1374  ;;  %v6928_v4 = vld [vmem:[#allocation56_spill] sm:$0xff] }
 0x3fc   : > { %v3357_v34 = vcombine.low %v1635_v57, %v1643_v39  ;;  %v1892_v36 = vcombine.low %v6920_v46, %v6919_v58  ;;  %v1771_v31 = vrot.slane %v1764_v25, %v5664_v11  ;;  %v3307_v8 = vrot.slane %v6136_v24, %v4514_v38  ;;  %v6926_v24 = vld [vmem:[#allocation50_spill] sm:$0xff]  ;;  %v6931_v25 = vld [vmem:[#allocation151_spill] sm:$0xff] }
 0x3fd   : > { %v3300_v48 = vcombine.low %v3292_v22, %v3299_v37  ;;  %v3316_v61 = vrot.slane %v3308_v0, %v4514_v38  ;;  %v3347_v62 = vrot.slane %v3333_v9, %v4514_v38  ;;  %v3340_v42 = vrot.slane %v3332_v54, %v4514_v38  ;;  %v1377_v58 = vpop.permute.xlu0 %1376 }
 0x3fe   : > { %v3356_v26 = vcombine.low %v1619_v15, %v1627_v23  ;;  %v1884_v30 = vcombine.low %v6922_v43, %v6921_v21  ;;  %v1755_v55 = vrot.slane %v1748_v27, %v5664_v11  ;;  %v1876_v37 = vcombine.low %v6924_v19, %v6923_v10  ;;  %v6936_v15 = vld [vmem:[#allocation84_spill] sm:$0xff]  ;;  %v6941_v43 = vld [vmem:[#allocation218_spill] sm:$0xff] }
 0x3ff   : > { %3687 = vperm.xlu1 %4288, %v3252_v47   ;;  %3684 = vperm.xlu0 %4287, %v3235_v5   ;;  %v1756_v5 = vcombine.low %v6916_v28, %v6915_v51  ;;  %v6917_v47 = vld [vmem:[#allocation69_spill] sm:$0xff]  ;;  %v3324_v1 = vcombine.low %v3316_v61, %v3323_v6  ;;  %v3371_v53 = vrot.slane %v3357_v34, %v4514_v38  ;;  %v6210_v6 = vpop.permute.xlu1 %1378 }
 0x400   : > { %v1740_v18 = vcombine.low %v6918_v60, %v6917_v47  ;;  %v1899_v13 = vrot.slane %v1892_v36, %v5664_v11  ;;  %v2020_v44 = vcombine.low %v6927_v52, %v5769_v32  ;;  %v3331_v0 = vrot.slane %v1369_v3, %v4514_v38  ;;  %v6932_v32 = vld [vmem:[#allocation39_spill] sm:$0xff] }
 0x401   : > { %v1763_v41 = vrot.slane %v1756_v5, %v5664_v11  ;;  %v3348_v22 = vcombine.low %v3340_v42, %v3347_v62  ;;  %v2004_v35 = vcombine.low %v6929_v14, %v6928_v4  ;;  %v3364_v45 = vrot.slane %v3356_v26, %v4514_v38  ;;  %v6934_v3 = vld [vmem:[#allocation215_spill] sm:$0xff]  ;;  %v6935_v5 = vld [vmem:[#allocation98_spill] sm:$0xff]  ;;  %v6949_v4 = vld [vmem:[#allocation217_spill] sm:$0xff] }
 0x402   : > { %v1891_v17 = vrot.slane %v1884_v30, %v5664_v11  ;;  %v1883_v9 = vrot.slane %v1876_v37, %v5664_v11  ;;  %v2148_v61 = vcombine.low %v6934_v3, %v5754_v2  ;;  %v2027_v16 = vrot.slane %v2020_v44, %v5664_v11  ;;  %v6937_v60 = vld [vmem:[#allocation183_spill] sm:$0xff]  ;;  %v6953_v3 = vld [vmem:[#allocation112_spill] sm:$0xff] }
 0x403   : > { %3693 = vperm.xlu1 %4288, %v3276_v49   ;;  %3690 = vperm.xlu0 %4287, %v3259_v63   ;;  %v1747_v63 = vrot.slane %v1740_v18, %v5664_v11  ;;  %v6925_v49 = vld [vmem:[#allocation103_spill] sm:$0xff]  ;;  %v3381_v29 = vcombine.low %v1763_v41, %v1771_v31  ;;  %v3355_v27 = vrot.slane %v6161_v7, %v4514_v38  ;;  %v6938_v18 = vld [vmem:[#allocation150_spill] sm:$0xff]  ;;  %v6236_v26 = vpop.permute.xlu1 %1382 }
 0x404   : > { %v1868_v40 = vcombine.low %v6926_v24, %v6925_v49  ;;  %v3405_v57 = vcombine.low %v1891_v17, %v1899_v13  ;;  %v3372_v51 = vcombine.low %v3364_v45, %v3371_v53  ;;  %v2011_v28 = vrot.slane %v2004_v35, %v5664_v11  ;;  %v6939_v7 = vld [vmem:[#allocation70_spill] sm:$0xff]  ;;  %v6940_v31 = vld [vmem:[#allocation19_spill] sm:$0xff]  ;;  %v6943_v49 = vld [vmem:[#allocation85_spill] sm:$0xff]  ;;  %v1381_v35 = vpop.permute.xlu0 %1380 }
 0x405   : > { %v3380_v39 = vcombine.low %v1747_v63, %v1755_v55  ;;  %v3395_v33 = vrot.slane %v3381_v29, %v4514_v38  ;;  %v2132_v47 = vcombine.low %v6936_v15, %v6935_v5  ;;  %v2140_v34 = vcombine.low %v6938_v18, %v6937_v60  ;;  %v6942_v63 = vld [vmem:[#allocation99_spill] sm:$0xff]  ;;  %v6944_v53 = vld [vmem:[#allocation186_spill] sm:$0xff]  ;;  %v6945_v13 = vld [vmem:[#allocation153_spill] sm:$0xff] }
 0x406   : > { %v1875_v23 = vrot.slane %v1868_v40, %v5664_v11  ;;  %v2155_v42 = vrot.slane %v2148_v61, %v5664_v11  ;;  %v2276_v30 = vcombine.low %v6941_v43, %v5788_v59  ;;  %v3379_v55 = vrot.slane %v1373_v50, %v4514_v38  ;;  %v6946_v52 = vld [vmem:[#allocation71_spill] sm:$0xff]  ;;  %v6947_v50 = vld [vmem:[#allocation20_spill] sm:$0xff] }
 0x407   : > { %3699 = vperm.xlu1 %4288, %v3300_v48   ;;  %3696 = vperm.xlu0 %4287, %v3283_v56   ;;  %v2012_v56 = vcombine.low %v6931_v25, %v6930_v12  ;;  %v6933_v48 = vld [vmem:[#allocation12_spill] sm:$0xff]  ;;  %v3388_v46 = vrot.slane %v3380_v39, %v4514_v38  ;;  %v2139_v37 = vrot.slane %v2132_v47, %v5664_v11  ;;  %v6957_v60 = vld [vmem:[#allocation219_spill] sm:$0xff] }
 0x408   : > { %v1996_v54 = vcombine.low %v6933_v48, %v6932_v32  ;;  %v3404_v2 = vcombine.low %v1875_v23, %v1883_v9  ;;  %v2147_v41 = vrot.slane %v2140_v34, %v5664_v11  ;;  %v2260_v24 = vcombine.low %v6943_v49, %v6942_v63  ;;  %v6951_v32 = vld [vmem:[#allocation152_spill] sm:$0xff]  ;;  %v6960_v43 = vld [vmem:[#allocation187_spill] sm:$0xff] }
 0x409   : > { %v2019_v36 = vrot.slane %v2012_v56, %v5664_v11  ;;  %v3396_v10 = vcombine.low %v3388_v46, %v3395_v33  ;;  %v2268_v29 = vcombine.low %v6945_v13, %v6944_v53  ;;  %v2252_v44 = vcombine.low %v6947_v50, %v6946_v52  ;;  %v6950_v56 = vld [vmem:[#allocation185_spill] sm:$0xff]  ;;  %v6956_v47 = vld [vmem:[#allocation156_spill] sm:$0xff] }
 0x40a   : > { %v2003_v62 = vrot.slane %v1996_v54, %v5664_v11  ;;  %v3412_v40 = vrot.slane %v3404_v2, %v4514_v38  ;;  %v2283_v17 = vrot.slane %v2276_v30, %v5664_v11  ;;  %v3403_v39 = vrot.slane %v6185_v20, %v4514_v38  ;;  %v6260_v54 = vpop.permute.xlu1 %1386  ;;  %v6958_v2 = vld [vmem:[#allocation32_spill] sm:$0xff]  ;;  %v6961_v30 = vld [vmem:[#allocation154_spill] sm:$0xff] }
 0x40b   : > { %3705 = vperm.xlu1 %4288, %v3324_v1   ;;  %3702 = vperm.xlu0 %4287, %v3307_v8   ;;  %v2124_v8 = vcombine.low %v6940_v31, %v6939_v7  ;;  %v3419_v1 = vrot.slane %v3405_v57, %v4514_v38  ;;  %v3429_v21 = vcombine.low %v2019_v36, %v2027_v16  ;;  %v6952_v57 = vld [vmem:[#allocation119_spill] sm:$0xff]  ;;  %v6954_v16 = vld [vmem:[#allocation105_spill] sm:$0xff] }
 0x40c   : > { %v3428_v19 = vcombine.low %v2003_v62, %v2011_v28  ;;  %v2396_v48 = vcombine.low %v6951_v32, %v6950_v56  ;;  %v2267_v23 = vrot.slane %v2260_v24, %v5664_v11  ;;  %v2388_v61 = vcombine.low %v6953_v3, %v6952_v57  ;;  %v6959_v36 = vld [vmem:[#allocation29_spill] sm:$0xff] }
 0x40d   : > { %v2131_v59 = vrot.slane %v2124_v8, %v5664_v11  ;;  %v3443_v45 = vrot.slane %v3429_v21, %v4514_v38  ;;  %v3420_v9 = vcombine.low %v3412_v40, %v3419_v1  ;;  %v2275_v33 = vrot.slane %v2268_v29, %v5664_v11  ;;  %v1385_v8 = vpop.permute.xlu0 %1384 }
 0x40e   : > { %v3436_v12 = vrot.slane %v3428_v19, %v4514_v38  ;;  %v2259_v20 = vrot.slane %v2252_v44, %v5664_v11  ;;  %v2532_v18 = vcombine.low %v6957_v60, %v6956_v47  ;;  %v3427_v34 = vrot.slane %v1377_v58, %v4514_v38  ;;  %v6962_v58 = vld [vmem:[#allocation25_spill] sm:$0xff] }
 0x40f   : > { %3711 = vperm.xlu1 %4288, %v3348_v22   ;;  %3708 = vperm.xlu0 %4287, %v3331_v0   ;;  %v3453_v0 = vcombine.low %v2147_v41, %v2155_v42  ;;  %v6948_v22 = vld [vmem:[#allocation227_spill] sm:$0xff]  ;;  %v3452_v25 = vcombine.low %v2131_v59, %v2139_v37  ;;  %v3477_v15 = vcombine.low %v2275_v33, %v2283_v17 }
 0x410   : > { %v2404_v14 = vcombine.low %v6949_v4, %v6948_v22  ;;  %v3444_v46 = vcombine.low %v3436_v12, %v3443_v45  ;;  %v2516_v62 = vcombine.low %v6959_v36, %v6958_v2  ;;  %v2403_v31 = vrot.slane %v2396_v48, %v5664_v11 }
 0x411   : > { %v3467_v28 = vrot.slane %v3453_v0, %v4514_v38  ;;  %v3460_v7 = vrot.slane %v3452_v25, %v4514_v38  ;;  %v3476_v42 = vcombine.low %v2259_v20, %v2267_v23  ;;  %v2395_v21 = vrot.slane %v2388_v61, %v5664_v11  ;;  %v6291_v13 = vpop.permute.xlu0 %3549 }
 0x412   : > { %v2411_v5 = vrot.slane %v2404_v14, %v5664_v11  ;;  %v3491_v63 = vrot.slane %v3477_v15, %v4514_v38  ;;  %v2539_v49 = vrot.slane %v2532_v18, %v5664_v11  ;;  %v3451_v24 = vrot.slane %v6210_v6, %v4514_v38 }
 0x413   : > { %3717 = vperm.xlu1 %4288, %v3372_v51   ;;  %3714 = vperm.xlu0 %4287, %v3355_v27   ;;  %v6955_v27 = vld [vmem:[#allocation53_spill] sm:$0xff]  ;;  %v3468_v40 = vcombine.low %v3460_v7, %v3467_v28  ;;  %v2523_v53 = vrot.slane %v2516_v62, %v5664_v11  ;;  %v3484_v59 = vrot.slane %v3476_v42, %v4514_v38  ;;  %v6964_v48 = vlaneseq }
 0x414   : > { %v2380_v51 = vcombine.low %v6955_v27, %v6954_v16  ;;  %v3501_v41 = vcombine.low %v2403_v31, %v2411_v5  ;;  %v3475_v6 = vrot.slane %v1381_v35, %v4514_v38  ;;  %v3499_v12 = vrot.slane %v6236_v26, %v4514_v38  ;;  %v6965_v27 = vld [vmem:[#allocation6_spill] sm:$0xff] }
 0x415   : > { %v3492_v4 = vcombine.low %v3484_v59, %v3491_v63  ;;  %v3523_v35 = vrot.slane %v1385_v8, %v4514_v38  ;;  %v3765_v23 = vand.u32 127, %v6964_v48  ;;  %v3547_v26 = vrot.slane %v6260_v54, %v4514_v38 }
 0x416   : > { %v2387_v37 = vrot.slane %v2380_v51, %v5664_v11  ;;  %v3515_v0 = vrot.slane %v3501_v41, %v4514_v38 }
 0x417   : > { %3723 = vperm.xlu1 %4288, %v3396_v10   ;;  %3720 = vperm.xlu0 %4287, %v3379_v55   ;;  %v2524_v55 = vcombine.low %v6961_v30, %v6960_v43  ;;  %v6963_v10 = vld [vmem:[#allocation8_spill] sm:$0xff]  ;;  %v3770_v33 = vadd.s32 4294967288, %v3765_v23  ;;  %v6313_v28 = vsub.s32 %v3765_v23, %v6965_v27 }
 0x418   : > { %v2508_v19 = vcombine.low %v6963_v10, %v6962_v58  ;;  %v3500_v52 = vcombine.low %v2387_v37, %v2395_v21 }
 0x419   : > { %v2531_v50 = vrot.slane %v2524_v55, %v5664_v11  ;;  %v6310_v51 = vsub.s32 %v3770_v33, %v6965_v27  ;;  %v3769_v2 = vrot.slane %v6291_v13, %v6313_v28 }
 0x41a   : > { %v2515_v44 = vrot.slane %v2508_v19, %v5664_v11 }
 0x41b   : > { %3729 = vperm.xlu1 %4288, %v3420_v9   ;;  %3726 = vperm.xlu0 %4287, %v3403_v39   ;;  %v3525_v22 = vcombine.low %v2531_v50, %v2539_v49  ;;  %v3508_v39 = vrot.slane %v3500_v52, %v4514_v38 }
 0x41c   : > { %v3524_v17 = vcombine.low %v2515_v44, %v2523_v53 }
 0x41d   : > { %v3539_v9 = vrot.slane %v3525_v22, %v4514_v38  ;;  %v3516_v25 = vcombine.low %v3508_v39, %v3515_v0 }
 0x41e   : > { %v6278_v1 = vpop.permute.xlu1 %3552  ;;  %v3532_v32 = vrot.slane %v3524_v17, %v4514_v38 }
 0x41f   : > { %3735 = vperm.xlu1 %4288, %v3444_v46   ;;  %3732 = vperm.xlu0 %4287, %v3427_v34   ;;  %v3774_v38 = vrot.slane %v6278_v1, %v6310_v51 }
 0x420   : > { %v3540_v57 = vcombine.low %v3532_v32, %v3539_v9 }
 0x421   : > { %v3776_v21 = vsel %vm3775_vm6, %v3774_v38, %v3769_v2 }
 0x422   : > { %v3556_v29 = vpop.permute.xlu1 %3555 }
 0x423   : > { %3741 = vperm.xlu1 %4288, %v3468_v40   ;;  %3738 = vperm.xlu0 %4287, %v3451_v24   ;;  %v3780_v54 = vrot.slane %v3556_v29, %v6313_v28 }
 0x426   : > { %v3562_v14 = vpop.permute.xlu1 %3561  ;;  %v3559_v45 = vpop.permute.xlu0 %3558 }
 0x427   : > { %3747 = vperm.xlu1 %4288, %v3492_v4   ;;  %3744 = vperm.xlu0 %4287, %v3475_v6   ;;  %v3784_v5 = vrot.slane %v3559_v45, %v6310_v51  ;;  %v3789_v34 = vrot.slane %v3562_v14, %v6313_v28 }
 0x429   : > { %v3785_v36 = vsel %vm3775_vm6, %v3784_v5, %v3780_v54 }
 0x42a   : > { %v3568_v11 = vpop.permute.xlu1 %3567  ;;  %v3565_v56 = vpop.permute.xlu0 %3564  ;;  %v4093_v58 = vsel %vm4092_vm7, %v3785_v36, %v3776_v21 }
 0x42b   : > { %3753 = vperm.xlu1 %4288, %v3516_v25   ;;  %3750 = vperm.xlu0 %4287, %v3499_v12   ;;  %v3793_v15 = vrot.slane %v3565_v56, %v6310_v51  ;;  %v3798_v62 = vrot.slane %v3568_v11, %v6313_v28 }
 0x42d   : > { %v3794_v31 = vsel %vm3775_vm6, %v3793_v15, %v3789_v34 }
 0x42e   : > { %v3574_v3 = vpop.permute.xlu1 %3573  ;;  %v3571_v61 = vpop.permute.xlu0 %3570  ;;  %v4095_v37 = vsel %vm4094_vm8, %v3794_v31, %v4093_v58 }
 0x42f   : > { %3759 = vperm.xlu1 %4288, %v3540_v57   ;;  %3756 = vperm.xlu0 %4287, %v3523_v35   ;;  %v3802_v18 = vrot.slane %v3571_v61, %v6310_v51  ;;  %v3807_v8 = vrot.slane %v3574_v3, %v6313_v28 }
 0x431   : > { %v3803_v43 = vsel %vm3775_vm6, %v3802_v18, %v3798_v62 }
 0x432   : > { %v3580_v20 = vpop.permute.xlu1 %3579  ;;  %v3577_v16 = vpop.permute.xlu0 %3576  ;;  %v4097_v63 = vsel %vm4096_vm9, %v3803_v43, %v4095_v37 }
 0x433   : > { %3762 = vperm.xlu0 %4287, %v3547_v26   ;;  %v3811_v46 = vrot.slane %v3577_v16, %v6310_v51  ;;  %v3816_v30 = vrot.slane %v3580_v20, %v6313_v28 }
 0x435   : > { %v3812_v10 = vsel %vm3775_vm6, %v3811_v46, %v3807_v8 }
 0x436   : > { %v3586_v47 = vpop.permute.xlu1 %3585  ;;  %v3583_v60 = vpop.permute.xlu0 %3582  ;;  %v4099_v53 = vsel %vm4098_vm10, %v3812_v10, %v4097_v63 }
 0x437   : > { %v3820_v7 = vrot.slane %v3583_v60, %v6310_v51  ;;  %v3825_v19 = vrot.slane %v3586_v47, %v6313_v28 }
 0x439   : > { %v3821_v41 = vsel %vm3775_vm6, %v3820_v7, %v3816_v30 }
 0x43a   : > { %v3592_v1 = vpop.permute.xlu1 %3591  ;;  %v3589_v42 = vpop.permute.xlu0 %3588  ;;  %v4101_v59 = vsel %vm4100_vm11, %v3821_v41, %v4099_v53 }
 0x43b   : > { %v3829_v55 = vrot.slane %v3589_v42, %v6310_v51  ;;  %v3834_v13 = vrot.slane %v3592_v1, %v6313_v28 }
 0x43d   : > { %v3830_v49 = vsel %vm3775_vm6, %v3829_v55, %v3825_v19 }
 0x43e   : > { %v3598_v24 = vpop.permute.xlu1 %3597  ;;  %v3595_v40 = vpop.permute.xlu0 %3594  ;;  %v4103_v52 = vsel %vm4102_vm12, %v3830_v49, %v4101_v59 }
 0x43f   : > { %v3838_v29 = vrot.slane %v3595_v40, %v6310_v51  ;;  %v3843_v6 = vrot.slane %v3598_v24, %v6313_v28 }
 0x441   : > { %v3839_v50 = vsel %vm3775_vm6, %v3838_v29, %v3834_v13 }
 0x442   : > { %v4105_v44 = vsel %vm4104_vm13, %v3839_v50, %v4103_v52  ;;  %v3604_v0 = vpop.permute.xlu1 %3603  ;;  %v3601_v22 = vpop.permute.xlu0 %3600 }
 0x443   : > { %4136 = vst.msk [vmem:[%s6352_s2] sm:$0xff] %vm4135_vm14, %v4105_v44  ;;  %v3847_v4 = vrot.slane %v3601_v22, %v6310_v51  ;;  %v3852_v27 = vrot.slane %v3604_v0, %v6313_v28 }
 0x445   : > { %v3848_v14 = vsel %vm3775_vm6, %v3847_v4, %v3843_v6 }
 0x446   : > { %4138 = vst.msk [vmem:[%s6352_s2 + $0x8] sm:$0x1] %vm4137_vm15, %v3848_v14  ;;  %v3610_v45 = vpop.permute.xlu1 %3609  ;;  %v3607_v17 = vpop.permute.xlu0 %3606 }
 0x447   : > { %v3861_v61 = vrot.slane %v3610_v45, %v6313_v28  ;;  %v3856_v33 = vrot.slane %v3607_v17, %v6310_v51 }
 0x449   : > { %v3857_v34 = vsel %vm3775_vm6, %v3856_v33, %v3852_v27 }
 0x44a   : > { %v3616_v39 = vpop.permute.xlu1 %3615  ;;  %v3613_v9 = vpop.permute.xlu0 %3612 }
 0x44b   : > { %v3865_v48 = vrot.slane %v3613_v9, %v6310_v51  ;;  %v3870_v20 = vrot.slane %v3616_v39, %v6313_v28 }
 0x44d   : > { %v3866_v5 = vsel %vm3775_vm6, %v3865_v48, %v3861_v61 }
 0x44e   : > { %v3622_v12 = vpop.permute.xlu1 %3621  ;;  %v3619_v25 = vpop.permute.xlu0 %3618  ;;  %v4106_v62 = vsel %vm4092_vm7, %v3866_v5, %v3857_v34 }
 0x44f   : > { %v3874_v23 = vrot.slane %v3619_v25, %v6310_v51  ;;  %v3879_v15 = vrot.slane %v3622_v12, %v6313_v28 }
 0x451   : > { %v3875_v60 = vsel %vm3775_vm6, %v3874_v23, %v3870_v20 }
 0x452   : > { %v3628_v11 = vpop.permute.xlu1 %3627  ;;  %v3625_v56 = vpop.permute.xlu0 %3624  ;;  %v4107_v8 = vsel %vm4094_vm8, %v3875_v60, %v4106_v62 }
 0x453   : > { %v3883_v26 = vrot.slane %v3625_v56, %v6310_v51  ;;  %v3888_v38 = vrot.slane %v3628_v11, %v6313_v28 }
 0x455   : > { %v3884_v46 = vsel %vm3775_vm6, %v3883_v26, %v3879_v15 }
 0x456   : > { %v3634_v32 = vpop.permute.xlu1 %3633  ;;  %v3631_v35 = vpop.permute.xlu0 %3630  ;;  %v4108_v42 = vsel %vm4096_vm9, %v3884_v46, %v4107_v8 }
 0x457   : > { %v3892_v16 = vrot.slane %v3631_v35, %v6310_v51  ;;  %v3897_v2 = vrot.slane %v3634_v32, %v6313_v28 }
 0x459   : > { %v3893_v7 = vsel %vm3775_vm6, %v3892_v16, %v3888_v38 }
 0x45a   : > { %v3640_v57 = vpop.permute.xlu1 %3639  ;;  %v3637_v3 = vpop.permute.xlu0 %3636  ;;  %v4109_v55 = vsel %vm4098_vm10, %v3893_v7, %v4108_v42 }
 0x45b   : > { %v3901_v47 = vrot.slane %v3637_v3, %v6310_v51  ;;  %v3906_v31 = vrot.slane %v3640_v57, %v6313_v28 }
 0x45d   : > { %v3902_v1 = vsel %vm3775_vm6, %v3901_v47, %v3897_v2 }
 0x45e   : > { %v3646_v54 = vpop.permute.xlu1 %3645  ;;  %v3643_v18 = vpop.permute.xlu0 %3642  ;;  %v4110_v19 = vsel %vm4100_vm11, %v3902_v1, %v4109_v55 }
 0x45f   : > { %v3910_v36 = vrot.slane %v3643_v18, %v6310_v51  ;;  %v3915_v58 = vrot.slane %v3646_v54, %v6313_v28 }
 0x461   : > { %v3911_v21 = vsel %vm3775_vm6, %v3910_v36, %v3906_v31 }
 0x462   : > { %v3652_v43 = vpop.permute.xlu1 %3651  ;;  %v3649_v30 = vpop.permute.xlu0 %3648  ;;  %v4111_v37 = vsel %vm4102_vm12, %v3911_v21, %v4110_v19 }
 0x463   : > { %v3919_v10 = vrot.slane %v3649_v30, %v6310_v51  ;;  %v3924_v40 = vrot.slane %v3652_v43, %v6313_v28 }
 0x465   : > { %v3920_v41 = vsel %vm3775_vm6, %v3919_v10, %v3915_v58 }
 0x466   : > { %v4112_v63 = vsel %vm4104_vm13, %v3920_v41, %v4111_v37  ;;  %v3658_v49 = vpop.permute.xlu1 %3657  ;;  %v3655_v24 = vpop.permute.xlu0 %3654 }
 0x467   : > { %4139 = vst.msk [vmem:[%s6352_s2 + $0x10] sm:$0xff] %vm4135_vm14, %v4112_v63  ;;  %v3928_v53 = vrot.slane %v3655_v24, %v6310_v51  ;;  %v3933_v35 = vrot.slane %v3658_v49, %v6313_v28 }
 0x469   : > { %v3929_v13 = vsel %vm3775_vm6, %v3928_v53, %v3924_v40 }
 0x46a   : > { %4140 = vst.msk [vmem:[%s6352_s2 + $0x18] sm:$0x1] %vm4137_vm15, %v3929_v13  ;;  %v3664_v29 = vpop.permute.xlu1 %3663  ;;  %v3661_v59 = vpop.permute.xlu0 %3660 }
 0x46b   : > { %v3942_v12 = vrot.slane %v3664_v29, %v6313_v28  ;;  %v3937_v25 = vrot.slane %v3661_v59, %v6310_v51 }
 0x46d   : > { %v3938_v20 = vsel %vm3775_vm6, %v3937_v25, %v3933_v35 }
 0x46e   : > { %v3670_v52 = vpop.permute.xlu1 %3669  ;;  %v3667_v50 = vpop.permute.xlu0 %3666 }
 0x46f   : > { %v3946_v45 = vrot.slane %v3667_v50, %v6310_v51  ;;  %v3951_v56 = vrot.slane %v3670_v52, %v6313_v28 }
 0x471   : > { %v3947_v48 = vsel %vm3775_vm6, %v3946_v45, %v3942_v12 }
 0x472   : > { %v3676_v44 = vpop.permute.xlu1 %3675  ;;  %v3673_v0 = vpop.permute.xlu0 %3672  ;;  %v4113_v15 = vsel %vm4092_vm7, %v3947_v48, %v3938_v20 }
 0x473   : > { %v3955_v17 = vrot.slane %v3673_v0, %v6310_v51  ;;  %v3960_v23 = vrot.slane %v3676_v44, %v6313_v28 }
 0x475   : > { %v3956_v3 = vsel %vm3775_vm6, %v3955_v17, %v3951_v56 }
 0x476   : > { %v3682_v22 = vpop.permute.xlu1 %3681  ;;  %v3679_v6 = vpop.permute.xlu0 %3678  ;;  %v4114_v38 = vsel %vm4094_vm8, %v3956_v3, %v4113_v15 }
 0x477   : > { %v3964_v11 = vrot.slane %v3679_v6, %v6310_v51  ;;  %v3969_v61 = vrot.slane %v3682_v22, %v6313_v28 }
 0x479   : > { %v3965_v16 = vsel %vm3775_vm6, %v3964_v11, %v3960_v23 }
 0x47a   : > { %v3688_v4 = vpop.permute.xlu1 %3687  ;;  %v3685_v14 = vpop.permute.xlu0 %3684  ;;  %v4115_v18 = vsel %vm4096_vm9, %v3965_v16, %v4114_v38 }
 0x47b   : > { %v3973_v32 = vrot.slane %v3685_v14, %v6310_v51  ;;  %v3978_v27 = vrot.slane %v3688_v4, %v6313_v28 }
 0x47d   : > { %v3974_v47 = vsel %vm3775_vm6, %v3973_v32, %v3969_v61 }
 0x47e   : > { %v3694_v39 = vpop.permute.xlu1 %3693  ;;  %v3691_v9 = vpop.permute.xlu0 %3690  ;;  %v4116_v36 = vsel %vm4098_vm10, %v3974_v47, %v4115_v18 }
 0x47f   : > { %v3982_v57 = vrot.slane %v3691_v9, %v6310_v51  ;;  %v3987_v60 = vrot.slane %v3694_v39, %v6313_v28 }
 0x481   : > { %v3983_v54 = vsel %vm3775_vm6, %v3982_v57, %v3978_v27 }
 0x482   : > { %v3700_v33 = vpop.permute.xlu1 %3699  ;;  %v3697_v26 = vpop.permute.xlu0 %3696  ;;  %v4117_v31 = vsel %vm4100_vm11, %v3983_v54, %v4116_v36 }
 0x483   : > { %v3991_v5 = vrot.slane %v3697_v26, %v6310_v51  ;;  %v3996_v62 = vrot.slane %v3700_v33, %v6313_v28 }
 0x485   : > { %v3992_v34 = vsel %vm3775_vm6, %v3991_v5, %v3987_v60 }
 0x486   : > { %v3706_v46 = vpop.permute.xlu1 %3705  ;;  %v3703_v2 = vpop.permute.xlu0 %3702  ;;  %v4118_v8 = vsel %vm4102_vm12, %v3992_v34, %v4117_v31 }
 0x487   : > { %v4000_v7 = vrot.slane %v3703_v2, %v6310_v51  ;;  %v4005_v30 = vrot.slane %v3706_v46, %v6313_v28 }
 0x489   : > { %v4001_v1 = vsel %vm3775_vm6, %v4000_v7, %v3996_v62 }
 0x48a   : > { %v4119_v42 = vsel %vm4104_vm13, %v4001_v1, %v4118_v8  ;;  %v3712_v21 = vpop.permute.xlu1 %3711  ;;  %v3709_v43 = vpop.permute.xlu0 %3708 }
 0x48b   : > { %4141 = vst.msk [vmem:[%s6352_s2 + $0x20] sm:$0xff] %vm4135_vm14, %v4119_v42  ;;  %v4009_v55 = vrot.slane %v3709_v43, %v6310_v51  ;;  %v4014_v14 = vrot.slane %v3712_v21, %v6313_v28 }
 0x48d   : > { %v4010_v58 = vsel %vm3775_vm6, %v4009_v55, %v4005_v30 }
 0x48e   : > { %4142 = vst.msk [vmem:[%s6352_s2 + $0x28] sm:$0x1] %vm4137_vm15, %v4010_v58  ;;  %v3718_v10 = vpop.permute.xlu1 %3717  ;;  %v3715_v19 = vpop.permute.xlu0 %3714 }
 0x48f   : > { %v4023_v44 = vrot.slane %v3718_v10, %v6313_v28  ;;  %v4018_v0 = vrot.slane %v3715_v19, %v6310_v51 }
 0x491   : > { %v4019_v56 = vsel %vm3775_vm6, %v4018_v0, %v4014_v14 }
 0x492   : > { %v3724_v37 = vpop.permute.xlu1 %3723  ;;  %v3721_v41 = vpop.permute.xlu0 %3720 }
 0x493   : > { %v4027_v29 = vrot.slane %v3721_v41, %v6310_v51  ;;  %v4032_v6 = vrot.slane %v3724_v37, %v6313_v28 }
 0x495   : > { %v4028_v45 = vsel %vm3775_vm6, %v4027_v29, %v4023_v44 }
 0x496   : > { %v3730_v63 = vpop.permute.xlu1 %3729  ;;  %v3727_v49 = vpop.permute.xlu0 %3726  ;;  %v4120_v23 = vsel %vm4092_vm7, %v4028_v45, %v4019_v56 }
 0x497   : > { %v4036_v59 = vrot.slane %v3727_v49, %v6310_v51  ;;  %v4041_v17 = vrot.slane %v3730_v63, %v6313_v28 }
 0x499   : > { %v4037_v9 = vsel %vm3775_vm6, %v4036_v59, %v4032_v6 }
 0x49a   : > { %v3736_v24 = vpop.permute.xlu1 %3735  ;;  %v3733_v40 = vpop.permute.xlu0 %3732  ;;  %v4121_v61 = vsel %vm4094_vm8, %v4037_v9, %v4120_v23 }
 0x49b   : > { %v4045_v22 = vrot.slane %v3733_v40, %v6310_v51  ;;  %v4050_v12 = vrot.slane %v3736_v24, %v6313_v28 }
 0x49d   : > { %v4046_v32 = vsel %vm3775_vm6, %v4045_v22, %v4041_v17 }
 0x49e   : > { %v3742_v53 = vpop.permute.xlu1 %3741  ;;  %v3739_v13 = vpop.permute.xlu0 %3738  ;;  %v4122_v26 = vsel %vm4096_vm9, %v4046_v32, %v4121_v61 }
 0x49f   : > { %v4054_v4 = vrot.slane %v3739_v13, %v6310_v51  ;;  %v4059_v35 = vrot.slane %v3742_v53, %v6313_v28 }
 0x4a1   : > { %v4055_v57 = vsel %vm3775_vm6, %v4054_v4, %v4050_v12 }
 0x4a2   : > { %v3748_v52 = vpop.permute.xlu1 %3747  ;;  %v3745_v50 = vpop.permute.xlu0 %3744  ;;  %v4123_v27 = vsel %vm4098_vm10, %v4055_v57, %v4122_v26 }
 0x4a3   : > { %v4063_v39 = vrot.slane %v3745_v50, %v6310_v51  ;;  %v4068_v3 = vrot.slane %v3748_v52, %v6313_v28 }
 0x4a5   : > { %v4064_v33 = vsel %vm3775_vm6, %v4063_v39, %v4059_v35 }
 0x4a6   : > { %v3754_v25 = vpop.permute.xlu1 %3753  ;;  %v3751_v11 = vpop.permute.xlu0 %3750  ;;  %v4124_v47 = vsel %vm4100_vm11, %v4064_v33, %v4123_v27 }
 0x4a7   : > { %v4072_v48 = vrot.slane %v3751_v11, %v6310_v51  ;;  %v4077_v5 = vrot.slane %v3754_v25, %v6313_v28 }
 0x4a9   : > { %v4073_v20 = vsel %vm3775_vm6, %v4072_v48, %v4068_v3 }
 0x4aa   : > { %v3757_v16 = vpop.permute.xlu0 %3756  ;;  %v3760_v60 = vpop.permute.xlu1 %3759  ;;  %v4125_v38 = vsel %vm4102_vm12, %v4073_v20, %v4124_v47 }
 0x4ab   : > { %v4081_v15 = vrot.slane %v3757_v16, %v6310_v51  ;;  %v4086_v46 = vrot.slane %v3760_v60, %v6313_v28 }
 0x4ad   : > { %v4082_v54 = vsel %vm3775_vm6, %v4081_v15, %v4077_v5 }
 0x4ae   : > { %v4126_v18 = vsel %vm4104_vm13, %v4082_v54, %v4125_v38  ;;  %v3763_v34 = vpop.permute.xlu0 %3762 }
 0x4af   : > { %4143 = vst.msk [vmem:[%s6352_s2 + $0x30] sm:$0xff] %vm4135_vm14, %v4126_v18  ;;  %v4090_v2 = vrot.slane %v3763_v34, %v6310_v51 }
 0x4b1   : > { %v4091_v36 = vsel %vm3775_vm6, %v4090_v2, %v4086_v46 }
 0x4b2   : > { %4144 = vst.msk [vmem:[%s6352_s2 + $0x38] sm:$0x1] %vm4137_vm15, %v4091_v36 }
 0x4b3 PF: > { %p11_p9 = scmp.ge.s32.totalorder %s4400_s11, 4   ;;  %s6966_s6 = smov %s4343_s7 }
 0x4b4   : > { %s6967_s7 = smov %s4347_s8  ;;  %s6968_s8 = smov %s4410_s14 }
 0x4b5   : > { %s6969_s9 = smov %s4400_s11  ;;  %13 = sbr.rel (!%p11_p9) target bundleno = 3 (0x3), region = 64 }
 0x4ba   :  { %4169 = vsyncpa [#allocation4], 1 }
 0x4bb   :  { %4171 = vsyncpa [#allocation4 + $0x1], 1 }

</bundles_post_ra>
